<compile_context>
chip_gen: v7x
topology: tpu7x:2x2x1
jax: 0.10.0
libtpu: 0.0.40
codegen_flags: <defaults>
</compile_context>

<pallas_src>
import jax
import jax.numpy as jnp
from jax import lax
from jax.experimental import pallas as pl
from jax.experimental.pallas import tpu as pltpu

# ---------------- small BERT config (scaled-down bert-base-uncased) -----------
VOCAB = 128
HIDDEN = 128
N_LAYERS = 2
N_HEADS = 4
HEAD_DIM = HIDDEN // N_HEADS
INTERMEDIATE = 256
MAX_POS = 32
TYPE_VOCAB = 2
LN_EPS = 1e-12

BATCH = 2
SEQ = 8
ROWS = BATCH * SEQ        # collapsed (B*S) row dimension
OUT_PAD = 128             # final Linear(H, 1) padded to a lane-dense 128-wide output


# ---------------------------- in-kernel helpers --------------------------------
def _layernorm(x, g, b):
    mean = jnp.mean(x, axis=-1, keepdims=True)
    xc = x - mean
    var = jnp.mean(xc * xc, axis=-1, keepdims=True)
    inv = lax.rsqrt(var + jnp.float32(LN_EPS))
    return xc * inv * g + b


def _erf(x):
    # Abramowitz & Stegun 7.1.26 polynomial erf (max abs err ~1.5e-7).
    # TODO(synk): swap for lax.erf if/when a Mosaic lowering is guaranteed.
    p = jnp.float32(0.3275911)
    a1 = jnp.float32(0.254829592)
    a2 = jnp.float32(-0.284496736)
    a3 = jnp.float32(1.421413741)
    a4 = jnp.float32(-1.453152027)
    a5 = jnp.float32(1.061405429)
    ax = jnp.abs(x)
    t = 1.0 / (1.0 + p * ax)
    poly = ((((a5 * t + a4) * t + a3) * t + a2) * t + a1) * t
    y = 1.0 - poly * jnp.exp(-ax * ax)
    return jnp.where(x >= 0, y, -y)


def _gelu_exact(x):
    return 0.5 * x * (1.0 + _erf(x * jnp.float32(0.7071067811865476)))


def _dot_bf16(x_f32, w_bf16):
    # bf16 MXU operands, f32 accumulation.
    return jnp.dot(x_f32.astype(jnp.bfloat16), w_bf16,
                   preferred_element_type=jnp.float32)


_TRANS_B = (((1,), (1,)), ((), ()))  # contract K along its last dim (no k.T)


# ---------------------------- fused forward kernel -----------------------------
def _fused_bert_kernel(emb_ref, bias_ref,
                       emb_g_ref, emb_b_ref,
                       qkv_w_ref, qkv_b_ref,
                       ao_w_ref, ao_b_ref,
                       ln1_g_ref, ln1_b_ref,
                       ff1_w_ref, ff1_b_ref,
                       ff2_w_ref, ff2_b_ref,
                       ln2_g_ref, ln2_b_ref,
                       pool_w_ref, pool_b_ref,
                       out_w_ref, out_b_ref,
                       o_ref):
    f32 = jnp.float32
    bf16 = jnp.bfloat16
    R = ROWS

    x = _layernorm(emb_ref[...], emb_g_ref[...], emb_b_ref[...])      # (R, H) f32
    bias_all = bias_ref[...]                                           # (NH*R, R) f32

    # TODO(synk): for deeper models switch this static unroll to lax.fori_loop
    # over the stacked (L, ...) weight refs and/or stream layers via a grid axis.
    for l in range(N_LAYERS):                                          # static unroll
        # ---- fused QKV projection (1/sqrt(D) pre-folded into the Q columns) ----
        qkv = _dot_bf16(x, qkv_w_ref[l]) + qkv_b_ref[l]                # (R, 3H) f32
        q = qkv[:, :HIDDEN].astype(bf16)                               # lane-aligned slices
        k = qkv[:, HIDDEN:2 * HIDDEN].astype(bf16)
        v = qkv[:, 2 * HIDDEN:].astype(bf16)

        # ---- per-head scores stacked on the sublane axis -> one softmax chain ----
        scores = [
            lax.dot_general(q[:, h * HEAD_DIM:(h + 1) * HEAD_DIM],
                            k[:, h * HEAD_DIM:(h + 1) * HEAD_DIM],
                            _TRANS_B, preferred_element_type=f32)      # (R, R)
            for h in range(N_HEADS)
        ]
        s = jnp.concatenate(scores, axis=0) + bias_all                 # (NH*R, R)
        mx = jnp.max(s, axis=-1, keepdims=True)
        e = jnp.exp(s - mx)
        denom = jnp.sum(e, axis=-1, keepdims=True)
        prob = (e * pl.reciprocal(denom, approx=True)).astype(bf16)    # EUP reciprocal

        # ---- per-head P@V + output projection, accumulated (no lane concat) ----
        ao_w_l = ao_w_ref[l]                                           # (H, H) bf16
        acc = x + ao_b_ref[l]                                          # residual + bias
        for h in range(N_HEADS):
            ctx_h = jnp.dot(prob[h * R:(h + 1) * R, :],
                            v[:, h * HEAD_DIM:(h + 1) * HEAD_DIM],
                            preferred_element_type=f32)                # (R, D)
            acc = acc + jnp.dot(ctx_h.astype(bf16),
                                ao_w_l[h * HEAD_DIM:(h + 1) * HEAD_DIM, :],
                                preferred_element_type=f32)
        x = _layernorm(acc, ln1_g_ref[l], ln1_b_ref[l])

        # ---- fused FFN: ff1 + exact GELU + ff2 + residual LayerNorm ----
        hmid = _gelu_exact(_dot_bf16(x, ff1_w_ref[l]) + ff1_b_ref[l])  # (R, I)
        ffn = _dot_bf16(hmid, ff2_w_ref[l]) + ff2_b_ref[l]
        x = _layernorm(ffn + x, ln2_g_ref[l], ln2_b_ref[l])

    # ---- pooler (tanh) + Linear(H,1) head on CLS rows only ----
    # CLS rows of the collapsed (B*S, H) slab are rows b*SEQ (sublane-aligned).
    cls = jnp.concatenate([x[b * SEQ:b * SEQ + 1, :] for b in range(BATCH)],
                          axis=0)                                      # (B, H)
    pooled = jnp.tanh(_dot_bf16(cls, pool_w_ref[...]) + pool_b_ref[...])  # (B, H)
    o_ref[...] = _dot_bf16(pooled, out_w_ref[...]) + out_b_ref[...]       # (B, 128)


# ---------------------------- wrapper (glue + pallas_call) ----------------------
def _full_spec(shape):
    nd = len(shape)
    return pl.BlockSpec(shape, lambda i, _nd=nd: (0,) * _nd)


@jax.jit
def bert_forward(params, ids, mask, token_type_ids):
    B, S = ids.shape
    R = B * S

    # embeddings (gather is plain-JAX glue), collapsed to (B*S, H)
    emb = (params["word_emb"][ids]
           + params["pos_emb"][jnp.arange(S)][None, :, :]
           + params["type_emb"][token_type_ids]).astype(jnp.float32)
    emb = emb.reshape(R, HIDDEN)

    # Block-diagonal (per-batch) + key-padding additive bias, tiled per head:
    # bias[i, j] = 0 if batch(i)==batch(j) and key j not padded, else -1e9.
    row_batch = jnp.arange(R) // S
    same_batch = row_batch[:, None] == row_batch[None, :]                    # (R, R)
    key_keep = (mask.reshape(1, R) > 0)                                      # (1, R)
    bias = jnp.where(jnp.logical_and(same_batch, key_keep),
                     0.0, -1e9).astype(jnp.float32)                          # (R, R)
    bias_all = jnp.tile(bias, (N_HEADS, 1))                                  # (NH*R, R)

    layers = params["layers"]
    scale = jnp.float32(1.0 / (HEAD_DIM ** 0.5))

    def stack(name, cast_bf16=False, as_row=False):
        arrs = []
        for lp in layers:
            a = lp[name]
            if as_row:
                a = a.reshape(1, -1)
            arrs.append(a)
        out = jnp.stack(arrs)
        return out.astype(jnp.bfloat16) if cast_bf16 else out

    # fused QKV weights (L, H, 3H) bf16 with 1/sqrt(D) folded into Q columns;
    # biases (L, 1, 3H) f32 with the same fold on q_b.
    qkv_w = jnp.stack(
        [jnp.concatenate([lp["q_w"] * scale, lp["k_w"], lp["v_w"]], axis=1)
         for lp in layers]).astype(jnp.bfloat16)
    qkv_b = jnp.stack(
        [jnp.concatenate([lp["q_b"] * scale, lp["k_b"], lp["v_b"]]).reshape(1, -1)
         for lp in layers])
    ao_w = stack("ao_w", cast_bf16=True)
    ao_b = stack("ao_b", as_row=True)
    ln1_g = stack("ln1_g", as_row=True)
    ln1_b = stack("ln1_b", as_row=True)
    ff1_w = stack("ff1_w", cast_bf16=True)
    ff1_b = stack("ff1_b", as_row=True)
    ff2_w = stack("ff2_w", cast_bf16=True)
    ff2_b = stack("ff2_b", as_row=True)
    ln2_g = stack("ln2_g", as_row=True)
    ln2_b = stack("ln2_b", as_row=True)

    pool_w = params["pooler_w"].astype(jnp.bfloat16)
    pool_b = params["pooler_b"].reshape(1, HIDDEN)
    # pad the Linear(H, 1) head to a full 128-lane output (lane 0 is real)
    out_w = (jnp.zeros((HIDDEN, OUT_PAD), jnp.float32)
             .at[:, 0].set(params["out_w"][:, 0]).astype(jnp.bfloat16))
    out_b = jnp.zeros((1, OUT_PAD), jnp.float32).at[0, 0].set(params["out_b"][0])
    emb_g = params["emb_ln_g"].reshape(1, HIDDEN)
    emb_b = params["emb_ln_b"].reshape(1, HIDDEN)

    inputs = (emb, bias_all, emb_g, emb_b,
              qkv_w, qkv_b, ao_w, ao_b, ln1_g, ln1_b,
              ff1_w, ff1_b, ff2_w, ff2_b, ln2_g, ln2_b,
              pool_w, pool_b, out_w, out_b)

    # single grid step: all B*S rows processed in one shot, weights VMEM-resident.
    # TODO(synk): on v7x with larger batches, split the row dim over a 'parallel'
    # grid axis so both TensorCores get work; at real bert-base sizes add a layer
    # grid axis and stream the per-layer weight stacks instead of full residency.
    in_specs = [_full_spec(a.shape) for a in inputs]

    y = pl.pallas_call(
        _fused_bert_kernel,
        out_shape=jax.ShapeDtypeStruct((B, OUT_PAD), jnp.float32),
        grid=(1,),
        in_specs=in_specs,
        out_specs=pl.BlockSpec((B, OUT_PAD), lambda i: (0, 0)),
        compiler_params=pltpu.CompilerParams(
            dimension_semantics=("arbitrary",),
            vmem_limit_bytes=32 * 1024 * 1024),
    )(*inputs)

    # lane 0 == real Linear(H,1) output
    return y[:, :1]                                           # (B, 1)


# ---------------------------- parameter init ------------------------------------
def init_params(key):
    keys = iter(jax.random.split(key, 256))

    def w(shape):
        return (0.02 * jax.random.normal(next(keys), shape)).astype(jnp.float32)

    def zeros(*shape):
        return jnp.zeros(shape, jnp.float32)

    def ones(*shape):
        return jnp.ones(shape, jnp.float32)

    params = {
        "word_emb": w((VOCAB, HIDDEN)),
        "pos_emb": w((MAX_POS, HIDDEN)),
        "type_emb": w((TYPE_VOCAB, HIDDEN)),
        "emb_ln_g": ones(HIDDEN),
        "emb_ln_b": zeros(HIDDEN),
        "layers": [],
        "pooler_w": w((HIDDEN, HIDDEN)),
        "pooler_b": zeros(HIDDEN),
        "out_w": w((HIDDEN, 1)),
        "out_b": zeros(1),
    }
    for _ in range(N_LAYERS):
        params["layers"].append({
            "q_w": w((HIDDEN, HIDDEN)), "q_b": zeros(HIDDEN),
            "k_w": w((HIDDEN, HIDDEN)), "k_b": zeros(HIDDEN),
            "v_w": w((HIDDEN, HIDDEN)), "v_b": zeros(HIDDEN),
            "ao_w": w((HIDDEN, HIDDEN)), "ao_b": zeros(HIDDEN),
            "ln1_g": ones(HIDDEN), "ln1_b": zeros(HIDDEN),
            "ff1_w": w((HIDDEN, INTERMEDIATE)), "ff1_b": zeros(INTERMEDIATE),
            "ff2_w": w((INTERMEDIATE, HIDDEN)), "ff2_b": zeros(HIDDEN),
            "ln2_g": ones(HIDDEN), "ln2_b": zeros(HIDDEN),
        })
    return params


if __name__ == "__main__":
    root = jax.random.PRNGKey(0)
    k_param, k_ids, k_tt = jax.random.split(root, 3)

    params = init_params(k_param)

    ids = jax.random.randint(k_ids, (BATCH, SEQ), 0, VOCAB, dtype=jnp.int32)
    token_type_ids = jax.random.randint(k_tt, (BATCH, SEQ), 0, TYPE_VOCAB,
                                        dtype=jnp.int32)
    # attention mask: second sequence has 2 padded positions at the end
    mask = jnp.ones((BATCH, SEQ), jnp.int32).at[1, -2:].set(0)

    out = bert_forward(params, ids, mask, token_type_ids)
    out = jax.block_until_ready(out)
    assert out.shape == (BATCH, 1) and out.dtype == jnp.float32
    assert bool(jnp.all(jnp.isfinite(out)))
    print("KERNEL_OK")
</pallas_src>

<mosaic_0001>
module attributes {stable_mosaic.version = 11 : i64} {
  func.func @_fused_bert_kernel(%arg0: i32, %arg1: memref<16x128xf32, #tpu.memory_space<vmem>>, %arg2: memref<64x16xf32, #tpu.memory_space<vmem>>, %arg3: memref<1x128xf32, #tpu.memory_space<vmem>>, %arg4: memref<1x128xf32, #tpu.memory_space<vmem>>, %arg5: memref<2x128x384xbf16, #tpu.memory_space<vmem>>, %arg6: memref<2x1x384xf32, #tpu.memory_space<vmem>>, %arg7: memref<2x128x128xbf16, #tpu.memory_space<vmem>>, %arg8: memref<2x1x128xf32, #tpu.memory_space<vmem>>, %arg9: memref<2x1x128xf32, #tpu.memory_space<vmem>>, %arg10: memref<2x1x128xf32, #tpu.memory_space<vmem>>, %arg11: memref<2x128x256xbf16, #tpu.memory_space<vmem>>, %arg12: memref<2x1x256xf32, #tpu.memory_space<vmem>>, %arg13: memref<2x256x128xbf16, #tpu.memory_space<vmem>>, %arg14: memref<2x1x128xf32, #tpu.memory_space<vmem>>, %arg15: memref<2x1x128xf32, #tpu.memory_space<vmem>>, %arg16: memref<2x1x128xf32, #tpu.memory_space<vmem>>, %arg17: memref<128x128xbf16, #tpu.memory_space<vmem>>, %arg18: memref<1x128xf32, #tpu.memory_space<vmem>>, %arg19: memref<128x128xbf16, #tpu.memory_space<vmem>>, %arg20: memref<1x128xf32, #tpu.memory_space<vmem>>, %arg21: memref<2x128xf32, #tpu.memory_space<vmem>>) attributes {dimension_semantics = [#tpu.dimension_semantics<arbitrary>], iteration_bounds = array<i64: 1>, scalar_prefetch = 0 : i64, scratch_operands = 0 : i64, tpu.core_type = #tpu.core_type<tc>, window_params = [{pipeline_mode = #tpu.pipeline_mode<synchronous>, transform_indices = @transform_0, window_bounds = array<i64: 16, 128>}, {pipeline_mode = #tpu.pipeline_mode<synchronous>, transform_indices = @transform_1, window_bounds = array<i64: 64, 16>}, {pipeline_mode = #tpu.pipeline_mode<synchronous>, transform_indices = @transform_2, window_bounds = array<i64: 1, 128>}, {pipeline_mode = #tpu.pipeline_mode<synchronous>, transform_indices = @transform_3, window_bounds = array<i64: 1, 128>}, {pipeline_mode = #tpu.pipeline_mode<synchronous>, transform_indices = @transform_4, window_bounds = array<i64: 2, 128, 384>}, {pipeline_mode = #tpu.pipeline_mode<synchronous>, transform_indices = @transform_5, window_bounds = array<i64: 2, 1, 384>}, {pipeline_mode = #tpu.pipeline_mode<synchronous>, transform_indices = @transform_6, window_bounds = array<i64: 2, 128, 128>}, {pipeline_mode = #tpu.pipeline_mode<synchronous>, transform_indices = @transform_7, window_bounds = array<i64: 2, 1, 128>}, {pipeline_mode = #tpu.pipeline_mode<synchronous>, transform_indices = @transform_8, window_bounds = array<i64: 2, 1, 128>}, {pipeline_mode = #tpu.pipeline_mode<synchronous>, transform_indices = @transform_9, window_bounds = array<i64: 2, 1, 128>}, {pipeline_mode = #tpu.pipeline_mode<synchronous>, transform_indices = @transform_10, window_bounds = array<i64: 2, 128, 256>}, {pipeline_mode = #tpu.pipeline_mode<synchronous>, transform_indices = @transform_11, window_bounds = array<i64: 2, 1, 256>}, {pipeline_mode = #tpu.pipeline_mode<synchronous>, transform_indices = @transform_12, window_bounds = array<i64: 2, 256, 128>}, {pipeline_mode = #tpu.pipeline_mode<synchronous>, transform_indices = @transform_13, window_bounds = array<i64: 2, 1, 128>}, {pipeline_mode = #tpu.pipeline_mode<synchronous>, transform_indices = @transform_14, window_bounds = array<i64: 2, 1, 128>}, {pipeline_mode = #tpu.pipeline_mode<synchronous>, transform_indices = @transform_15, window_bounds = array<i64: 2, 1, 128>}, {pipeline_mode = #tpu.pipeline_mode<synchronous>, transform_indices = @transform_16, window_bounds = array<i64: 128, 128>}, {pipeline_mode = #tpu.pipeline_mode<synchronous>, transform_indices = @transform_17, window_bounds = array<i64: 1, 128>}, {pipeline_mode = #tpu.pipeline_mode<synchronous>, transform_indices = @transform_18, window_bounds = array<i64: 128, 128>}, {pipeline_mode = #tpu.pipeline_mode<synchronous>, transform_indices = @transform_19, window_bounds = array<i64: 1, 128>}, {pipeline_mode = #tpu.pipeline_mode<synchronous>, transform_indices = @transform_20, window_bounds = array<i64: 2, 128>}]} {
    %c0 = arith.constant 0 : index
    %c0_0 = arith.constant 0 : index
    %0 = vector.load %arg1[%c0, %c0_0] : memref<16x128xf32, #tpu.memory_space<vmem>>, vector<16x128xf32>
    %c0_1 = arith.constant 0 : index
    %c0_2 = arith.constant 0 : index
    %1 = vector.load %arg3[%c0_1, %c0_2] : memref<1x128xf32, #tpu.memory_space<vmem>>, vector<1x128xf32>
    %c0_3 = arith.constant 0 : index
    %c0_4 = arith.constant 0 : index
    %2 = vector.load %arg4[%c0_3, %c0_4] : memref<1x128xf32, #tpu.memory_space<vmem>>, vector<1x128xf32>
    %cst = arith.constant dense<0.000000e+00> : vector<16xf32>
    %3 = vector.multi_reduction <add>, %0, %cst [1] : vector<16x128xf32> to vector<16xf32>
    %4 = vector.shape_cast %3 : vector<16xf32> to vector<16x1xf32>
    %cst_5 = arith.constant 1.280000e+02 : f32
    %5 = vector.broadcast %cst_5 : f32 to vector<16x1xf32>
    %6 = arith.divf %4, %5 : vector<16x1xf32>
    %7 = vector.broadcast %6 : vector<16x1xf32> to vector<16x128xf32>
    %8 = arith.subf %0, %7 : vector<16x128xf32>
    %9 = arith.mulf %8, %8 : vector<16x128xf32>
    %cst_6 = arith.constant dense<0.000000e+00> : vector<16xf32>
    %10 = vector.multi_reduction <add>, %9, %cst_6 [1] : vector<16x128xf32> to vector<16xf32>
    %11 = vector.shape_cast %10 : vector<16xf32> to vector<16x1xf32>
    %cst_7 = arith.constant 1.280000e+02 : f32
    %12 = vector.broadcast %cst_7 : f32 to vector<16x1xf32>
    %13 = arith.divf %11, %12 : vector<16x1xf32>
    %cst_8 = arith.constant 9.99999996E-13 : f32
    %14 = vector.broadcast %cst_8 : f32 to vector<16x1xf32>
    %15 = arith.addf %13, %14 : vector<16x1xf32>
    %16 = math.rsqrt %15 : vector<16x1xf32>
    %17 = vector.broadcast %16 : vector<16x1xf32> to vector<16x128xf32>
    %18 = arith.mulf %8, %17 : vector<16x128xf32>
    %19 = vector.broadcast %1 : vector<1x128xf32> to vector<16x128xf32>
    %20 = arith.mulf %18, %19 : vector<16x128xf32>
    %21 = vector.broadcast %2 : vector<1x128xf32> to vector<16x128xf32>
    %22 = arith.addf %20, %21 : vector<16x128xf32>
    %c0_9 = arith.constant 0 : index
    %c0_10 = arith.constant 0 : index
    %23 = vector.load %arg2[%c0_9, %c0_10] : memref<64x16xf32, #tpu.memory_space<vmem>>, vector<64x16xf32>
    %c0_11 = arith.constant 0 : index
    %c0_12 = arith.constant 0 : index
    %c0_13 = arith.constant 0 : index
    %24 = vector.load %arg5[%c0_11, %c0_12, %c0_13] : memref<2x128x384xbf16, #tpu.memory_space<vmem>>, vector<1x128x384xbf16>
    %25 = vector.shape_cast %24 : vector<1x128x384xbf16> to vector<128x384xbf16>
    %26 = arith.truncf %22 : vector<16x128xf32> to vector<16x128xbf16>
    %cst_14 = arith.constant dense<0.000000e+00> : vector<16x384xf32>
    %27 = tpu.matmul %26, %25, %cst_14 {dimension_numbers = #tpu.dot_dimension_numbers<[1], [0], [0], [1], [0, 0, 1, 1], [], []>} : vector<16x128xbf16>, vector<128x384xbf16>, vector<16x384xf32> -> vector<16x384xf32>
    %c0_15 = arith.constant 0 : index
    %c0_16 = arith.constant 0 : index
    %c0_17 = arith.constant 0 : index
    %28 = vector.load %arg6[%c0_15, %c0_16, %c0_17] : memref<2x1x384xf32, #tpu.memory_space<vmem>>, vector<1x1x384xf32>
    %29 = vector.shape_cast %28 : vector<1x1x384xf32> to vector<1x384xf32>
    %30 = vector.broadcast %29 : vector<1x384xf32> to vector<16x384xf32>
    %31 = arith.addf %27, %30 : vector<16x384xf32>
    %32 = vector.extract_strided_slice %31 {offsets = [0, 0], sizes = [16, 128], strides = [1, 1]} : vector<16x384xf32> to vector<16x128xf32>
    %33 = arith.truncf %32 : vector<16x128xf32> to vector<16x128xbf16>
    %34 = vector.extract_strided_slice %31 {offsets = [0, 128], sizes = [16, 128], strides = [1, 1]} : vector<16x384xf32> to vector<16x128xf32>
    %35 = arith.truncf %34 : vector<16x128xf32> to vector<16x128xbf16>
    %36 = vector.extract_strided_slice %31 {offsets = [0, 256], sizes = [16, 128], strides = [1, 1]} : vector<16x384xf32> to vector<16x128xf32>
    %37 = arith.truncf %36 : vector<16x128xf32> to vector<16x128xbf16>
    %38 = vector.extract_strided_slice %33 {offsets = [0, 0], sizes = [16, 32], strides = [1, 1]} : vector<16x128xbf16> to vector<16x32xbf16>
    %39 = vector.extract_strided_slice %35 {offsets = [0, 0], sizes = [16, 32], strides = [1, 1]} : vector<16x128xbf16> to vector<16x32xbf16>
    %cst_18 = arith.constant dense<0.000000e+00> : vector<16x16xf32>
    %40 = tpu.matmul %38, %39, %cst_18 {dimension_numbers = #tpu.dot_dimension_numbers<[1], [1], [0], [0], [0, 0, 1, 0], [], []>} : vector<16x32xbf16>, vector<16x32xbf16>, vector<16x16xf32> -> vector<16x16xf32>
    %41 = vector.extract_strided_slice %33 {offsets = [0, 32], sizes = [16, 32], strides = [1, 1]} : vector<16x128xbf16> to vector<16x32xbf16>
    %42 = vector.extract_strided_slice %35 {offsets = [0, 32], sizes = [16, 32], strides = [1, 1]} : vector<16x128xbf16> to vector<16x32xbf16>
    %cst_19 = arith.constant dense<0.000000e+00> : vector<16x16xf32>
    %43 = tpu.matmul %41, %42, %cst_19 {dimension_numbers = #tpu.dot_dimension_numbers<[1], [1], [0], [0], [0, 0, 1, 0], [], []>} : vector<16x32xbf16>, vector<16x32xbf16>, vector<16x16xf32> -> vector<16x16xf32>
    %44 = vector.extract_strided_slice %33 {offsets = [0, 64], sizes = [16, 32], strides = [1, 1]} : vector<16x128xbf16> to vector<16x32xbf16>
    %45 = vector.extract_strided_slice %35 {offsets = [0, 64], sizes = [16, 32], strides = [1, 1]} : vector<16x128xbf16> to vector<16x32xbf16>
    %cst_20 = arith.constant dense<0.000000e+00> : vector<16x16xf32>
    %46 = tpu.matmul %44, %45, %cst_20 {dimension_numbers = #tpu.dot_dimension_numbers<[1], [1], [0], [0], [0, 0, 1, 0], [], []>} : vector<16x32xbf16>, vector<16x32xbf16>, vector<16x16xf32> -> vector<16x16xf32>
    %47 = vector.extract_strided_slice %33 {offsets = [0, 96], sizes = [16, 32], strides = [1, 1]} : vector<16x128xbf16> to vector<16x32xbf16>
    %48 = vector.extract_strided_slice %35 {offsets = [0, 96], sizes = [16, 32], strides = [1, 1]} : vector<16x128xbf16> to vector<16x32xbf16>
    %cst_21 = arith.constant dense<0.000000e+00> : vector<16x16xf32>
    %49 = tpu.matmul %47, %48, %cst_21 {dimension_numbers = #tpu.dot_dimension_numbers<[1], [1], [0], [0], [0, 0, 1, 0], [], []>} : vector<16x32xbf16>, vector<16x32xbf16>, vector<16x16xf32> -> vector<16x16xf32>
    %50 = tpu.concatenate %40, %43, %46, %49 in 0 : vector<16x16xf32>, vector<16x16xf32>, vector<16x16xf32>, vector<16x16xf32> -> vector<64x16xf32>
    %51 = arith.addf %50, %23 : vector<64x16xf32>
    %cst_22 = arith.constant dense<0xFF800000> : vector<64xf32>
    %52 = vector.multi_reduction <maximumf>, %51, %cst_22 [1] : vector<64x16xf32> to vector<64xf32>
    %53 = vector.shape_cast %52 : vector<64xf32> to vector<64x1xf32>
    %54 = vector.broadcast %53 : vector<64x1xf32> to vector<64x16xf32>
    %55 = arith.subf %51, %54 : vector<64x16xf32>
    %56 = math.exp %55 : vector<64x16xf32>
    %cst_23 = arith.constant dense<0.000000e+00> : vector<64xf32>
    %57 = vector.multi_reduction <add>, %56, %cst_23 [1] : vector<64x16xf32> to vector<64xf32>
    %58 = vector.shape_cast %57 : vector<64xf32> to vector<64x1xf32>
    %59 = tpu.reciprocal %58 {approx = true} : vector<64x1xf32> -> vector<64x1xf32>
    %60 = vector.broadcast %59 : vector<64x1xf32> to vector<64x16xf32>
    %61 = arith.mulf %56, %60 : vector<64x16xf32>
    %62 = arith.truncf %61 : vector<64x16xf32> to vector<64x16xbf16>
    %c0_24 = arith.constant 0 : index
    %c0_25 = arith.constant 0 : index
    %c0_26 = arith.constant 0 : index
    %63 = vector.load %arg7[%c0_24, %c0_25, %c0_26] : memref<2x128x128xbf16, #tpu.memory_space<vmem>>, vector<1x128x128xbf16>
    %64 = vector.shape_cast %63 : vector<1x128x128xbf16> to vector<128x128xbf16>
    %c0_27 = arith.constant 0 : index
    %c0_28 = arith.constant 0 : index
    %c0_29 = arith.constant 0 : index
    %65 = vector.load %arg8[%c0_27, %c0_28, %c0_29] : memref<2x1x128xf32, #tpu.memory_space<vmem>>, vector<1x1x128xf32>
    %66 = vector.shape_cast %65 : vector<1x1x128xf32> to vector<1x128xf32>
    %67 = vector.broadcast %66 : vector<1x128xf32> to vector<16x128xf32>
    %68 = arith.addf %22, %67 : vector<16x128xf32>
    %69 = vector.extract_strided_slice %62 {offsets = [0, 0], sizes = [16, 16], strides = [1, 1]} : vector<64x16xbf16> to vector<16x16xbf16>
    %70 = vector.extract_strided_slice %37 {offsets = [0, 0], sizes = [16, 32], strides = [1, 1]} : vector<16x128xbf16> to vector<16x32xbf16>
    %cst_30 = arith.constant dense<0.000000e+00> : vector<16x32xf32>
    %71 = tpu.matmul %69, %70, %cst_30 {dimension_numbers = #tpu.dot_dimension_numbers<[1], [0], [0], [1], [0, 0, 1, 1], [], []>} : vector<16x16xbf16>, vector<16x32xbf16>, vector<16x32xf32> -> vector<16x32xf32>
    %72 = arith.truncf %71 : vector<16x32xf32> to vector<16x32xbf16>
    %73 = vector.extract_strided_slice %64 {offsets = [0, 0], sizes = [32, 128], strides = [1, 1]} : vector<128x128xbf16> to vector<32x128xbf16>
    %cst_31 = arith.constant dense<0.000000e+00> : vector<16x128xf32>
    %74 = tpu.matmul %72, %73, %cst_31 {dimension_numbers = #tpu.dot_dimension_numbers<[1], [0], [0], [1], [0, 0, 1, 1], [], []>} : vector<16x32xbf16>, vector<32x128xbf16>, vector<16x128xf32> -> vector<16x128xf32>
    %75 = arith.addf %68, %74 : vector<16x128xf32>
    %76 = vector.extract_strided_slice %62 {offsets = [16, 0], sizes = [16, 16], strides = [1, 1]} : vector<64x16xbf16> to vector<16x16xbf16>
    %77 = vector.extract_strided_slice %37 {offsets = [0, 32], sizes = [16, 32], strides = [1, 1]} : vector<16x128xbf16> to vector<16x32xbf16>
    %cst_32 = arith.constant dense<0.000000e+00> : vector<16x32xf32>
    %78 = tpu.matmul %76, %77, %cst_32 {dimension_numbers = #tpu.dot_dimension_numbers<[1], [0], [0], [1], [0, 0, 1, 1], [], []>} : vector<16x16xbf16>, vector<16x32xbf16>, vector<16x32xf32> -> vector<16x32xf32>
    %79 = arith.truncf %78 : vector<16x32xf32> to vector<16x32xbf16>
    %80 = vector.extract_strided_slice %64 {offsets = [32, 0], sizes = [32, 128], strides = [1, 1]} : vector<128x128xbf16> to vector<32x128xbf16>
    %cst_33 = arith.constant dense<0.000000e+00> : vector<16x128xf32>
    %81 = tpu.matmul %79, %80, %cst_33 {dimension_numbers = #tpu.dot_dimension_numbers<[1], [0], [0], [1], [0, 0, 1, 1], [], []>} : vector<16x32xbf16>, vector<32x128xbf16>, vector<16x128xf32> -> vector<16x128xf32>
    %82 = arith.addf %75, %81 : vector<16x128xf32>
    %83 = vector.extract_strided_slice %62 {offsets = [32, 0], sizes = [16, 16], strides = [1, 1]} : vector<64x16xbf16> to vector<16x16xbf16>
    %84 = vector.extract_strided_slice %37 {offsets = [0, 64], sizes = [16, 32], strides = [1, 1]} : vector<16x128xbf16> to vector<16x32xbf16>
    %cst_34 = arith.constant dense<0.000000e+00> : vector<16x32xf32>
    %85 = tpu.matmul %83, %84, %cst_34 {dimension_numbers = #tpu.dot_dimension_numbers<[1], [0], [0], [1], [0, 0, 1, 1], [], []>} : vector<16x16xbf16>, vector<16x32xbf16>, vector<16x32xf32> -> vector<16x32xf32>
    %86 = arith.truncf %85 : vector<16x32xf32> to vector<16x32xbf16>
    %87 = vector.extract_strided_slice %64 {offsets = [64, 0], sizes = [32, 128], strides = [1, 1]} : vector<128x128xbf16> to vector<32x128xbf16>
    %cst_35 = arith.constant dense<0.000000e+00> : vector<16x128xf32>
    %88 = tpu.matmul %86, %87, %cst_35 {dimension_numbers = #tpu.dot_dimension_numbers<[1], [0], [0], [1], [0, 0, 1, 1], [], []>} : vector<16x32xbf16>, vector<32x128xbf16>, vector<16x128xf32> -> vector<16x128xf32>
    %89 = arith.addf %82, %88 : vector<16x128xf32>
    %90 = vector.extract_strided_slice %62 {offsets = [48, 0], sizes = [16, 16], strides = [1, 1]} : vector<64x16xbf16> to vector<16x16xbf16>
    %91 = vector.extract_strided_slice %37 {offsets = [0, 96], sizes = [16, 32], strides = [1, 1]} : vector<16x128xbf16> to vector<16x32xbf16>
    %cst_36 = arith.constant dense<0.000000e+00> : vector<16x32xf32>
    %92 = tpu.matmul %90, %91, %cst_36 {dimension_numbers = #tpu.dot_dimension_numbers<[1], [0], [0], [1], [0, 0, 1, 1], [], []>} : vector<16x16xbf16>, vector<16x32xbf16>, vector<16x32xf32> -> vector<16x32xf32>
    %93 = arith.truncf %92 : vector<16x32xf32> to vector<16x32xbf16>
    %94 = vector.extract_strided_slice %64 {offsets = [96, 0], sizes = [32, 128], strides = [1, 1]} : vector<128x128xbf16> to vector<32x128xbf16>
    %cst_37 = arith.constant dense<0.000000e+00> : vector<16x128xf32>
    %95 = tpu.matmul %93, %94, %cst_37 {dimension_numbers = #tpu.dot_dimension_numbers<[1], [0], [0], [1], [0, 0, 1, 1], [], []>} : vector<16x32xbf16>, vector<32x128xbf16>, vector<16x128xf32> -> vector<16x128xf32>
    %96 = arith.addf %89, %95 : vector<16x128xf32>
    %c0_38 = arith.constant 0 : index
    %c0_39 = arith.constant 0 : index
    %c0_40 = arith.constant 0 : index
    %97 = vector.load %arg9[%c0_38, %c0_39, %c0_40] : memref<2x1x128xf32, #tpu.memory_space<vmem>>, vector<1x1x128xf32>
    %98 = vector.shape_cast %97 : vector<1x1x128xf32> to vector<1x128xf32>
    %c0_41 = arith.constant 0 : index
    %c0_42 = arith.constant 0 : index
    %c0_43 = arith.constant 0 : index
    %99 = vector.load %arg10[%c0_41, %c0_42, %c0_43] : memref<2x1x128xf32, #tpu.memory_space<vmem>>, vector<1x1x128xf32>
    %100 = vector.shape_cast %99 : vector<1x1x128xf32> to vector<1x128xf32>
    %cst_44 = arith.constant dense<0.000000e+00> : vector<16xf32>
    %101 = vector.multi_reduction <add>, %96, %cst_44 [1] : vector<16x128xf32> to vector<16xf32>
    %102 = vector.shape_cast %101 : vector<16xf32> to vector<16x1xf32>
    %cst_45 = arith.constant 1.280000e+02 : f32
    %103 = vector.broadcast %cst_45 : f32 to vector<16x1xf32>
    %104 = arith.divf %102, %103 : vector<16x1xf32>
    %105 = vector.broadcast %104 : vector<16x1xf32> to vector<16x128xf32>
    %106 = arith.subf %96, %105 : vector<16x128xf32>
    %107 = arith.mulf %106, %106 : vector<16x128xf32>
    %cst_46 = arith.constant dense<0.000000e+00> : vector<16xf32>
    %108 = vector.multi_reduction <add>, %107, %cst_46 [1] : vector<16x128xf32> to vector<16xf32>
    %109 = vector.shape_cast %108 : vector<16xf32> to vector<16x1xf32>
    %cst_47 = arith.constant 1.280000e+02 : f32
    %110 = vector.broadcast %cst_47 : f32 to vector<16x1xf32>
    %111 = arith.divf %109, %110 : vector<16x1xf32>
    %cst_48 = arith.constant 9.99999996E-13 : f32
    %112 = vector.broadcast %cst_48 : f32 to vector<16x1xf32>
    %113 = arith.addf %111, %112 : vector<16x1xf32>
    %114 = math.rsqrt %113 : vector<16x1xf32>
    %115 = vector.broadcast %114 : vector<16x1xf32> to vector<16x128xf32>
    %116 = arith.mulf %106, %115 : vector<16x128xf32>
    %117 = vector.broadcast %98 : vector<1x128xf32> to vector<16x128xf32>
    %118 = arith.mulf %116, %117 : vector<16x128xf32>
    %119 = vector.broadcast %100 : vector<1x128xf32> to vector<16x128xf32>
    %120 = arith.addf %118, %119 : vector<16x128xf32>
    %c0_49 = arith.constant 0 : index
    %c0_50 = arith.constant 0 : index
    %c0_51 = arith.constant 0 : index
    %121 = vector.load %arg11[%c0_49, %c0_50, %c0_51] : memref<2x128x256xbf16, #tpu.memory_space<vmem>>, vector<1x128x256xbf16>
    %122 = vector.shape_cast %121 : vector<1x128x256xbf16> to vector<128x256xbf16>
    %123 = arith.truncf %120 : vector<16x128xf32> to vector<16x128xbf16>
    %cst_52 = arith.constant dense<0.000000e+00> : vector<16x256xf32>
    %124 = tpu.matmul %123, %122, %cst_52 {dimension_numbers = #tpu.dot_dimension_numbers<[1], [0], [0], [1], [0, 0, 1, 1], [], []>} : vector<16x128xbf16>, vector<128x256xbf16>, vector<16x256xf32> -> vector<16x256xf32>
    %c0_53 = arith.constant 0 : index
    %c0_54 = arith.constant 0 : index
    %c0_55 = arith.constant 0 : index
    %125 = vector.load %arg12[%c0_53, %c0_54, %c0_55] : memref<2x1x256xf32, #tpu.memory_space<vmem>>, vector<1x1x256xf32>
    %126 = vector.shape_cast %125 : vector<1x1x256xf32> to vector<1x256xf32>
    %127 = vector.broadcast %126 : vector<1x256xf32> to vector<16x256xf32>
    %128 = arith.addf %124, %127 : vector<16x256xf32>
    %cst_56 = arith.constant 5.000000e-01 : f32
    %129 = vector.broadcast %cst_56 : f32 to vector<16x256xf32>
    %130 = arith.mulf %129, %128 : vector<16x256xf32>
    %cst_57 = arith.constant 0.707106769 : f32
    %131 = vector.broadcast %cst_57 : f32 to vector<16x256xf32>
    %132 = arith.mulf %128, %131 : vector<16x256xf32>
    %133 = math.absf %132 : vector<16x256xf32>
    %cst_58 = arith.constant 0.327591091 : f32
    %134 = vector.broadcast %cst_58 : f32 to vector<16x256xf32>
    %135 = arith.mulf %134, %133 : vector<16x256xf32>
    %cst_59 = arith.constant 1.000000e+00 : f32
    %136 = vector.broadcast %cst_59 : f32 to vector<16x256xf32>
    %137 = arith.addf %136, %135 : vector<16x256xf32>
    %cst_60 = arith.constant 1.000000e+00 : f32
    %138 = vector.broadcast %cst_60 : f32 to vector<16x256xf32>
    %139 = arith.divf %138, %137 : vector<16x256xf32>
    %cst_61 = arith.constant 1.06140542 : f32
    %140 = vector.broadcast %cst_61 : f32 to vector<16x256xf32>
    %141 = arith.mulf %140, %139 : vector<16x256xf32>
    %cst_62 = arith.constant -1.45315206 : f32
    %142 = vector.broadcast %cst_62 : f32 to vector<16x256xf32>
    %143 = arith.addf %141, %142 : vector<16x256xf32>
    %144 = arith.mulf %143, %139 : vector<16x256xf32>
    %cst_63 = arith.constant 1.42141378 : f32
    %145 = vector.broadcast %cst_63 : f32 to vector<16x256xf32>
    %146 = arith.addf %144, %145 : vector<16x256xf32>
    %147 = arith.mulf %146, %139 : vector<16x256xf32>
    %cst_64 = arith.constant -0.284496725 : f32
    %148 = vector.broadcast %cst_64 : f32 to vector<16x256xf32>
    %149 = arith.addf %147, %148 : vector<16x256xf32>
    %150 = arith.mulf %149, %139 : vector<16x256xf32>
    %cst_65 = arith.constant 0.254829586 : f32
    %151 = vector.broadcast %cst_65 : f32 to vector<16x256xf32>
    %152 = arith.addf %150, %151 : vector<16x256xf32>
    %153 = arith.mulf %152, %139 : vector<16x256xf32>
    %cst_66 = arith.constant 0.000000e+00 : f32
    %154 = vector.broadcast %cst_66 : f32 to vector<16x256xf32>
    %155 = arith.subf %154, %133 : vector<16x256xf32>
    %156 = arith.mulf %155, %133 : vector<16x256xf32>
    %157 = math.exp %156 : vector<16x256xf32>
    %158 = arith.mulf %153, %157 : vector<16x256xf32>
    %cst_67 = arith.constant 1.000000e+00 : f32
    %159 = vector.broadcast %cst_67 : f32 to vector<16x256xf32>
    %160 = arith.subf %159, %158 : vector<16x256xf32>
    %cst_68 = arith.constant 0.000000e+00 : f32
    %161 = vector.broadcast %cst_68 : f32 to vector<16x256xf32>
    %162 = arith.cmpf oge, %132, %161 : vector<16x256xf32>
    %cst_69 = arith.constant 0.000000e+00 : f32
    %163 = vector.broadcast %cst_69 : f32 to vector<16x256xf32>
    %164 = arith.subf %163, %160 : vector<16x256xf32>
    %165 = arith.select %162, %160, %164 : vector<16x256xi1>, vector<16x256xf32>
    %cst_70 = arith.constant 1.000000e+00 : f32
    %166 = vector.broadcast %cst_70 : f32 to vector<16x256xf32>
    %167 = arith.addf %166, %165 : vector<16x256xf32>
    %168 = arith.mulf %130, %167 : vector<16x256xf32>
    %c0_71 = arith.constant 0 : index
    %c0_72 = arith.constant 0 : index
    %c0_73 = arith.constant 0 : index
    %169 = vector.load %arg13[%c0_71, %c0_72, %c0_73] : memref<2x256x128xbf16, #tpu.memory_space<vmem>>, vector<1x256x128xbf16>
    %170 = vector.shape_cast %169 : vector<1x256x128xbf16> to vector<256x128xbf16>
    %171 = arith.truncf %168 : vector<16x256xf32> to vector<16x256xbf16>
    %cst_74 = arith.constant dense<0.000000e+00> : vector<16x128xf32>
    %172 = tpu.matmul %171, %170, %cst_74 {dimension_numbers = #tpu.dot_dimension_numbers<[1], [0], [0], [1], [0, 0, 1, 1], [], []>} : vector<16x256xbf16>, vector<256x128xbf16>, vector<16x128xf32> -> vector<16x128xf32>
    %c0_75 = arith.constant 0 : index
    %c0_76 = arith.constant 0 : index
    %c0_77 = arith.constant 0 : index
    %173 = vector.load %arg14[%c0_75, %c0_76, %c0_77] : memref<2x1x128xf32, #tpu.memory_space<vmem>>, vector<1x1x128xf32>
    %174 = vector.shape_cast %173 : vector<1x1x128xf32> to vector<1x128xf32>
    %175 = vector.broadcast %174 : vector<1x128xf32> to vector<16x128xf32>
    %176 = arith.addf %172, %175 : vector<16x128xf32>
    %177 = arith.addf %176, %120 : vector<16x128xf32>
    %c0_78 = arith.constant 0 : index
    %c0_79 = arith.constant 0 : index
    %c0_80 = arith.constant 0 : index
    %178 = vector.load %arg15[%c0_78, %c0_79, %c0_80] : memref<2x1x128xf32, #tpu.memory_space<vmem>>, vector<1x1x128xf32>
    %179 = vector.shape_cast %178 : vector<1x1x128xf32> to vector<1x128xf32>
    %c0_81 = arith.constant 0 : index
    %c0_82 = arith.constant 0 : index
    %c0_83 = arith.constant 0 : index
    %180 = vector.load %arg16[%c0_81, %c0_82, %c0_83] : memref<2x1x128xf32, #tpu.memory_space<vmem>>, vector<1x1x128xf32>
    %181 = vector.shape_cast %180 : vector<1x1x128xf32> to vector<1x128xf32>
    %cst_84 = arith.constant dense<0.000000e+00> : vector<16xf32>
    %182 = vector.multi_reduction <add>, %177, %cst_84 [1] : vector<16x128xf32> to vector<16xf32>
    %183 = vector.shape_cast %182 : vector<16xf32> to vector<16x1xf32>
    %cst_85 = arith.constant 1.280000e+02 : f32
    %184 = vector.broadcast %cst_85 : f32 to vector<16x1xf32>
    %185 = arith.divf %183, %184 : vector<16x1xf32>
    %186 = vector.broadcast %185 : vector<16x1xf32> to vector<16x128xf32>
    %187 = arith.subf %177, %186 : vector<16x128xf32>
    %188 = arith.mulf %187, %187 : vector<16x128xf32>
    %cst_86 = arith.constant dense<0.000000e+00> : vector<16xf32>
    %189 = vector.multi_reduction <add>, %188, %cst_86 [1] : vector<16x128xf32> to vector<16xf32>
    %190 = vector.shape_cast %189 : vector<16xf32> to vector<16x1xf32>
    %cst_87 = arith.constant 1.280000e+02 : f32
    %191 = vector.broadcast %cst_87 : f32 to vector<16x1xf32>
    %192 = arith.divf %190, %191 : vector<16x1xf32>
    %cst_88 = arith.constant 9.99999996E-13 : f32
    %193 = vector.broadcast %cst_88 : f32 to vector<16x1xf32>
    %194 = arith.addf %192, %193 : vector<16x1xf32>
    %195 = math.rsqrt %194 : vector<16x1xf32>
    %196 = vector.broadcast %195 : vector<16x1xf32> to vector<16x128xf32>
    %197 = arith.mulf %187, %196 : vector<16x128xf32>
    %198 = vector.broadcast %179 : vector<1x128xf32> to vector<16x128xf32>
    %199 = arith.mulf %197, %198 : vector<16x128xf32>
    %200 = vector.broadcast %181 : vector<1x128xf32> to vector<16x128xf32>
    %201 = arith.addf %199, %200 : vector<16x128xf32>
    %c1 = arith.constant 1 : index
    %c0_89 = arith.constant 0 : index
    %c0_90 = arith.constant 0 : index
    %202 = vector.load %arg5[%c1, %c0_89, %c0_90] : memref<2x128x384xbf16, #tpu.memory_space<vmem>>, vector<1x128x384xbf16>
    %203 = vector.shape_cast %202 : vector<1x128x384xbf16> to vector<128x384xbf16>
    %204 = arith.truncf %201 : vector<16x128xf32> to vector<16x128xbf16>
    %cst_91 = arith.constant dense<0.000000e+00> : vector<16x384xf32>
    %205 = tpu.matmul %204, %203, %cst_91 {dimension_numbers = #tpu.dot_dimension_numbers<[1], [0], [0], [1], [0, 0, 1, 1], [], []>} : vector<16x128xbf16>, vector<128x384xbf16>, vector<16x384xf32> -> vector<16x384xf32>
    %c1_92 = arith.constant 1 : index
    %c0_93 = arith.constant 0 : index
    %c0_94 = arith.constant 0 : index
    %206 = vector.load %arg6[%c1_92, %c0_93, %c0_94] : memref<2x1x384xf32, #tpu.memory_space<vmem>>, vector<1x1x384xf32>
    %207 = vector.shape_cast %206 : vector<1x1x384xf32> to vector<1x384xf32>
    %208 = vector.broadcast %207 : vector<1x384xf32> to vector<16x384xf32>
    %209 = arith.addf %205, %208 : vector<16x384xf32>
    %210 = vector.extract_strided_slice %209 {offsets = [0, 0], sizes = [16, 128], strides = [1, 1]} : vector<16x384xf32> to vector<16x128xf32>
    %211 = arith.truncf %210 : vector<16x128xf32> to vector<16x128xbf16>
    %212 = vector.extract_strided_slice %209 {offsets = [0, 128], sizes = [16, 128], strides = [1, 1]} : vector<16x384xf32> to vector<16x128xf32>
    %213 = arith.truncf %212 : vector<16x128xf32> to vector<16x128xbf16>
    %214 = vector.extract_strided_slice %209 {offsets = [0, 256], sizes = [16, 128], strides = [1, 1]} : vector<16x384xf32> to vector<16x128xf32>
    %215 = arith.truncf %214 : vector<16x128xf32> to vector<16x128xbf16>
    %216 = vector.extract_strided_slice %211 {offsets = [0, 0], sizes = [16, 32], strides = [1, 1]} : vector<16x128xbf16> to vector<16x32xbf16>
    %217 = vector.extract_strided_slice %213 {offsets = [0, 0], sizes = [16, 32], strides = [1, 1]} : vector<16x128xbf16> to vector<16x32xbf16>
    %cst_95 = arith.constant dense<0.000000e+00> : vector<16x16xf32>
    %218 = tpu.matmul %216, %217, %cst_95 {dimension_numbers = #tpu.dot_dimension_numbers<[1], [1], [0], [0], [0, 0, 1, 0], [], []>} : vector<16x32xbf16>, vector<16x32xbf16>, vector<16x16xf32> -> vector<16x16xf32>
    %219 = vector.extract_strided_slice %211 {offsets = [0, 32], sizes = [16, 32], strides = [1, 1]} : vector<16x128xbf16> to vector<16x32xbf16>
    %220 = vector.extract_strided_slice %213 {offsets = [0, 32], sizes = [16, 32], strides = [1, 1]} : vector<16x128xbf16> to vector<16x32xbf16>
    %cst_96 = arith.constant dense<0.000000e+00> : vector<16x16xf32>
    %221 = tpu.matmul %219, %220, %cst_96 {dimension_numbers = #tpu.dot_dimension_numbers<[1], [1], [0], [0], [0, 0, 1, 0], [], []>} : vector<16x32xbf16>, vector<16x32xbf16>, vector<16x16xf32> -> vector<16x16xf32>
    %222 = vector.extract_strided_slice %211 {offsets = [0, 64], sizes = [16, 32], strides = [1, 1]} : vector<16x128xbf16> to vector<16x32xbf16>
    %223 = vector.extract_strided_slice %213 {offsets = [0, 64], sizes = [16, 32], strides = [1, 1]} : vector<16x128xbf16> to vector<16x32xbf16>
    %cst_97 = arith.constant dense<0.000000e+00> : vector<16x16xf32>
    %224 = tpu.matmul %222, %223, %cst_97 {dimension_numbers = #tpu.dot_dimension_numbers<[1], [1], [0], [0], [0, 0, 1, 0], [], []>} : vector<16x32xbf16>, vector<16x32xbf16>, vector<16x16xf32> -> vector<16x16xf32>
    %225 = vector.extract_strided_slice %211 {offsets = [0, 96], sizes = [16, 32], strides = [1, 1]} : vector<16x128xbf16> to vector<16x32xbf16>
    %226 = vector.extract_strided_slice %213 {offsets = [0, 96], sizes = [16, 32], strides = [1, 1]} : vector<16x128xbf16> to vector<16x32xbf16>
    %cst_98 = arith.constant dense<0.000000e+00> : vector<16x16xf32>
    %227 = tpu.matmul %225, %226, %cst_98 {dimension_numbers = #tpu.dot_dimension_numbers<[1], [1], [0], [0], [0, 0, 1, 0], [], []>} : vector<16x32xbf16>, vector<16x32xbf16>, vector<16x16xf32> -> vector<16x16xf32>
    %228 = tpu.concatenate %218, %221, %224, %227 in 0 : vector<16x16xf32>, vector<16x16xf32>, vector<16x16xf32>, vector<16x16xf32> -> vector<64x16xf32>
    %229 = arith.addf %228, %23 : vector<64x16xf32>
    %cst_99 = arith.constant dense<0xFF800000> : vector<64xf32>
    %230 = vector.multi_reduction <maximumf>, %229, %cst_99 [1] : vector<64x16xf32> to vector<64xf32>
    %231 = vector.shape_cast %230 : vector<64xf32> to vector<64x1xf32>
    %232 = vector.broadcast %231 : vector<64x1xf32> to vector<64x16xf32>
    %233 = arith.subf %229, %232 : vector<64x16xf32>
    %234 = math.exp %233 : vector<64x16xf32>
    %cst_100 = arith.constant dense<0.000000e+00> : vector<64xf32>
    %235 = vector.multi_reduction <add>, %234, %cst_100 [1] : vector<64x16xf32> to vector<64xf32>
    %236 = vector.shape_cast %235 : vector<64xf32> to vector<64x1xf32>
    %237 = tpu.reciprocal %236 {approx = true} : vector<64x1xf32> -> vector<64x1xf32>
    %238 = vector.broadcast %237 : vector<64x1xf32> to vector<64x16xf32>
    %239 = arith.mulf %234, %238 : vector<64x16xf32>
    %240 = arith.truncf %239 : vector<64x16xf32> to vector<64x16xbf16>
    %c1_101 = arith.constant 1 : index
    %c0_102 = arith.constant 0 : index
    %c0_103 = arith.constant 0 : index
    %241 = vector.load %arg7[%c1_101, %c0_102, %c0_103] : memref<2x128x128xbf16, #tpu.memory_space<vmem>>, vector<1x128x128xbf16>
    %242 = vector.shape_cast %241 : vector<1x128x128xbf16> to vector<128x128xbf16>
    %c1_104 = arith.constant 1 : index
    %c0_105 = arith.constant 0 : index
    %c0_106 = arith.constant 0 : index
    %243 = vector.load %arg8[%c1_104, %c0_105, %c0_106] : memref<2x1x128xf32, #tpu.memory_space<vmem>>, vector<1x1x128xf32>
    %244 = vector.shape_cast %243 : vector<1x1x128xf32> to vector<1x128xf32>
    %245 = vector.broadcast %244 : vector<1x128xf32> to vector<16x128xf32>
    %246 = arith.addf %201, %245 : vector<16x128xf32>
    %247 = vector.extract_strided_slice %240 {offsets = [0, 0], sizes = [16, 16], strides = [1, 1]} : vector<64x16xbf16> to vector<16x16xbf16>
    %248 = vector.extract_strided_slice %215 {offsets = [0, 0], sizes = [16, 32], strides = [1, 1]} : vector<16x128xbf16> to vector<16x32xbf16>
    %cst_107 = arith.constant dense<0.000000e+00> : vector<16x32xf32>
    %249 = tpu.matmul %247, %248, %cst_107 {dimension_numbers = #tpu.dot_dimension_numbers<[1], [0], [0], [1], [0, 0, 1, 1], [], []>} : vector<16x16xbf16>, vector<16x32xbf16>, vector<16x32xf32> -> vector<16x32xf32>
    %250 = arith.truncf %249 : vector<16x32xf32> to vector<16x32xbf16>
    %251 = vector.extract_strided_slice %242 {offsets = [0, 0], sizes = [32, 128], strides = [1, 1]} : vector<128x128xbf16> to vector<32x128xbf16>
    %cst_108 = arith.constant dense<0.000000e+00> : vector<16x128xf32>
    %252 = tpu.matmul %250, %251, %cst_108 {dimension_numbers = #tpu.dot_dimension_numbers<[1], [0], [0], [1], [0, 0, 1, 1], [], []>} : vector<16x32xbf16>, vector<32x128xbf16>, vector<16x128xf32> -> vector<16x128xf32>
    %253 = arith.addf %246, %252 : vector<16x128xf32>
    %254 = vector.extract_strided_slice %240 {offsets = [16, 0], sizes = [16, 16], strides = [1, 1]} : vector<64x16xbf16> to vector<16x16xbf16>
    %255 = vector.extract_strided_slice %215 {offsets = [0, 32], sizes = [16, 32], strides = [1, 1]} : vector<16x128xbf16> to vector<16x32xbf16>
    %cst_109 = arith.constant dense<0.000000e+00> : vector<16x32xf32>
    %256 = tpu.matmul %254, %255, %cst_109 {dimension_numbers = #tpu.dot_dimension_numbers<[1], [0], [0], [1], [0, 0, 1, 1], [], []>} : vector<16x16xbf16>, vector<16x32xbf16>, vector<16x32xf32> -> vector<16x32xf32>
    %257 = arith.truncf %256 : vector<16x32xf32> to vector<16x32xbf16>
    %258 = vector.extract_strided_slice %242 {offsets = [32, 0], sizes = [32, 128], strides = [1, 1]} : vector<128x128xbf16> to vector<32x128xbf16>
    %cst_110 = arith.constant dense<0.000000e+00> : vector<16x128xf32>
    %259 = tpu.matmul %257, %258, %cst_110 {dimension_numbers = #tpu.dot_dimension_numbers<[1], [0], [0], [1], [0, 0, 1, 1], [], []>} : vector<16x32xbf16>, vector<32x128xbf16>, vector<16x128xf32> -> vector<16x128xf32>
    %260 = arith.addf %253, %259 : vector<16x128xf32>
    %261 = vector.extract_strided_slice %240 {offsets = [32, 0], sizes = [16, 16], strides = [1, 1]} : vector<64x16xbf16> to vector<16x16xbf16>
    %262 = vector.extract_strided_slice %215 {offsets = [0, 64], sizes = [16, 32], strides = [1, 1]} : vector<16x128xbf16> to vector<16x32xbf16>
    %cst_111 = arith.constant dense<0.000000e+00> : vector<16x32xf32>
    %263 = tpu.matmul %261, %262, %cst_111 {dimension_numbers = #tpu.dot_dimension_numbers<[1], [0], [0], [1], [0, 0, 1, 1], [], []>} : vector<16x16xbf16>, vector<16x32xbf16>, vector<16x32xf32> -> vector<16x32xf32>
    %264 = arith.truncf %263 : vector<16x32xf32> to vector<16x32xbf16>
    %265 = vector.extract_strided_slice %242 {offsets = [64, 0], sizes = [32, 128], strides = [1, 1]} : vector<128x128xbf16> to vector<32x128xbf16>
    %cst_112 = arith.constant dense<0.000000e+00> : vector<16x128xf32>
    %266 = tpu.matmul %264, %265, %cst_112 {dimension_numbers = #tpu.dot_dimension_numbers<[1], [0], [0], [1], [0, 0, 1, 1], [], []>} : vector<16x32xbf16>, vector<32x128xbf16>, vector<16x128xf32> -> vector<16x128xf32>
    %267 = arith.addf %260, %266 : vector<16x128xf32>
    %268 = vector.extract_strided_slice %240 {offsets = [48, 0], sizes = [16, 16], strides = [1, 1]} : vector<64x16xbf16> to vector<16x16xbf16>
    %269 = vector.extract_strided_slice %215 {offsets = [0, 96], sizes = [16, 32], strides = [1, 1]} : vector<16x128xbf16> to vector<16x32xbf16>
    %cst_113 = arith.constant dense<0.000000e+00> : vector<16x32xf32>
    %270 = tpu.matmul %268, %269, %cst_113 {dimension_numbers = #tpu.dot_dimension_numbers<[1], [0], [0], [1], [0, 0, 1, 1], [], []>} : vector<16x16xbf16>, vector<16x32xbf16>, vector<16x32xf32> -> vector<16x32xf32>
    %271 = arith.truncf %270 : vector<16x32xf32> to vector<16x32xbf16>
    %272 = vector.extract_strided_slice %242 {offsets = [96, 0], sizes = [32, 128], strides = [1, 1]} : vector<128x128xbf16> to vector<32x128xbf16>
    %cst_114 = arith.constant dense<0.000000e+00> : vector<16x128xf32>
    %273 = tpu.matmul %271, %272, %cst_114 {dimension_numbers = #tpu.dot_dimension_numbers<[1], [0], [0], [1], [0, 0, 1, 1], [], []>} : vector<16x32xbf16>, vector<32x128xbf16>, vector<16x128xf32> -> vector<16x128xf32>
    %274 = arith.addf %267, %273 : vector<16x128xf32>
    %c1_115 = arith.constant 1 : index
    %c0_116 = arith.constant 0 : index
    %c0_117 = arith.constant 0 : index
    %275 = vector.load %arg9[%c1_115, %c0_116, %c0_117] : memref<2x1x128xf32, #tpu.memory_space<vmem>>, vector<1x1x128xf32>
    %276 = vector.shape_cast %275 : vector<1x1x128xf32> to vector<1x128xf32>
    %c1_118 = arith.constant 1 : index
    %c0_119 = arith.constant 0 : index
    %c0_120 = arith.constant 0 : index
    %277 = vector.load %arg10[%c1_118, %c0_119, %c0_120] : memref<2x1x128xf32, #tpu.memory_space<vmem>>, vector<1x1x128xf32>
    %278 = vector.shape_cast %277 : vector<1x1x128xf32> to vector<1x128xf32>
    %cst_121 = arith.constant dense<0.000000e+00> : vector<16xf32>
    %279 = vector.multi_reduction <add>, %274, %cst_121 [1] : vector<16x128xf32> to vector<16xf32>
    %280 = vector.shape_cast %279 : vector<16xf32> to vector<16x1xf32>
    %cst_122 = arith.constant 1.280000e+02 : f32
    %281 = vector.broadcast %cst_122 : f32 to vector<16x1xf32>
    %282 = arith.divf %280, %281 : vector<16x1xf32>
    %283 = vector.broadcast %282 : vector<16x1xf32> to vector<16x128xf32>
    %284 = arith.subf %274, %283 : vector<16x128xf32>
    %285 = arith.mulf %284, %284 : vector<16x128xf32>
    %cst_123 = arith.constant dense<0.000000e+00> : vector<16xf32>
    %286 = vector.multi_reduction <add>, %285, %cst_123 [1] : vector<16x128xf32> to vector<16xf32>
    %287 = vector.shape_cast %286 : vector<16xf32> to vector<16x1xf32>
    %cst_124 = arith.constant 1.280000e+02 : f32
    %288 = vector.broadcast %cst_124 : f32 to vector<16x1xf32>
    %289 = arith.divf %287, %288 : vector<16x1xf32>
    %cst_125 = arith.constant 9.99999996E-13 : f32
    %290 = vector.broadcast %cst_125 : f32 to vector<16x1xf32>
    %291 = arith.addf %289, %290 : vector<16x1xf32>
    %292 = math.rsqrt %291 : vector<16x1xf32>
    %293 = vector.broadcast %292 : vector<16x1xf32> to vector<16x128xf32>
    %294 = arith.mulf %284, %293 : vector<16x128xf32>
    %295 = vector.broadcast %276 : vector<1x128xf32> to vector<16x128xf32>
    %296 = arith.mulf %294, %295 : vector<16x128xf32>
    %297 = vector.broadcast %278 : vector<1x128xf32> to vector<16x128xf32>
    %298 = arith.addf %296, %297 : vector<16x128xf32>
    %c1_126 = arith.constant 1 : index
    %c0_127 = arith.constant 0 : index
    %c0_128 = arith.constant 0 : index
    %299 = vector.load %arg11[%c1_126, %c0_127, %c0_128] : memref<2x128x256xbf16, #tpu.memory_space<vmem>>, vector<1x128x256xbf16>
    %300 = vector.shape_cast %299 : vector<1x128x256xbf16> to vector<128x256xbf16>
    %301 = arith.truncf %298 : vector<16x128xf32> to vector<16x128xbf16>
    %cst_129 = arith.constant dense<0.000000e+00> : vector<16x256xf32>
    %302 = tpu.matmul %301, %300, %cst_129 {dimension_numbers = #tpu.dot_dimension_numbers<[1], [0], [0], [1], [0, 0, 1, 1], [], []>} : vector<16x128xbf16>, vector<128x256xbf16>, vector<16x256xf32> -> vector<16x256xf32>
    %c1_130 = arith.constant 1 : index
    %c0_131 = arith.constant 0 : index
    %c0_132 = arith.constant 0 : index
    %303 = vector.load %arg12[%c1_130, %c0_131, %c0_132] : memref<2x1x256xf32, #tpu.memory_space<vmem>>, vector<1x1x256xf32>
    %304 = vector.shape_cast %303 : vector<1x1x256xf32> to vector<1x256xf32>
    %305 = vector.broadcast %304 : vector<1x256xf32> to vector<16x256xf32>
    %306 = arith.addf %302, %305 : vector<16x256xf32>
    %cst_133 = arith.constant 5.000000e-01 : f32
    %307 = vector.broadcast %cst_133 : f32 to vector<16x256xf32>
    %308 = arith.mulf %307, %306 : vector<16x256xf32>
    %cst_134 = arith.constant 0.707106769 : f32
    %309 = vector.broadcast %cst_134 : f32 to vector<16x256xf32>
    %310 = arith.mulf %306, %309 : vector<16x256xf32>
    %311 = math.absf %310 : vector<16x256xf32>
    %cst_135 = arith.constant 0.327591091 : f32
    %312 = vector.broadcast %cst_135 : f32 to vector<16x256xf32>
    %313 = arith.mulf %312, %311 : vector<16x256xf32>
    %cst_136 = arith.constant 1.000000e+00 : f32
    %314 = vector.broadcast %cst_136 : f32 to vector<16x256xf32>
    %315 = arith.addf %314, %313 : vector<16x256xf32>
    %cst_137 = arith.constant 1.000000e+00 : f32
    %316 = vector.broadcast %cst_137 : f32 to vector<16x256xf32>
    %317 = arith.divf %316, %315 : vector<16x256xf32>
    %cst_138 = arith.constant 1.06140542 : f32
    %318 = vector.broadcast %cst_138 : f32 to vector<16x256xf32>
    %319 = arith.mulf %318, %317 : vector<16x256xf32>
    %cst_139 = arith.constant -1.45315206 : f32
    %320 = vector.broadcast %cst_139 : f32 to vector<16x256xf32>
    %321 = arith.addf %319, %320 : vector<16x256xf32>
    %322 = arith.mulf %321, %317 : vector<16x256xf32>
    %cst_140 = arith.constant 1.42141378 : f32
    %323 = vector.broadcast %cst_140 : f32 to vector<16x256xf32>
    %324 = arith.addf %322, %323 : vector<16x256xf32>
    %325 = arith.mulf %324, %317 : vector<16x256xf32>
    %cst_141 = arith.constant -0.284496725 : f32
    %326 = vector.broadcast %cst_141 : f32 to vector<16x256xf32>
    %327 = arith.addf %325, %326 : vector<16x256xf32>
    %328 = arith.mulf %327, %317 : vector<16x256xf32>
    %cst_142 = arith.constant 0.254829586 : f32
    %329 = vector.broadcast %cst_142 : f32 to vector<16x256xf32>
    %330 = arith.addf %328, %329 : vector<16x256xf32>
    %331 = arith.mulf %330, %317 : vector<16x256xf32>
    %cst_143 = arith.constant 0.000000e+00 : f32
    %332 = vector.broadcast %cst_143 : f32 to vector<16x256xf32>
    %333 = arith.subf %332, %311 : vector<16x256xf32>
    %334 = arith.mulf %333, %311 : vector<16x256xf32>
    %335 = math.exp %334 : vector<16x256xf32>
    %336 = arith.mulf %331, %335 : vector<16x256xf32>
    %cst_144 = arith.constant 1.000000e+00 : f32
    %337 = vector.broadcast %cst_144 : f32 to vector<16x256xf32>
    %338 = arith.subf %337, %336 : vector<16x256xf32>
    %cst_145 = arith.constant 0.000000e+00 : f32
    %339 = vector.broadcast %cst_145 : f32 to vector<16x256xf32>
    %340 = arith.cmpf oge, %310, %339 : vector<16x256xf32>
    %cst_146 = arith.constant 0.000000e+00 : f32
    %341 = vector.broadcast %cst_146 : f32 to vector<16x256xf32>
    %342 = arith.subf %341, %338 : vector<16x256xf32>
    %343 = arith.select %340, %338, %342 : vector<16x256xi1>, vector<16x256xf32>
    %cst_147 = arith.constant 1.000000e+00 : f32
    %344 = vector.broadcast %cst_147 : f32 to vector<16x256xf32>
    %345 = arith.addf %344, %343 : vector<16x256xf32>
    %346 = arith.mulf %308, %345 : vector<16x256xf32>
    %c1_148 = arith.constant 1 : index
    %c0_149 = arith.constant 0 : index
    %c0_150 = arith.constant 0 : index
    %347 = vector.load %arg13[%c1_148, %c0_149, %c0_150] : memref<2x256x128xbf16, #tpu.memory_space<vmem>>, vector<1x256x128xbf16>
    %348 = vector.shape_cast %347 : vector<1x256x128xbf16> to vector<256x128xbf16>
    %349 = arith.truncf %346 : vector<16x256xf32> to vector<16x256xbf16>
    %cst_151 = arith.constant dense<0.000000e+00> : vector<16x128xf32>
    %350 = tpu.matmul %349, %348, %cst_151 {dimension_numbers = #tpu.dot_dimension_numbers<[1], [0], [0], [1], [0, 0, 1, 1], [], []>} : vector<16x256xbf16>, vector<256x128xbf16>, vector<16x128xf32> -> vector<16x128xf32>
    %c1_152 = arith.constant 1 : index
    %c0_153 = arith.constant 0 : index
    %c0_154 = arith.constant 0 : index
    %351 = vector.load %arg14[%c1_152, %c0_153, %c0_154] : memref<2x1x128xf32, #tpu.memory_space<vmem>>, vector<1x1x128xf32>
    %352 = vector.shape_cast %351 : vector<1x1x128xf32> to vector<1x128xf32>
    %353 = vector.broadcast %352 : vector<1x128xf32> to vector<16x128xf32>
    %354 = arith.addf %350, %353 : vector<16x128xf32>
    %355 = arith.addf %354, %298 : vector<16x128xf32>
    %c1_155 = arith.constant 1 : index
    %c0_156 = arith.constant 0 : index
    %c0_157 = arith.constant 0 : index
    %356 = vector.load %arg15[%c1_155, %c0_156, %c0_157] : memref<2x1x128xf32, #tpu.memory_space<vmem>>, vector<1x1x128xf32>
    %357 = vector.shape_cast %356 : vector<1x1x128xf32> to vector<1x128xf32>
    %c1_158 = arith.constant 1 : index
    %c0_159 = arith.constant 0 : index
    %c0_160 = arith.constant 0 : index
    %358 = vector.load %arg16[%c1_158, %c0_159, %c0_160] : memref<2x1x128xf32, #tpu.memory_space<vmem>>, vector<1x1x128xf32>
    %359 = vector.shape_cast %358 : vector<1x1x128xf32> to vector<1x128xf32>
    %cst_161 = arith.constant dense<0.000000e+00> : vector<16xf32>
    %360 = vector.multi_reduction <add>, %355, %cst_161 [1] : vector<16x128xf32> to vector<16xf32>
    %361 = vector.shape_cast %360 : vector<16xf32> to vector<16x1xf32>
    %cst_162 = arith.constant 1.280000e+02 : f32
    %362 = vector.broadcast %cst_162 : f32 to vector<16x1xf32>
    %363 = arith.divf %361, %362 : vector<16x1xf32>
    %364 = vector.broadcast %363 : vector<16x1xf32> to vector<16x128xf32>
    %365 = arith.subf %355, %364 : vector<16x128xf32>
    %366 = arith.mulf %365, %365 : vector<16x128xf32>
    %cst_163 = arith.constant dense<0.000000e+00> : vector<16xf32>
    %367 = vector.multi_reduction <add>, %366, %cst_163 [1] : vector<16x128xf32> to vector<16xf32>
    %368 = vector.shape_cast %367 : vector<16xf32> to vector<16x1xf32>
    %cst_164 = arith.constant 1.280000e+02 : f32
    %369 = vector.broadcast %cst_164 : f32 to vector<16x1xf32>
    %370 = arith.divf %368, %369 : vector<16x1xf32>
    %cst_165 = arith.constant 9.99999996E-13 : f32
    %371 = vector.broadcast %cst_165 : f32 to vector<16x1xf32>
    %372 = arith.addf %370, %371 : vector<16x1xf32>
    %373 = math.rsqrt %372 : vector<16x1xf32>
    %374 = vector.broadcast %373 : vector<16x1xf32> to vector<16x128xf32>
    %375 = arith.mulf %365, %374 : vector<16x128xf32>
    %376 = vector.broadcast %357 : vector<1x128xf32> to vector<16x128xf32>
    %377 = arith.mulf %375, %376 : vector<16x128xf32>
    %378 = vector.broadcast %359 : vector<1x128xf32> to vector<16x128xf32>
    %379 = arith.addf %377, %378 : vector<16x128xf32>
    %380 = vector.extract_strided_slice %379 {offsets = [0, 0], sizes = [1, 128], strides = [1, 1]} : vector<16x128xf32> to vector<1x128xf32>
    %381 = vector.extract_strided_slice %379 {offsets = [8, 0], sizes = [1, 128], strides = [1, 1]} : vector<16x128xf32> to vector<1x128xf32>
    %382 = tpu.concatenate %380, %381 in 0 : vector<1x128xf32>, vector<1x128xf32> -> vector<2x128xf32>
    %c0_166 = arith.constant 0 : index
    %c0_167 = arith.constant 0 : index
    %383 = vector.load %arg17[%c0_166, %c0_167] : memref<128x128xbf16, #tpu.memory_space<vmem>>, vector<128x128xbf16>
    %384 = arith.truncf %382 : vector<2x128xf32> to vector<2x128xbf16>
    %cst_168 = arith.constant dense<0.000000e+00> : vector<2x128xf32>
    %385 = tpu.matmul %384, %383, %cst_168 {dimension_numbers = #tpu.dot_dimension_numbers<[1], [0], [0], [1], [0, 0, 1, 1], [], []>} : vector<2x128xbf16>, vector<128x128xbf16>, vector<2x128xf32> -> vector<2x128xf32>
    %c0_169 = arith.constant 0 : index
    %c0_170 = arith.constant 0 : index
    %386 = vector.load %arg18[%c0_169, %c0_170] : memref<1x128xf32, #tpu.memory_space<vmem>>, vector<1x128xf32>
    %387 = vector.broadcast %386 : vector<1x128xf32> to vector<2x128xf32>
    %388 = arith.addf %385, %387 : vector<2x128xf32>
    %389 = math.tanh %388 : vector<2x128xf32>
    %c0_171 = arith.constant 0 : index
    %c0_172 = arith.constant 0 : index
    %390 = vector.load %arg19[%c0_171, %c0_172] : memref<128x128xbf16, #tpu.memory_space<vmem>>, vector<128x128xbf16>
    %391 = arith.truncf %389 : vector<2x128xf32> to vector<2x128xbf16>
    %cst_173 = arith.constant dense<0.000000e+00> : vector<2x128xf32>
    %392 = tpu.matmul %391, %390, %cst_173 {dimension_numbers = #tpu.dot_dimension_numbers<[1], [0], [0], [1], [0, 0, 1, 1], [], []>} : vector<2x128xbf16>, vector<128x128xbf16>, vector<2x128xf32> -> vector<2x128xf32>
    %c0_174 = arith.constant 0 : index
    %c0_175 = arith.constant 0 : index
    %393 = vector.load %arg20[%c0_174, %c0_175] : memref<1x128xf32, #tpu.memory_space<vmem>>, vector<1x128xf32>
    %394 = vector.broadcast %393 : vector<1x128xf32> to vector<2x128xf32>
    %395 = arith.addf %392, %394 : vector<2x128xf32>
    %c0_176 = arith.constant 0 : index
    %c0_177 = arith.constant 0 : index
    %396 = vector.load %arg21[%c0_176, %c0_177] : memref<2x128xf32, #tpu.memory_space<vmem>>, vector<2x128xf32>
    tpu.vector_store %arg21[%c0_176, %c0_177], %395 {strides = array<i32>} : memref<2x128xf32, #tpu.memory_space<vmem>>, vector<2x128xf32>,
    return
  }
  func.func @transform_0(%arg0: i32) -> (i32, i32) {
    %c0_i32 = arith.constant 0 : i32
    %c0_i32_0 = arith.constant 0 : i32
    %c0_i32_1 = arith.constant 0 : i32
    return %c0_i32, %c0_i32_0 : i32, i32
  }
  func.func @transform_1(%arg0: i32) -> (i32, i32) {
    %c0_i32 = arith.constant 0 : i32
    %c0_i32_0 = arith.constant 0 : i32
    %c0_i32_1 = arith.constant 0 : i32
    return %c0_i32, %c0_i32_0 : i32, i32
  }
  func.func @transform_2(%arg0: i32) -> (i32, i32) {
    %c0_i32 = arith.constant 0 : i32
    %c0_i32_0 = arith.constant 0 : i32
    %c0_i32_1 = arith.constant 0 : i32
    return %c0_i32, %c0_i32_0 : i32, i32
  }
  func.func @transform_3(%arg0: i32) -> (i32, i32) {
    %c0_i32 = arith.constant 0 : i32
    %c0_i32_0 = arith.constant 0 : i32
    %c0_i32_1 = arith.constant 0 : i32
    return %c0_i32, %c0_i32_0 : i32, i32
  }
  func.func @transform_4(%arg0: i32) -> (i32, i32, i32) {
    %c0_i32 = arith.constant 0 : i32
    %c0_i32_0 = arith.constant 0 : i32
    %c0_i32_1 = arith.constant 0 : i32
    %c0_i32_2 = arith.constant 0 : i32
    return %c0_i32, %c0_i32_0, %c0_i32_1 : i32, i32, i32
  }
  func.func @transform_5(%arg0: i32) -> (i32, i32, i32) {
    %c0_i32 = arith.constant 0 : i32
    %c0_i32_0 = arith.constant 0 : i32
    %c0_i32_1 = arith.constant 0 : i32
    %c0_i32_2 = arith.constant 0 : i32
    return %c0_i32, %c0_i32_0, %c0_i32_1 : i32, i32, i32
  }
  func.func @transform_6(%arg0: i32) -> (i32, i32, i32) {
    %c0_i32 = arith.constant 0 : i32
    %c0_i32_0 = arith.constant 0 : i32
    %c0_i32_1 = arith.constant 0 : i32
    %c0_i32_2 = arith.constant 0 : i32
    return %c0_i32, %c0_i32_0, %c0_i32_1 : i32, i32, i32
  }
  func.func @transform_7(%arg0: i32) -> (i32, i32, i32) {
    %c0_i32 = arith.constant 0 : i32
    %c0_i32_0 = arith.constant 0 : i32
    %c0_i32_1 = arith.constant 0 : i32
    %c0_i32_2 = arith.constant 0 : i32
    return %c0_i32, %c0_i32_0, %c0_i32_1 : i32, i32, i32
  }
  func.func @transform_8(%arg0: i32) -> (i32, i32, i32) {
    %c0_i32 = arith.constant 0 : i32
    %c0_i32_0 = arith.constant 0 : i32
    %c0_i32_1 = arith.constant 0 : i32
    %c0_i32_2 = arith.constant 0 : i32
    return %c0_i32, %c0_i32_0, %c0_i32_1 : i32, i32, i32
  }
  func.func @transform_9(%arg0: i32) -> (i32, i32, i32) {
    %c0_i32 = arith.constant 0 : i32
    %c0_i32_0 = arith.constant 0 : i32
    %c0_i32_1 = arith.constant 0 : i32
    %c0_i32_2 = arith.constant 0 : i32
    return %c0_i32, %c0_i32_0, %c0_i32_1 : i32, i32, i32
  }
  func.func @transform_10(%arg0: i32) -> (i32, i32, i32) {
    %c0_i32 = arith.constant 0 : i32
    %c0_i32_0 = arith.constant 0 : i32
    %c0_i32_1 = arith.constant 0 : i32
    %c0_i32_2 = arith.constant 0 : i32
    return %c0_i32, %c0_i32_0, %c0_i32_1 : i32, i32, i32
  }
  func.func @transform_11(%arg0: i32) -> (i32, i32, i32) {
    %c0_i32 = arith.constant 0 : i32
    %c0_i32_0 = arith.constant 0 : i32
    %c0_i32_1 = arith.constant 0 : i32
    %c0_i32_2 = arith.constant 0 : i32
    return %c0_i32, %c0_i32_0, %c0_i32_1 : i32, i32, i32
  }
  func.func @transform_12(%arg0: i32) -> (i32, i32, i32) {
    %c0_i32 = arith.constant 0 : i32
    %c0_i32_0 = arith.constant 0 : i32
    %c0_i32_1 = arith.constant 0 : i32
    %c0_i32_2 = arith.constant 0 : i32
    return %c0_i32, %c0_i32_0, %c0_i32_1 : i32, i32, i32
  }
  func.func @transform_13(%arg0: i32) -> (i32, i32, i32) {
    %c0_i32 = arith.constant 0 : i32
    %c0_i32_0 = arith.constant 0 : i32
    %c0_i32_1 = arith.constant 0 : i32
    %c0_i32_2 = arith.constant 0 : i32
    return %c0_i32, %c0_i32_0, %c0_i32_1 : i32, i32, i32
  }
  func.func @transform_14(%arg0: i32) -> (i32, i32, i32) {
    %c0_i32 = arith.constant 0 : i32
    %c0_i32_0 = arith.constant 0 : i32
    %c0_i32_1 = arith.constant 0 : i32
    %c0_i32_2 = arith.constant 0 : i32
    return %c0_i32, %c0_i32_0, %c0_i32_1 : i32, i32, i32
  }
  func.func @transform_15(%arg0: i32) -> (i32, i32, i32) {
    %c0_i32 = arith.constant 0 : i32
    %c0_i32_0 = arith.constant 0 : i32
    %c0_i32_1 = arith.constant 0 : i32
    %c0_i32_2 = arith.constant 0 : i32
    return %c0_i32, %c0_i32_0, %c0_i32_1 : i32, i32, i32
  }
  func.func @transform_16(%arg0: i32) -> (i32, i32) {
    %c0_i32 = arith.constant 0 : i32
    %c0_i32_0 = arith.constant 0 : i32
    %c0_i32_1 = arith.constant 0 : i32
    return %c0_i32, %c0_i32_0 : i32, i32
  }
  func.func @transform_17(%arg0: i32) -> (i32, i32) {
    %c0_i32 = arith.constant 0 : i32
    %c0_i32_0 = arith.constant 0 : i32
    %c0_i32_1 = arith.constant 0 : i32
    return %c0_i32, %c0_i32_0 : i32, i32
  }
  func.func @transform_18(%arg0: i32) -> (i32, i32) {
    %c0_i32 = arith.constant 0 : i32
    %c0_i32_0 = arith.constant 0 : i32
    %c0_i32_1 = arith.constant 0 : i32
    return %c0_i32, %c0_i32_0 : i32, i32
  }
  func.func @transform_19(%arg0: i32) -> (i32, i32) {
    %c0_i32 = arith.constant 0 : i32
    %c0_i32_0 = arith.constant 0 : i32
    %c0_i32_1 = arith.constant 0 : i32
    return %c0_i32, %c0_i32_0 : i32, i32
  }
  func.func @transform_20(%arg0: i32) -> (i32, i32) {
    %c0_i32 = arith.constant 0 : i32
    %c0_i32_0 = arith.constant 0 : i32
    %c0_i32_1 = arith.constant 0 : i32
    return %c0_i32, %c0_i32_0 : i32, i32
  }
}

</mosaic_0001>

<bundles_post_ra>
// kernel: bert_forward.1
= control target key start
LH: loop header
LB: loop body
LE: loop exit
PB: predicated region body
PF: predicated region fallthrough
CT: control target
= control target key end

     0   :  { %v4434_v3 = vmov 0.0   ;;  %v4435_v30 = vmov 0   ;;  %vm4436_vm0 = vmmov 0   ;;  %v152_v53 = vlaneseq  ;;  %s4438_s27 = smov 64   ;;  %s4439_s28 = smov 32   ;;  %s5463_s0 = inlined_call_operand.vmem [shape: f32[16,128], index: 0, kind: input, shape index: {}]   ;;  %s5464_s4 = inlined_call_operand.vmem [shape: bf16[2,128,384], index: 4, kind: input, shape index: {}]   ;;  %s5465_s2 = inlined_call_operand.vmem [shape: f32[1,128], index: 2, kind: input, shape index: {}]   ;;  %s5466_s3 = inlined_call_operand.vmem [shape: f32[1,128], index: 3, kind: input, shape index: {}]   ;;  %s5467_s5 = inlined_call_operand.vmem [shape: f32[2,1,384], index: 5, kind: input, shape index: {}]   ;;  %s5468_s1 = inlined_call_operand.vmem [shape: f32[64,16], index: 1, kind: input, shape index: {}]   ;;  %s5469_s6 = inlined_call_operand.vmem [shape: bf16[2,128,128], index: 6, kind: input, shape index: {}]   ;;  %s5470_s7 = inlined_call_operand.vmem [shape: f32[2,1,128], index: 7, kind: input, shape index: {}]   ;;  %s5471_s10 = inlined_call_operand.vmem [shape: bf16[2,128,256], index: 10, kind: input, shape index: {}]   ;;  %s5472_s8 = inlined_call_operand.vmem [shape: f32[2,1,128], index: 8, kind: input, shape index: {}]   ;;  %s5473_s9 = inlined_call_operand.vmem [shape: f32[2,1,128], index: 9, kind: input, shape index: {}]   ;;  %s5474_s12 = inlined_call_operand.vmem [shape: bf16[2,256,128], index: 12, kind: input, shape index: {}]   ;;  %s5475_s11 = inlined_call_operand.vmem [shape: f32[2,1,256], index: 11, kind: input, shape index: {}]   ;;  %s5476_s13 = inlined_call_operand.vmem [shape: f32[2,1,128], index: 13, kind: input, shape index: {}]   ;;  %s5477_s14 = inlined_call_operand.vmem [shape: f32[2,1,128], index: 14, kind: input, shape index: {}]   ;;  %s5478_s15 = inlined_call_operand.vmem [shape: f32[2,1,128], index: 15, kind: input, shape index: {}]   ;;  %s5479_s16 = inlined_call_operand.vmem [shape: bf16[128,128], index: 16, kind: input, shape index: {}]   ;;  %s5480_s18 = inlined_call_operand.vmem [shape: bf16[128,128], index: 18, kind: input, shape index: {}]   ;;  %s5481_s17 = inlined_call_operand.vmem [shape: f32[1,128], index: 17, kind: input, shape index: {}]   ;;  %s5482_s19 = inlined_call_operand.vmem [shape: f32[1,128], index: 19, kind: input, shape index: {}]   ;;  %s5483_s20 = inlined_call_operand.vmem [shape: f32[2,128], index: 20, kind: output, shape index: {}]  }
   0x1   :  { %5487 = sst [smem:[#allocation2_spill]] %s5463_s0  ;;  %3858 = vmatprep.subr.bf16.mxu1 %v4434_v3  ;;  %327 = vmatprep.mubr.bf16.mxu0 %v4435_v30  ;;  %vm382_vm1 = vcmask 261120   ;;  %vm593_vm2 = vcmask 130048   ;;  %vm3202_vm11 = vcmask 1040384  }
   0x2   :  { %5488 = sst [smem:[#allocation3_spill]] %s5464_s4  ;;  %s5492_s23 = sld [smem:[#allocation2_spill]]  ;;  %3874 = vmatprep.mubr.msk.bf16.mxu1 %vm4436_vm0, %v4434_v3  ;;  %v4662_v54 = vshrl.u32 %v152_v53, 7 }
   0x3   :  { %5489 = sst [smem:[#allocation4_spill]] %s5465_s2  ;;  %s5493_s26 = sld [smem:[#allocation3_spill]] }
   0x4   :  { %5490 = sst [smem:[#allocation5_spill]] %s5466_s3  ;;  %s5494_s21 = sld [smem:[#allocation4_spill]]  ;;  %v4665_v55 = vsub.s32 0, %v4662_v54  ;;  %v162_v56 = vsub.s32 2, %v4662_v54  ;;  %v4672_v58 = vsub.s32 1, %v4662_v54 }
   0x5   :  { %5491 = sst [smem:[#allocation6_spill]] %s5467_s5  ;;  %s4437_s3 = smov 96  }
   0x6   :  { %s5496_s25 = sld [smem:[#allocation6_spill]] }
   0x8   :  { %v66_v0 = vld [vmem:[%s5492_s23] sm:$0xff]  ;;  %v67_v1 = vld [vmem:[%s5492_s23 + $0x8] sm:$0xff]  ;;  %s5495_s23 = sld [smem:[#allocation5_spill]] }
   0x9   :  { %70 = vadd.xlane.f32.xlu0 %v66_v0  ;;  %v4132_v2 = vld [vmem:[%s5493_s26 + $0x4] ss:$12 sps:$4 sm:$0xff]   ;;  %v4134_v4 = vld [vmem:[%s5493_s26] ss:$12 sps:$4 sm:$0xff]   ;;  %v4135_v5 = vld [vmem:[%s5493_s26 + $0x8] ss:$12 sps:$4 sm:$0xff]  }
   0xa   :  { %295 = vmatprep.subr.bf16.mxu0 %v4132_v2  ;;  %v4136_v6 = vld [vmem:[%s5493_s26 + $0x1c] ss:$12 sps:$4 sm:$0xff]   ;;  %3859 = vmatpush3.bf16.msra.mxu1 %v4135_v5  ;;  %v4138_v15 = vld [vmem:[%s5493_s26 + $0x18] ss:$12 sps:$4 sm:$0xff]   ;;  %v4139_v16 = vld [vmem:[%s5493_s26 + $0x20] ss:$12 sps:$4 sm:$0xff]  }
   0xb   :  { %296 = vmatpush1.bf16.msra.mxu0 %v4134_v4  ;;  %3860 = vmatprep.subr.bf16.mxu1 %v4434_v3  ;;  %v4140_v17 = vld [vmem:[%s5493_s26 + $0x34] ss:$12 sps:$4 sm:$0xff]   ;;  %v4142_v18 = vld [vmem:[%s5493_s26 + $0x30] ss:$12 sps:$4 sm:$0xff]   ;;  %v4143_v19 = vld [vmem:[%s5493_s26 + $0x38] ss:$12 sps:$4 sm:$0xff]  }
   0xc   :  { %297 = vmatprep.subr.bf16.mxu0 %v4136_v6  ;;  %v4144_v20 = vld [vmem:[%s5493_s26 + $0x4c] ss:$12 sps:$4 sm:$0xff]   ;;  %v4146_v21 = vld [vmem:[%s5493_s26 + $0x48] ss:$12 sps:$4 sm:$0xff]   ;;  %v4147_v22 = vld [vmem:[%s5493_s26 + $0x50] ss:$12 sps:$4 sm:$0xff]  }
   0xd   :  { %72 = vadd.xlane.f32.xlu0 %v67_v1  ;;  %v4148_v23 = vld [vmem:[%s5493_s26 + $0x64] ss:$12 sps:$4 sm:$0xff]   ;;  %v4150_v24 = vld [vmem:[%s5493_s26 + $0x60] ss:$12 sps:$4 sm:$0xff]   ;;  %v4151_v25 = vld [vmem:[%s5493_s26 + $0x68] ss:$12 sps:$4 sm:$0xff]  }
   0xe   :  { %3861 = vmatpush3.bf16.msra.mxu1 %v4139_v16  ;;  %v4152_v26 = vld [vmem:[%s5493_s26 + $0x7c] ss:$12 sps:$4 sm:$0xff]   ;;  %v4154_v27 = vld [vmem:[%s5493_s26 + $0x78] ss:$12 sps:$4 sm:$0xff]   ;;  %v4155_v28 = vld [vmem:[%s5493_s26 + $0x80] ss:$12 sps:$4 sm:$0xff]  }
   0xf   :  { %298 = vmatpush1.bf16.msra.mxu0 %v4138_v15  ;;  %3862 = vmatprep.subr.bf16.mxu1 %v4434_v3  ;;  %v4156_v29 = vld [vmem:[%s5493_s26 + $0x94] ss:$12 sps:$4 sm:$0xff]   ;;  %v4158_v31 = vld [vmem:[%s5493_s26 + $0x90] ss:$12 sps:$4 sm:$0xff]   ;;  %v4159_v32 = vld [vmem:[%s5493_s26 + $0x98] ss:$12 sps:$4 sm:$0xff]  }
  0x10   :  { %299 = vmatprep.subr.bf16.mxu0 %v4140_v17  ;;  %v4160_v33 = vld [vmem:[%s5493_s26 + $0xac] ss:$12 sps:$4 sm:$0xff]   ;;  %v4162_v34 = vld [vmem:[%s5493_s26 + $0xa8] ss:$12 sps:$4 sm:$0xff]   ;;  %v4163_v35 = vld [vmem:[%s5493_s26 + $0xb0] ss:$12 sps:$4 sm:$0xff]  }
  0x11   :  { %v3434_v44 = vld [vmem:[%s5494_s21] ss:$0 sm:$0xff] }
  0x12   :  { %3863 = vmatpush3.bf16.msra.mxu1 %v4143_v19  ;;  %v3435_v48 = vld [vmem:[%s5495_s23] ss:$0 sm:$0xff] }
  0x13   :  { %300 = vmatpush1.bf16.msra.mxu0 %v4142_v18  ;;  %3864 = vmatprep.subr.bf16.mxu1 %v4434_v3  ;;  %v150_v57 = vld [vmem:[%s5496_s25] sm:$0x7] }
  0x14   :  { %301 = vmatprep.subr.bf16.mxu0 %v4144_v20  ;;  %v155_v59 = vrot.slane %v150_v57, %v4665_v55  ;;  %v163_v60 = vrot.slane %v150_v57, %v162_v56  ;;  %v159_v63 = vrot.slane %v150_v57, %v4672_v58 }
  0x16   :  { %3865 = vmatpush3.bf16.msra.mxu1 %v4147_v22 }
  0x17   :  { %302 = vmatpush1.bf16.msra.mxu0 %v4146_v21  ;;  %3866 = vmatprep.subr.bf16.mxu1 %v4434_v3 }
  0x18   :  { %303 = vmatprep.subr.bf16.mxu0 %v4148_v23 }
  0x1a   :  { %3867 = vmatpush3.bf16.msra.mxu1 %v4151_v25 }
  0x1b   :  { %304 = vmatpush1.bf16.msra.mxu0 %v4150_v24  ;;  %3868 = vmatprep.subr.bf16.mxu1 %v4434_v3 }
  0x1c   :  { %305 = vmatprep.subr.bf16.mxu0 %v4152_v26  ;;  %v109_v26 = vld [vmem:[%s5468_s1] sm:$0xff] }
  0x1e   :  { %3869 = vmatpush3.bf16.msra.mxu1 %v4155_v28  ;;  %v110_v28 = vld [vmem:[%s5468_s1 + $0x8] sm:$0xff] }
  0x1f   :  { %306 = vmatpush1.bf16.msra.mxu0 %v4154_v27  ;;  %3870 = vmatprep.subr.bf16.mxu1 %v4434_v3 }
  0x20   :  { %307 = vmatprep.subr.bf16.mxu0 %v4156_v29 }
  0x22   :  { %3871 = vmatpush3.bf16.msra.mxu1 %v4159_v32 }
  0x23   :  { %308 = vmatpush1.bf16.msra.mxu0 %v4158_v31  ;;  %3872 = vmatprep.subr.bf16.mxu1 %v4434_v3 }
  0x24   :  { %309 = vmatprep.subr.bf16.mxu0 %v4160_v33 }
  0x26   :  { %3873 = vmatpush3.bf16.msra.mxu1 %v4163_v35 }
  0x27   :  { %310 = vmatpush1.bf16.msra.mxu0 %v4162_v34  ;;  %3884 = vmatprep.subr.bf16.mxu1 %v4434_v3 }
  0x28   :  { %3878 = vmatprep.subr.bf16.mxu0 %v4434_v3 }
  0x96   :  { %v71_v7 = vpop.xlane.xlu0 %70 }
  0x97   :  { %v75_v8 = vmul.f32 0.0078125, %v71_v7 }
  0x99   :  { %v4565_v9 = vsub.f32 %v66_v0, %v75_v8 }
  0x9a   :  { %v73_v10 = vpop.xlane.xlu0 %72 }
  0x9b   :  { %v76_v11 = vmul.f32 0.0078125, %v73_v10  ;;  %v79_v12 = vmul.f32 %v4565_v9, %v4565_v9 }
  0x9d   :  { %v4569_v13 = vsub.f32 %v67_v1, %v76_v11  ;;  %81 = vadd.xlane.f32.xlu1 %v79_v12 }
  0x9f   :  { %v80_v14 = vmul.f32 %v4569_v13, %v4569_v13 }
  0xa1   :  { %83 = vadd.xlane.f32.xlu1 %v80_v14 }
 0x12a   :  { %v82_v36 = vpop.xlane.xlu1 %81 }
 0x12b   :  { %v85_v37 = vmul.f32 0.0078125, %v82_v36 }
 0x12d   :  { %v87_v38 = vadd.f32 1e-12, %v85_v37  ;;  %v111_v37 = vld [vmem:[%s5468_s1 + $0x10] sm:$0xff] }
 0x12e   :  { %v84_v39 = vpop.xlane.xlu1 %83 }
 0x12f   :  { %4308 = vrsqrt.f32 %v87_v38  ;;  %v86_v40 = vmul.f32 0.0078125, %v84_v39  ;;  %v112_v39 = vld [vmem:[%s5468_s1 + $0x18] sm:$0xff] }
 0x131   :  { %v88_v41 = vadd.f32 1e-12, %v86_v40 }
 0x133   :  { %4310 = vrsqrt.f32 %v88_v41 }
 0x139   :  { %v4309_v42 = vpop.eup %4308 }
 0x13a   :  { %v91_v43 = vmul.f32 %v4309_v42, %v4565_v9 }
 0x13c   :  { %v99_v47 = vmul.f32 %v3434_v44, %v91_v43 }
 0x13d   :  { %v4311_v45 = vpop.eup %4310 }
 0x13e   :  { %v92_v46 = vmul.f32 %v4311_v45, %v4569_v13  ;;  %v4652_v50 = vadd.f32 %v3435_v48, %v99_v47  ;;  %v114_v47 = vld [vmem:[%s5468_s1 + $0x28] sm:$0xff] }
 0x140   :  { %v100_v49 = vmul.f32 %v3434_v44, %v92_v46 }
 0x142   :  { %v4654_v51 = vadd.f32 %v3435_v48, %v100_v49  ;;  %v113_v48 = vld [vmem:[%s5468_s1 + $0x20] sm:$0xff] }
 0x144   :  { %v149_v52 = vpack.c.bf16 %v4654_v51, %v4652_v50 }
 0x146   :  { %328 = vmatmul.mubr.bf16.vlgmr.msra.gmra.mrb[0].mxu0 %v149_v52  ;;  %3875 = vmatmul.mubr.bf16.vlgmr.msra.gmra.mrb[0].mxu1 %v149_v52 }
 0x147   :  { %3880 = vmatprep.mubr.msk.bf16.mxu0 %vm4436_vm0, %v4434_v3  ;;  %3886 = vmatprep.mubr.msk.bf16.mxu1 %vm4436_vm0, %v4434_v3 }
 0x219   :  { %v329_v61 = vpop.f32.mrb[0].mxu0  ;;  %v372_v62 = vpop.f32.mrb[0].mxu1 }
 0x21a   :  { %v331_v0 = vpop.f32.mrb[1].mxu0  ;;  %v3876_v1 = vpop.f32.mrb[1].mxu1  ;;  %v330_v5 = vadd.f32 %v329_v61, %v155_v59  ;;  %v373_v6 = vadd.f32 %v372_v62, %v163_v60  ;;  %v115_v61 = vld [vmem:[%s5468_s1 + $0x30] sm:$0xff] }
 0x21b   :  { %v333_v2 = vpop.f32.mrb[2].mxu0  ;;  %v375_v4 = vpop.f32.mrb[2].mxu1  ;;  %v332_v11 = vadd.f32 %v331_v0, %v159_v63  ;;  %v116_v0 = vld [vmem:[%s5468_s1 + $0x38] sm:$0xff] }
 0x21c   :  { %v334_v7 = vadd.f32 %v333_v2, %v155_v59  ;;  %v376_v8 = vadd.f32 %v375_v4, %v163_v60  ;;  %v335_v9 = vpop.f32.mrb[3].mxu0  ;;  %v3877_v10 = vpop.f32.mrb[3].mxu1 }
 0x21d   :  { %v336_v12 = vadd.f32 %v335_v9, %v159_v63 }
 0x21e   :  { %v379_v13 = vpack.c.bf16 %v334_v7, %v330_v5  ;;  %v4678_v14 = vpack.c.bf16 %v376_v8, %v373_v6 }
 0x21f   :  { %v380_v15 = vpack.c.bf16 %v336_v12, %v332_v11 }
 0x220   :  { %431 = vrot.lane.b32.xlu1 %v379_v13, %s4437_s3 }
 0x221   :  { %434 = vrot.lane.b32.xlu0 %v380_v15, %s4437_s3  ;;  %v387_v16 = vsel %vm382_vm1, %v380_v15, 0 }
 0x222   :  { %3879 = vmatpush3.bf16.xpose.msra.mxu0 %v387_v16 }
 0x223   :  { %3890 = vmatprep.subr.bf16.mxu0 %v4434_v3 }
 0x224   :  { %485 = vrot.lane.b32.xlu1 %v380_v15, %s4438_s27 }
 0x225   :  { %536 = vrot.lane.b32.xlu0 %v380_v15, %s4439_s28 }
 0x228   :  { %483 = vrot.lane.b32.xlu1 %v379_v13, %s4438_s27 }
 0x229   :  { %3881 = vmatmul.mubr.msk.bf16.vlgmr.msra.gmra.mrb[4].mxu0 %vm382_vm1, %v379_v13 }
 0x22a   :  { %3892 = vmatprep.mubr.msk.bf16.mxu0 %vm4436_vm0, %v4434_v3 }
 0x22c   :  { %534 = vrot.lane.b32.xlu1 %v379_v13, %s4439_s28 }
 0x292   :  { %v432_v17 = vpop.permute.xlu1 %431 }
 0x293   :  { %v435_v18 = vpop.permute.xlu0 %434 }
 0x294   :  { %v440_v19 = vsel %vm382_vm1, %v435_v18, 0 }
 0x295   :  { %3885 = vmatpush3.bf16.xpose.msra.mxu1 %v440_v19 }
 0x296   :  { %v486_v20 = vpop.permute.xlu1 %485  ;;  %3896 = vmatprep.subr.bf16.mxu1 %v4434_v3 }
 0x297   :  { %v491_v21 = vsel %vm382_vm1, %v486_v20, 0  ;;  %v537_v22 = vpop.permute.xlu0 %536 }
 0x298   :  { %3891 = vmatpush3.bf16.xpose.msra.mxu0 %v491_v21  ;;  %v542_v23 = vsel %vm382_vm1, %v537_v22, 0 }
 0x299   :  { %3902 = vmatprep.subr.bf16.mxu0 %v4434_v3 }
 0x29a   :  { %v484_v24 = vpop.permute.xlu1 %483 }
 0x29c   :  { %3887 = vmatmul.mubr.msk.bf16.vlgmr.msra.gmra.mrb[4].mxu1 %vm382_vm1, %v432_v17 }
 0x29d   :  { %3897 = vmatpush3.bf16.xpose.msra.mxu1 %v542_v23  ;;  %3898 = vmatprep.mubr.msk.bf16.mxu1 %vm4436_vm0, %v4434_v3 }
 0x29e   :  { %3908 = vmatprep.subr.bf16.mxu1 %v4434_v3  ;;  %v535_v25 = vpop.permute.xlu1 %534 }
 0x29f   :  { %3893 = vmatmul.mubr.msk.bf16.vlgmr.msra.gmra.mrb[8].mxu0 %vm382_vm1, %v484_v24 }
 0x2a0   :  { %3903 = vmatpush3.bf16.msra.mxu0 %v4678_v14  ;;  %3904 = vmatprep.mubr.msk.bf16.mxu0 %vm4436_vm0, %v4434_v3 }
 0x2a1   :  { %3916 = vmatprep.subr.bf16.mxu0 %v4434_v3 }
 0x2a4   :  { %3899 = vmatmul.mubr.msk.bf16.vlgmr.msra.gmra.mrb[8].mxu1 %vm382_vm1, %v535_v25 }
 0x2a5   :  { %3912 = vmatprep.mubr.msk.bf16.mxu1 %vm4436_vm0, %v4434_v3 }
 0x2fc   :  { %v423_v27 = vpop.f32.mrb[4].mxu0 }
 0x2fd   :  { %v585_v29 = vadd.f32 %v423_v27, %v109_v26  ;;  %v3882_v31 = vpop.f32.mrb[5].mxu0 }
 0x2fe   :  { %v426_v32 = vpop.f32.mrb[6].mxu0 }
 0x2ff   :  { %v586_v33 = vadd.f32 %v426_v32, %v110_v28  ;;  %v3883_v34 = vpop.f32.mrb[7].mxu0  ;;  %v594_v35 = vsel %vm593_vm2, %v585_v29, -inf }
 0x300   :  { %595 = vmax.xlane.f32.xlu0 %v594_v35 }
 0x301   :  { %v597_v36 = vsel %vm593_vm2, %v586_v33, -inf }
 0x302   :  { %598 = vmax.xlane.f32.xlu1 %v597_v36 }
 0x36f   :  { %v476_v38 = vpop.f32.mrb[4].mxu1 }
 0x370   :  { %v587_v40 = vadd.f32 %v476_v38, %v111_v37  ;;  %v3888_v41 = vpop.f32.mrb[5].mxu1 }
 0x371   :  { %v479_v42 = vpop.f32.mrb[6].mxu1 }
 0x372   :  { %v588_v43 = vadd.f32 %v479_v42, %v112_v39  ;;  %v3889_v44 = vpop.f32.mrb[7].mxu1  ;;  %v527_v45 = vpop.f32.mrb[8].mxu0  ;;  %v600_v46 = vsel %vm593_vm2, %v587_v40, -inf }
 0x373   :  { %601 = vmax.xlane.f32.xlu0 %v600_v46  ;;  %v3894_v49 = vpop.f32.mrb[9].mxu0  ;;  %v589_v59 = vadd.f32 %v527_v45, %v113_v48 }
 0x374   :  { %v530_v52 = vpop.f32.mrb[10].mxu0  ;;  %v603_v60 = vsel %vm593_vm2, %v588_v43, -inf }
 0x375   :  { %v590_v53 = vadd.f32 %v530_v52, %v114_v47  ;;  %v3895_v57 = vpop.f32.mrb[11].mxu0  ;;  %v606_v7 = vsel %vm593_vm2, %v589_v59, -inf }
 0x377   :  { %v578_v62 = vpop.f32.mrb[8].mxu1  ;;  %604 = vmax.xlane.f32.xlu0 %v603_v60  ;;  %v609_v63 = vsel %vm593_vm2, %v590_v53, -inf }
 0x378   :  { %v3900_v1 = vpop.f32.mrb[9].mxu1  ;;  %610 = vmax.xlane.f32.xlu1 %v609_v63  ;;  %v591_v4 = vadd.f32 %v578_v62, %v115_v61 }
 0x379   :  { %v581_v2 = vpop.f32.mrb[10].mxu1  ;;  %v4164_v1 = vld [vmem:[%s5469_s6] sm:$0xff]  }
 0x37a   :  { %v4737_v5 = vadd.f32 %v581_v2, %v116_v0  ;;  %v3901_v6 = vpop.f32.mrb[11].mxu1  ;;  %v612_v9 = vsel %vm593_vm2, %v591_v4, -inf  ;;  %3909 = vmatpush3.bf16.msra.mxu1 %v4164_v1  ;;  %v4165_v2 = vld [vmem:[%s5469_s6 + $0x8] sm:$0xff]  }
 0x37b   :  { %607 = vmax.xlane.f32.xlu0 %v606_v7  ;;  %3910 = vmatprep.subr.bf16.mxu1 %v4434_v3 }
 0x37c   :  { %v615_v8 = vsel %vm593_vm2, %v4737_v5, -inf }
 0x37d   :  { %616 = vmax.xlane.f32.xlu1 %v615_v8 }
 0x37e   :  { %3911 = vmatpush3.bf16.msra.mxu1 %v4165_v2 }
 0x37f   :  { %613 = vmax.xlane.f32.xlu0 %v612_v9  ;;  %3922 = vmatprep.subr.bf16.mxu1 %v4434_v3 }
 0x38d   :  { %v596_v10 = vpop.xlane.xlu0 %595 }
 0x38e   :  { %v618_v11 = vsub.f32 %v585_v29, %v596_v10 }
 0x38f   :  { %v599_v12 = vpop.xlane.xlu1 %598 }
 0x390   :  { %v626_v13 = vmul.f32 1.442695, %v618_v11  ;;  %v619_v15 = vsub.f32 %v586_v33, %v599_v12 }
 0x392   :  { %4312 = vpow2.f32 %v626_v13  ;;  %v628_v16 = vmul.f32 1.442695, %v619_v15 }
 0x394   :  { %4314 = vpow2.f32 %v628_v16 }
 0x39c   :  { %v4313_v17 = vpop.eup %4312 }
 0x39d   :  { %v642_v18 = vsel %vm593_vm2, %v4313_v17, 0.0 }
 0x39e   :  { %v4315_v19 = vpop.eup %4314  ;;  %643 = vadd.xlane.f32.xlu0 %v642_v18 }
 0x39f   :  { %v645_v20 = vsel %vm593_vm2, %v4315_v19, 0.0 }
 0x3a0   :  { %646 = vadd.xlane.f32.xlu1 %v645_v20 }
 0x400   :  { %v602_v21 = vpop.xlane.xlu0 %601 }
 0x401   :  { %v620_v22 = vsub.f32 %v587_v40, %v602_v21 }
 0x403   :  { %v630_v23 = vmul.f32 1.442695, %v620_v22 }
 0x404   :  { %v605_v24 = vpop.xlane.xlu0 %604 }
 0x405   :  { %4316 = vpow2.f32 %v630_v23  ;;  %v621_v25 = vsub.f32 %v588_v43, %v605_v24  ;;  %v611_v26 = vpop.xlane.xlu1 %610 }
 0x406   :  { %v623_v27 = vsub.f32 %v590_v53, %v611_v26 }
 0x407   :  { %v632_v28 = vmul.f32 1.442695, %v621_v25 }
 0x408   :  { %v636_v29 = vmul.f32 1.442695, %v623_v27  ;;  %v608_v31 = vpop.xlane.xlu0 %607 }
 0x409   :  { %4318 = vpow2.f32 %v632_v28  ;;  %v622_v32 = vsub.f32 %v589_v59, %v608_v31 }
 0x40a   :  { %4320 = vpow2.f32 %v636_v29  ;;  %v617_v47 = vpop.xlane.xlu1 %616 }
 0x40b   :  { %v634_v33 = vmul.f32 1.442695, %v622_v32  ;;  %v625_v57 = vsub.f32 %v4737_v5, %v617_v47  ;;  %v4166_v32 = vld [vmem:[%s5469_s6 + $0x10] sm:$0xff]  }
 0x40c   :  { %v614_v34 = vpop.xlane.xlu0 %613 }
 0x40d   :  { %4322 = vpow2.f32 %v634_v33  ;;  %v624_v35 = vsub.f32 %v591_v4, %v614_v34  ;;  %v640_v62 = vmul.f32 1.442695, %v625_v57 }
 0x40f   :  { %v4317_v36 = vpop.eup %4316  ;;  %v638_v37 = vmul.f32 1.442695, %v624_v35  ;;  %v4167_v35 = vld [vmem:[%s5469_s6 + $0x18] sm:$0xff]  }
 0x410   :  { %v648_v38 = vsel %vm593_vm2, %v4317_v36, 0.0 }
 0x411   :  { %4324 = vpow2.f32 %v638_v37  ;;  %649 = vadd.xlane.f32.xlu0 %v648_v38 }
 0x413   :  { %v4319_v39 = vpop.eup %4318 }
 0x414   :  { %v651_v40 = vsel %vm593_vm2, %v4319_v39, 0.0  ;;  %v4321_v41 = vpop.eup %4320 }
 0x415   :  { %652 = vadd.xlane.f32.xlu1 %v651_v40  ;;  %v657_v44 = vsel %vm593_vm2, %v4321_v41, 0.0 }
 0x417   :  { %v4323_v42 = vpop.eup %4322 }
 0x418   :  { %v654_v43 = vsel %vm593_vm2, %v4323_v42, 0.0 }
 0x419   :  { %655 = vadd.xlane.f32.xlu0 %v654_v43  ;;  %658 = vadd.xlane.f32.xlu1 %v657_v44 }
 0x41b   :  { %v4749_v45 = vpop.eup %4324 }
 0x41c   :  { %v660_v46 = vsel %vm593_vm2, %v4749_v45, 0.0 }
 0x41d   :  { %661 = vadd.xlane.f32.xlu0 %v660_v46 }
 0x42a   :  { %921 = vrot.lane.b32.xlu1 %v4678_v14, %s4438_s27 }
 0x42b   :  { %v644_v48 = vpop.xlane.xlu0 %643 }
 0x42c   :  { %4326 = vrcp.f32 %v644_v48  ;;  %v4170_v48 = vld [vmem:[%s5469_s6 + $0x30] sm:$0xff]  }
 0x42d   :  { %v647_v49 = vpop.xlane.xlu1 %646 }
 0x42e   :  { %4328 = vrcp.f32 %v647_v49  ;;  %v4171_v49 = vld [vmem:[%s5469_s6 + $0x38] sm:$0xff]  }
 0x42f   :  { %4330 = vpow2.f32 %v640_v62 }
 0x433   :  { %815 = vrot.lane.b32.xlu0 %v4678_v14, %s4437_s3 }
 0x436   :  { %v4327_v52 = vpop.eup %4326 }
 0x437   :  { %v674_v59 = vmul.f32 %v4327_v52, %v4313_v17 }
 0x438   :  { %v4329_v53 = vpop.eup %4328 }
 0x439   :  { %v675_v60 = vmul.f32 %v4329_v53, %v4315_v19  ;;  %v4331_v63 = vpop.eup %4330 }
 0x43a   :  { %v663_v0 = vsel %vm593_vm2, %v4331_v63, 0.0 }
 0x43b   :  { %v682_v61 = vpack.c.bf16 %v675_v60, %v674_v59 }
 0x43d   :  { %3905 = vmatmul.mubr.msk.bf16.vlgmr.msra.gmra.mrb[12].mxu0 %vm593_vm2, %v682_v61  ;;  %v3464_v61 = vld [vmem:[%s5470_s7] ss:$0 sm:$0xff] }
 0x43e   :  { %3918 = vmatprep.mubr.msk.bf16.mxu0 %vm4436_vm0, %v4434_v3  ;;  %v709_v62 = vadd.f32 %v3464_v61, %v4652_v50  ;;  %v710_v2 = vadd.f32 %v3464_v61, %v4654_v51  ;;  %v4175_v50 = vld [vmem:[%s5471_s10 + $0x10] ss:$8 sps:$4 sm:$0xff]   ;;  %v4177_v51 = vld [vmem:[%s5471_s10 + $0x14] ss:$8 sps:$4 sm:$0xff]   ;;  %v4204_v61 = vld [vmem:[%s5474_s12 + $0x60] sm:$0xff]  }
 0x44e   :  { %664 = vadd.xlane.f32.xlu1 %v663_v0 }
 0x45f   :  { %1027 = vrot.lane.b32.xlu1 %v4678_v14, %s4439_s28 }
 0x49e   :  { %v650_v4 = vpop.xlane.xlu0 %649 }
 0x49f   :  { %4332 = vrcp.f32 %v650_v4 }
 0x4a2   :  { %v653_v5 = vpop.xlane.xlu1 %652 }
 0x4a3   :  { %4334 = vrcp.f32 %v653_v5 }
 0x4a6   :  { %v656_v6 = vpop.xlane.xlu0 %655  ;;  %v659_v14 = vpop.xlane.xlu1 %658 }
 0x4a7   :  { %4336 = vrcp.f32 %v656_v6 }
 0x4a8   :  { %4338 = vrcp.f32 %v659_v14  ;;  %v4172_v14 = vld [vmem:[%s5471_s10] ss:$8 sps:$4 sm:$0xff]  }
 0x4a9   :  { %v4333_v8 = vpop.eup %4332 }
 0x4aa   :  { %v662_v7 = vpop.xlane.xlu0 %661  ;;  %v676_v10 = vmul.f32 %v4333_v8, %v4317_v36  ;;  %v922_v17 = vpop.permute.xlu1 %921 }
 0x4ab   :  { %4340 = vrcp.f32 %v662_v7  ;;  %v4174_v7 = vld [vmem:[%s5471_s10 + $0x4] ss:$8 sps:$4 sm:$0xff]  }
 0x4ad   :  { %v4335_v9 = vpop.eup %4334 }
 0x4ae   :  { %v677_v11 = vmul.f32 %v4335_v9, %v4319_v39  ;;  %v816_v12 = vpop.permute.xlu0 %815  ;;  %v4168_v39 = vld [vmem:[%s5469_s6 + $0x20] sm:$0xff]  }
 0x4af   :  { %3917 = vmatpush3.bf16.msra.mxu0 %v816_v12 }
 0x4b0   :  { %v683_v13 = vpack.c.bf16 %v677_v11, %v676_v10  ;;  %3930 = vmatprep.subr.bf16.mxu0 %v4434_v3 }
 0x4b1   :  { %v4337_v15 = vpop.eup %4336 }
 0x4b2   :  { %v4339_v16 = vpop.eup %4338  ;;  %3919 = vmatmul.mubr.msk.bf16.vlgmr.msra.gmra.mrb[16].mxu0 %vm593_vm2, %v683_v13  ;;  %v678_v18 = vmul.f32 %v4337_v15, %v4323_v42  ;;  %v4169_v42 = vld [vmem:[%s5469_s6 + $0x28] sm:$0xff]  }
 0x4b3   :  { %3931 = vmatpush3.bf16.msra.mxu0 %v922_v17  ;;  %3932 = vmatprep.mubr.msk.bf16.mxu0 %vm4436_vm0, %v4434_v3  ;;  %v679_v19 = vmul.f32 %v4339_v16, %v4321_v41  ;;  %v4180_v17 = vld [vmem:[%s5471_s10 + $0x24] ss:$8 sps:$4 sm:$0xff]  }
 0x4b4   :  { %3944 = vmatprep.subr.bf16.mxu0 %v4434_v3 }
 0x4b5   :  { %v684_v20 = vpack.c.bf16 %v679_v19, %v678_v18  ;;  %v4341_v23 = vpop.eup %4340  ;;  %v4178_v18 = vld [vmem:[%s5471_s10 + $0x20] ss:$8 sps:$4 sm:$0xff]   ;;  %v4183_v19 = vld [vmem:[%s5471_s10 + $0x34] ss:$8 sps:$4 sm:$0xff]  }
 0x4b6   :  { %v680_v25 = vmul.f32 %v4341_v23, %v4749_v45  ;;  %v4189_v23 = vld [vmem:[%s5471_s10 + $0x54] ss:$8 sps:$4 sm:$0xff]  }
 0x4ba   :  { %3933 = vmatmul.mubr.msk.bf16.vlgmr.msra.gmra.mrb[20].mxu0 %vm593_vm2, %v684_v20  ;;  %v4181_v20 = vld [vmem:[%s5471_s10 + $0x30] ss:$8 sps:$4 sm:$0xff]  }
 0x4bb   :  { %3946 = vmatprep.mubr.msk.bf16.mxu0 %vm4436_vm0, %v4434_v3 }
 0x4db   :  { %v665_v21 = vpop.xlane.xlu1 %664 }
 0x4dc   :  { %4342 = vrcp.f32 %v665_v21  ;;  %v4186_v21 = vld [vmem:[%s5471_s10 + $0x44] ss:$8 sps:$4 sm:$0xff]  }
 0x4df   :  { %v1028_v22 = vpop.permute.xlu1 %1027 }
 0x4e0   :  { %3945 = vmatpush3.bf16.msra.mxu0 %v1028_v22  ;;  %v4184_v22 = vld [vmem:[%s5471_s10 + $0x40] ss:$8 sps:$4 sm:$0xff]  }
 0x4e1   :  { %1282 = vmatprep.subr.bf16.mxu0 %v4174_v7 }
 0x4e6   :  { %v4343_v24 = vpop.eup %4342 }
 0x4e7   :  { %v681_v26 = vmul.f32 %v4343_v24, %v4331_v63  ;;  %v4187_v24 = vld [vmem:[%s5471_s10 + $0x50] ss:$8 sps:$4 sm:$0xff]  }
 0x4e9   :  { %v685_v27 = vpack.c.bf16 %v681_v26, %v680_v25  ;;  %v4192_v25 = vld [vmem:[%s5471_s10 + $0x64] ss:$8 sps:$4 sm:$0xff]   ;;  %v4190_v26 = vld [vmem:[%s5471_s10 + $0x60] ss:$8 sps:$4 sm:$0xff]  }
 0x4eb   :  { %3947 = vmatmul.mubr.msk.bf16.vlgmr.msra.gmra.mrb[24].mxu0 %vm593_vm2, %v685_v27  ;;  %v4195_v27 = vld [vmem:[%s5471_s10 + $0x74] ss:$8 sps:$4 sm:$0xff]  }
 0x4ec   :  { %1314 = vmatprep.mubr.bf16.mxu0 %v4435_v30  ;;  %1283 = vmatpush1.bf16.msra.mxu0 %v4172_v14 }
 0x4ed   :  { %1284 = vmatprep.subr.bf16.mxu0 %v4177_v51 }
 0x4f0   :  { %1285 = vmatpush1.bf16.msra.mxu0 %v4175_v50 }
 0x4f1   :  { %1286 = vmatprep.subr.bf16.mxu0 %v4180_v17 }
 0x4f4   :  { %1287 = vmatpush1.bf16.msra.mxu0 %v4178_v18 }
 0x4f5   :  { %1288 = vmatprep.subr.bf16.mxu0 %v4183_v19 }
 0x4f8   :  { %1289 = vmatpush1.bf16.msra.mxu0 %v4181_v20 }
 0x4f9   :  { %1290 = vmatprep.subr.bf16.mxu0 %v4186_v21 }
 0x4fc   :  { %1291 = vmatpush1.bf16.msra.mxu0 %v4184_v22 }
 0x4fd   :  { %1292 = vmatprep.subr.bf16.mxu0 %v4189_v23 }
 0x500   :  { %1293 = vmatpush1.bf16.msra.mxu0 %v4187_v24 }
 0x501   :  { %1294 = vmatprep.subr.bf16.mxu0 %v4192_v25 }
 0x504   :  { %1295 = vmatpush1.bf16.msra.mxu0 %v4190_v26 }
 0x505   :  { %1296 = vmatprep.subr.bf16.mxu0 %v4195_v27 }
 0x510   :  { %v748_v28 = vpop.f32.mrb[12].mxu0 }
 0x511   :  { %v3906_v29 = vpop.f32.mrb[13].mxu0 }
 0x512   :  { %v751_v31 = vpop.f32.mrb[14].mxu0 }
 0x513   :  { %v755_v33 = vpack.c.bf16 %v751_v31, %v748_v28  ;;  %v3907_v34 = vpop.f32.mrb[15].mxu0  ;;  %v4193_v28 = vld [vmem:[%s5471_s10 + $0x70] ss:$8 sps:$4 sm:$0xff]  }
 0x514   :  { %1297 = vmatpush1.bf16.msra.mxu0 %v4193_v28 }
 0x515   :  { %3913 = vmatmul.mubr.msk.bf16.vlgmr.msra.gmra.mrb[12].mxu1 %vm382_vm1, %v755_v33 }
 0x516   :  { %3923 = vmatpush3.bf16.msra.mxu1 %v4166_v32  ;;  %3926 = vmatprep.mubr.msk.bf16.mxu1 %vm4436_vm0, %v4434_v3 }
 0x517   :  { %3924 = vmatprep.subr.bf16.mxu1 %v4434_v3 }
 0x51a   :  { %3925 = vmatpush3.bf16.msra.mxu1 %v4167_v35 }
 0x51b   :  { %3936 = vmatprep.subr.bf16.mxu1 %v4434_v3 }
 0x585   :  { %v855_v36 = vpop.f32.mrb[16].mxu0 }
 0x586   :  { %v3920_v37 = vpop.f32.mrb[17].mxu0 }
 0x587   :  { %v858_v38 = vpop.f32.mrb[18].mxu0 }
 0x588   :  { %v862_v40 = vpack.c.bf16 %v858_v38, %v855_v36  ;;  %v3921_v41 = vpop.f32.mrb[19].mxu0  ;;  %v3481_v38 = vld [vmem:[%s5472_s8] ss:$0 sm:$0xff] }
 0x58a   :  { %3927 = vmatmul.mubr.msk.bf16.vlgmr.msra.gmra.mrb[12].mxu1 %vm382_vm1, %v862_v40 }
 0x58b   :  { %3937 = vmatpush3.bf16.msra.mxu1 %v4168_v39  ;;  %3940 = vmatprep.mubr.msk.bf16.mxu1 %vm4436_vm0, %v4434_v3 }
 0x58c   :  { %3938 = vmatprep.subr.bf16.mxu1 %v4434_v3 }
 0x58d   :  { %v961_v43 = vpop.f32.mrb[20].mxu0 }
 0x58e   :  { %v3934_v44 = vpop.f32.mrb[21].mxu0 }
 0x58f   :  { %v964_v45 = vpop.f32.mrb[22].mxu0  ;;  %3939 = vmatpush3.bf16.msra.mxu1 %v4169_v42  ;;  %v3482_v42 = vld [vmem:[%s5473_s9] ss:$0 sm:$0xff] }
 0x590   :  { %v968_v46 = vpack.c.bf16 %v964_v45, %v961_v43  ;;  %v3935_v47 = vpop.f32.mrb[23].mxu0  ;;  %3950 = vmatprep.subr.bf16.mxu1 %v4434_v3 }
 0x591   :  { %v4196_v47 = vld [vmem:[%s5474_s12 + $0x40] sm:$0xff]  }
 0x596   :  { %3941 = vmatmul.mubr.msk.bf16.vlgmr.msra.gmra.mrb[12].mxu1 %vm382_vm1, %v968_v46 }
 0x597   :  { %3951 = vmatpush3.bf16.msra.mxu1 %v4170_v48  ;;  %3954 = vmatprep.mubr.msk.bf16.mxu1 %vm4436_vm0, %v4434_v3  ;;  %v4197_v48 = vld [vmem:[%s5474_s12] sm:$0xff]  }
 0x598   :  { %3952 = vmatprep.subr.bf16.mxu1 %v4434_v3 }
 0x59b   :  { %3953 = vmatpush3.bf16.msra.mxu1 %v4171_v49  ;;  %v4198_v49 = vld [vmem:[%s5474_s12 + $0x48] sm:$0xff]  }
 0x59c   :  { %3759 = vmatprep.subr.bf16.mxu1 %v4196_v47 }
 0x5be   :  { %v1067_v52 = vpop.f32.mrb[24].mxu0 }
 0x5bf   :  { %v3948_v53 = vpop.f32.mrb[25].mxu0 }
 0x5c0   :  { %v1070_v57 = vpop.f32.mrb[26].mxu0  ;;  %v4200_v53 = vld [vmem:[%s5474_s12 + $0x50] sm:$0xff]  }
 0x5c1   :  { %v1074_v59 = vpack.c.bf16 %v1070_v57, %v1067_v52  ;;  %v3949_v60 = vpop.f32.mrb[27].mxu0  ;;  %v4199_v52 = vld [vmem:[%s5474_s12 + $0x8] sm:$0xff]   ;;  %v4201_v57 = vld [vmem:[%s5474_s12 + $0x10] sm:$0xff]  }
 0x5c2   :  { %v4203_v60 = vld [vmem:[%s5474_s12 + $0x18] sm:$0xff]  }
 0x5c3   :  { %3955 = vmatmul.mubr.msk.bf16.vlgmr.msra.gmra.mrb[12].mxu1 %vm382_vm1, %v1074_v59  ;;  %v4202_v59 = vld [vmem:[%s5474_s12 + $0x58] sm:$0xff]  }
 0x5c4   :  { %3760 = vmatpush3.bf16.msra.mxu1 %v4197_v48 }
 0x5c5   :  { %3761 = vmatprep.subr.bf16.mxu1 %v4198_v49 }
 0x5c8   :  { %3762 = vmatpush3.bf16.msra.mxu1 %v4199_v52 }
 0x5c9   :  { %3763 = vmatprep.subr.bf16.mxu1 %v4200_v53 }
 0x5cc   :  { %3764 = vmatpush3.bf16.msra.mxu1 %v4201_v57 }
 0x5cd   :  { %3765 = vmatprep.subr.bf16.mxu1 %v4202_v59 }
 0x5d0   :  { %3766 = vmatpush3.bf16.msra.mxu1 %v4203_v60 }
 0x5d1   :  { %3767 = vmatprep.subr.bf16.mxu1 %v4204_v61 }
 0x696   :  { %v1124_v63 = vpop.f32.mrb[12].mxu1 }
 0x697   :  { %v4098_v0 = vadd.f32 %v1124_v63, %v709_v62  ;;  %v3956_v1 = vpop.f32.mrb[13].mxu1  ;;  %v4205_v62 = vld [vmem:[%s5474_s12 + $0x20] sm:$0xff]   ;;  %v4206_v63 = vld [vmem:[%s5474_s12 + $0x68] sm:$0xff]  }
 0x698   :  { %v1127_v4 = vpop.f32.mrb[14].mxu1  ;;  %3768 = vmatpush3.bf16.msra.mxu1 %v4205_v62  ;;  %v4208_v1 = vld [vmem:[%s5474_s12 + $0x70] sm:$0xff]  }
 0x699   :  { %v4099_v5 = vadd.f32 %v1127_v4, %v710_v2  ;;  %1135 = vadd.xlane.f32.xlu1 %v4098_v0  ;;  %v3957_v6 = vpop.f32.mrb[15].mxu1  ;;  %3769 = vmatprep.subr.bf16.mxu1 %v4206_v63  ;;  %v4209_v2 = vld [vmem:[%s5474_s12 + $0x30] sm:$0xff]   ;;  %v4210_v4 = vld [vmem:[%s5474_s12 + $0x78] sm:$0xff]  }
 0x69a   :  { %v1190_v6 = vld [vmem:[%s5475_s11] sm:$0x3] }
 0x69b   :  { %1137 = vadd.xlane.f32.xlu0 %v4099_v5  ;;  %v1195_v14 = vrot.slane %v1190_v6, %v4665_v55  ;;  %v1199_v7 = vrot.slane %v1190_v6, %v4672_v58 }
 0x726   :  { %v1136_v8 = vpop.xlane.xlu1 %1135 }
 0x727   :  { %v1139_v9 = vmul.f32 0.0078125, %v1136_v8 }
 0x728   :  { %v1138_v10 = vpop.xlane.xlu0 %1137 }
 0x729   :  { %v1141_v11 = vsub.f32 %v4098_v0, %v1139_v9  ;;  %v1140_v12 = vmul.f32 0.0078125, %v1138_v10  ;;  %v4207_v0 = vld [vmem:[%s5474_s12 + $0x28] sm:$0xff]  }
 0x72a   :  { %3770 = vmatpush3.bf16.msra.mxu1 %v4207_v0 }
 0x72b   :  { %v1142_v13 = vsub.f32 %v4099_v5, %v1140_v12  ;;  %v1143_v15 = vmul.f32 %v1141_v11, %v1141_v11  ;;  %3771 = vmatprep.subr.bf16.mxu1 %v4208_v1  ;;  %v4211_v5 = vld [vmem:[%s5474_s12 + $0x38] sm:$0xff]  }
 0x72d   :  { %1145 = vadd.xlane.f32.xlu0 %v1143_v15  ;;  %v1144_v16 = vmul.f32 %v1142_v13, %v1142_v13 }
 0x72e   :  { %3772 = vmatpush3.bf16.msra.mxu1 %v4209_v2 }
 0x72f   :  { %3773 = vmatprep.subr.bf16.mxu1 %v4210_v4 }
 0x731   :  { %1147 = vadd.xlane.f32.xlu0 %v1144_v16 }
 0x732   :  { %3774 = vmatpush3.bf16.msra.mxu1 %v4211_v5 }
 0x733   :  { %3958 = vmatprep.subr.bf16.mxu1 %v4434_v3 }
 0x7ba   :  { %v1146_v29 = vpop.xlane.xlu0 %1145 }
 0x7bb   :  { %v1149_v31 = vmul.f32 0.0078125, %v1146_v29 }
 0x7bd   :  { %v1151_v32 = vadd.f32 1e-12, %v1149_v31 }
 0x7be   :  { %v1148_v33 = vpop.xlane.xlu0 %1147 }
 0x7bf   :  { %4344 = vrsqrt.f32 %v1151_v32  ;;  %v1150_v34 = vmul.f32 0.0078125, %v1148_v33 }
 0x7c1   :  { %v1152_v35 = vadd.f32 1e-12, %v1150_v34 }
 0x7c3   :  { %4346 = vrsqrt.f32 %v1152_v35 }
 0x7c9   :  { %v4345_v36 = vpop.eup %4344 }
 0x7ca   :  { %v1155_v37 = vmul.f32 %v4345_v36, %v1141_v11 }
 0x7cc   :  { %v1163_v41 = vmul.f32 %v3481_v38, %v1155_v37 }
 0x7cd   :  { %v4347_v39 = vpop.eup %4346 }
 0x7ce   :  { %v1156_v40 = vmul.f32 %v4347_v39, %v1142_v13  ;;  %v4875_v44 = vadd.f32 %v3482_v42, %v1163_v41 }
 0x7d0   :  { %v1164_v43 = vmul.f32 %v3481_v38, %v1156_v40 }
 0x7d2   :  { %v4877_v45 = vadd.f32 %v3482_v42, %v1164_v43 }
 0x7d4   :  { %v1189_v46 = vpack.c.bf16 %v4877_v45, %v4875_v44 }
 0x7d6   :  { %1315 = vmatmul.mubr.bf16.vlgmr.msra.gmra.mrb[28].mxu0 %v1189_v46 }
 0x7d7   :  { %1865 = vmatprep.mubr.bf16.mxu0 %v4435_v30 }
 0x8a9   :  { %v1316_v50 = vpop.f32.mrb[28].mxu0 }
 0x8aa   :  { %v4936_v51 = vadd.f32 %v1316_v50, %v1195_v14  ;;  %v1318_v8 = vpop.f32.mrb[29].mxu0 }
 0x8ab   :  { %v4938_v9 = vadd.f32 %v1318_v8, %v1199_v7  ;;  %v1320_v10 = vpop.f32.mrb[30].mxu0 }
 0x8ac   :  { %v4941_v11 = vmul.f32 0.70710677, %v4936_v51  ;;  %v4943_v12 = vadd.f32 %v1320_v10, %v1195_v14  ;;  %v1322_v13 = vpop.f32.mrb[31].mxu0 }
 0x8ad   :  { %v4946_v15 = vmul.f32 0.70710677, %v4938_v9  ;;  %v4948_v16 = vadd.f32 %v1322_v13, %v1199_v7 }
 0x8ae   :  { %v1333_v17 = vand.u32 2147483647, %v4941_v11  ;;  %v4952_v18 = vmul.f32 0.70710677, %v4943_v12  ;;  %vm1413_vm3 = vcmp.ge.f32.partialorder %v4941_v11, 0.0 }
 0x8af   :  { %v1334_v19 = vand.u32 2147483647, %v4946_v15  ;;  %v4956_v20 = vmul.f32 0.70710677, %v4948_v16  ;;  %vm1414_vm4 = vcmp.ge.f32.partialorder %v4946_v15, 0.0 }
 0x8b0   :  { %v1337_v21 = vmul.f32 0.3275911, %v1333_v17  ;;  %v1335_v22 = vand.u32 2147483647, %v4952_v18  ;;  %v1389_v32 = vsub.f32 0.0, %v1333_v17  ;;  %vm1415_vm5 = vcmp.ge.f32.partialorder %v4952_v18, 0.0 }
 0x8b1   :  { %v1338_v23 = vmul.f32 0.3275911, %v1334_v19  ;;  %v1336_v24 = vand.u32 2147483647, %v4956_v20  ;;  %v1390_v33 = vsub.f32 0.0, %v1334_v19  ;;  %vm1416_vm6 = vcmp.ge.f32.partialorder %v4956_v20, 0.0 }
 0x8b2   :  { %v1341_v25 = vadd.f32 1.0, %v1337_v21  ;;  %v1339_v26 = vmul.f32 0.3275911, %v1335_v22  ;;  %v1393_v35 = vmul.f32 %v1389_v32, %v1333_v17  ;;  %v1391_v36 = vsub.f32 0.0, %v1335_v22 }
 0x8b3   :  { %v1342_v27 = vadd.f32 1.0, %v1338_v23  ;;  %v1340_v28 = vmul.f32 0.3275911, %v1336_v24  ;;  %v1394_v39 = vmul.f32 %v1390_v33, %v1334_v19  ;;  %v1392_v41 = vsub.f32 0.0, %v1336_v24 }
 0x8b4   :  { %4348 = vrcp.f32 %v1341_v25  ;;  %v1343_v29 = vadd.f32 1.0, %v1339_v26  ;;  %v1397_v46 = vmul.f32 1.442695, %v1393_v35  ;;  %v1395_v48 = vmul.f32 %v1391_v36, %v1335_v22 }
 0x8b5   :  { %4350 = vrcp.f32 %v1342_v27  ;;  %v1344_v31 = vadd.f32 1.0, %v1340_v28  ;;  %v1399_v52 = vmul.f32 1.442695, %v1394_v39  ;;  %v1396_v60 = vmul.f32 %v1392_v41, %v1336_v24 }
 0x8b6   :  { %4352 = vrcp.f32 %v1343_v29  ;;  %v1401_v1 = vmul.f32 1.442695, %v1395_v48 }
 0x8b7   :  { %4354 = vrcp.f32 %v1344_v31  ;;  %v1403_v14 = vmul.f32 1.442695, %v1396_v60 }
 0x8b8   :  { %4356 = vpow2.f32 %v1397_v46 }
 0x8b9   :  { %4358 = vpow2.f32 %v1399_v52 }
 0x8ba   :  { %4360 = vpow2.f32 %v1401_v1 }
 0x8bb   :  { %4362 = vpow2.f32 %v1403_v14  ;;  %v1328_v14 = vmul.f32 0.5, %v4948_v16 }
 0x8be   :  { %v4349_v34 = vpop.eup %4348 }
 0x8bf   :  { %v4351_v37 = vpop.eup %4350  ;;  %v1353_v38 = vmul.f32 1.0614054, %v4349_v34 }
 0x8c0   :  { %v1354_v40 = vmul.f32 1.0614054, %v4351_v37  ;;  %v4353_v43 = vpop.eup %4352 }
 0x8c1   :  { %v1357_v42 = vadd.f32 -1.4531521, %v1353_v38  ;;  %v1355_v53 = vmul.f32 1.0614054, %v4353_v43  ;;  %v4355_v57 = vpop.eup %4354 }
 0x8c2   :  { %v1358_v47 = vadd.f32 -1.4531521, %v1354_v40  ;;  %v1356_v63 = vmul.f32 1.0614054, %v4355_v57  ;;  %v4357_v29 = vpop.eup %4356 }
 0x8c3   :  { %v1361_v49 = vmul.f32 %v4349_v34, %v1357_v42  ;;  %v1359_v62 = vadd.f32 -1.4531521, %v1355_v53  ;;  %v4359_v32 = vpop.eup %4358 }
 0x8c4   :  { %v1362_v59 = vmul.f32 %v4351_v37, %v1358_v47  ;;  %v1360_v5 = vadd.f32 -1.4531521, %v1356_v63  ;;  %v4361_v42 = vpop.eup %4360 }
 0x8c5   :  { %v1365_v61 = vadd.f32 1.4214138, %v1361_v49  ;;  %v1363_v4 = vmul.f32 %v4353_v43, %v1359_v62  ;;  %v4363_v52 = vpop.eup %4362 }
 0x8c6   :  { %v1366_v0 = vadd.f32 1.4214138, %v1362_v59  ;;  %v1364_v8 = vmul.f32 %v4355_v57, %v1360_v5 }
 0x8c7   :  { %v1369_v2 = vmul.f32 %v4349_v34, %v1365_v61  ;;  %v1367_v50 = vadd.f32 1.4214138, %v1363_v4  ;;  %v1326_v4 = vmul.f32 0.5, %v4938_v9  ;;  %v3499_v9 = vld [vmem:[%s5476_s13] ss:$0 sm:$0xff] }
 0x8c8   :  { %v1370_v6 = vmul.f32 %v4351_v37, %v1366_v0  ;;  %v1368_v19 = vadd.f32 1.4214138, %v1364_v8 }
 0x8c9   :  { %v1373_v7 = vadd.f32 -0.28449672, %v1369_v2  ;;  %v1371_v17 = vmul.f32 %v4353_v43, %v1367_v50  ;;  %v1327_v2 = vmul.f32 0.5, %v4943_v12 }
 0x8ca   :  { %v1374_v10 = vadd.f32 -0.28449672, %v1370_v6  ;;  %v1372_v24 = vmul.f32 %v4355_v57, %v1368_v19 }
 0x8cb   :  { %v1377_v13 = vmul.f32 %v4349_v34, %v1373_v7  ;;  %v1375_v23 = vadd.f32 -0.28449672, %v1371_v17 }
 0x8cc   :  { %v1378_v21 = vmul.f32 %v4351_v37, %v1374_v10  ;;  %v1376_v28 = vadd.f32 -0.28449672, %v1372_v24  ;;  %v4212_v24 = vld [vmem:[%s5493_s26 + $0xc0] ss:$12 sps:$4 sm:$0xff]  }
 0x8cd   :  { %v1381_v22 = vadd.f32 0.2548296, %v1377_v13  ;;  %v1379_v27 = vmul.f32 %v4353_v43, %v1375_v23 }
 0x8ce   :  { %v1382_v25 = vadd.f32 0.2548296, %v1378_v21  ;;  %v1380_v36 = vmul.f32 %v4355_v57, %v1376_v28 }
 0x8cf   :  { %v1385_v26 = vmul.f32 %v4349_v34, %v1381_v22  ;;  %v1383_v35 = vadd.f32 0.2548296, %v1379_v27  ;;  %v4216_v27 = vld [vmem:[%s5493_s26 + $0xd8] ss:$12 sps:$4 sm:$0xff]  }
 0x8d0   :  { %v1386_v31 = vmul.f32 %v4351_v37, %v1382_v25  ;;  %v1384_v41 = vadd.f32 0.2548296, %v1380_v36  ;;  %v4214_v25 = vld [vmem:[%s5493_s26 + $0xc4] ss:$12 sps:$4 sm:$0xff]  }
 0x8d1   :  { %v1405_v33 = vmul.f32 %v4357_v29, %v1385_v26  ;;  %v1387_v40 = vmul.f32 %v4353_v43, %v1383_v35  ;;  %v1325_v43 = vmul.f32 0.5, %v4936_v51  ;;  %v4215_v26 = vld [vmem:[%s5493_s26 + $0xc8] ss:$12 sps:$4 sm:$0xff]   ;;  %1833 = vmatprep.subr.bf16.mxu0 %v4214_v25 }
 0x8d2   :  { %v1406_v38 = vmul.f32 %v4359_v32, %v1386_v31  ;;  %v1388_v49 = vmul.f32 %v4355_v57, %v1384_v41  ;;  %1834 = vmatpush1.bf16.msra.mxu0 %v4212_v24  ;;  %v4223_v41 = vld [vmem:[%s5493_s26 + $0xf8] ss:$12 sps:$4 sm:$0xff]  }
 0x8d3   :  { %v1409_v39 = vsub.f32 1.0, %v1405_v33  ;;  %v1407_v48 = vmul.f32 %v4361_v42, %v1387_v40  ;;  %v4220_v40 = vld [vmem:[%s5493_s26 + $0xf0] ss:$12 sps:$4 sm:$0xff]   ;;  %v4226_v42 = vld [vmem:[%s5493_s26 + $0x10c] ss:$12 sps:$4 sm:$0xff]  }
 0x8d4   :  { %v1410_v46 = vsub.f32 1.0, %v1406_v38  ;;  %v1408_v37 = vmul.f32 %v4363_v52, %v1388_v49  ;;  %v4228_v49 = vld [vmem:[%s5493_s26 + $0x120] ss:$12 sps:$4 sm:$0xff]   ;;  %v4231_v52 = vld [vmem:[%s5493_s26 + $0x128] ss:$12 sps:$4 sm:$0xff]  }
 0x8d5   :  { %v1417_v47 = vsub.f32 0.0, %v1409_v39  ;;  %v1411_v59 = vsub.f32 1.0, %v1407_v48  ;;  %v4230_v48 = vld [vmem:[%s5493_s26 + $0x124] ss:$12 sps:$4 sm:$0xff]  }
 0x8d6   :  { %v1418_v34 = vsub.f32 0.0, %v1410_v46  ;;  %v1412_v62 = vsub.f32 1.0, %v1408_v37  ;;  %v4238_v37 = vld [vmem:[%s5493_s26 + $0x154] ss:$12 sps:$4 sm:$0xff]  }
 0x8d7   :  { %v1421_v53 = vsel %vm1413_vm3, %v1409_v39, %v1417_v47  ;;  %v1419_v61 = vsub.f32 0.0, %v1411_v59  ;;  %v4222_v39 = vld [vmem:[%s5493_s26 + $0xf4] ss:$12 sps:$4 sm:$0xff]   ;;  %v4227_v47 = vld [vmem:[%s5493_s26 + $0x110] ss:$12 sps:$4 sm:$0xff]  }
 0x8d8   :  { %v1422_v60 = vsel %vm1414_vm4, %v1410_v46, %v1418_v34  ;;  %v1425_v63 = vadd.f32 1.0, %v1421_v53  ;;  %v1420_v1 = vsub.f32 0.0, %v1412_v62  ;;  %v4224_v46 = vld [vmem:[%s5493_s26 + $0x108] ss:$12 sps:$4 sm:$0xff]   ;;  %v4232_v53 = vld [vmem:[%s5493_s26 + $0x138] ss:$12 sps:$4 sm:$0xff]  }
 0x8d9   :  { %v1423_v0 = vsel %vm1415_vm5, %v1411_v59, %v1419_v61  ;;  %v1426_v57 = vadd.f32 1.0, %v1422_v60  ;;  %v4234_v34 = vld [vmem:[%s5493_s26 + $0x13c] ss:$12 sps:$4 sm:$0xff]   ;;  %v4235_v59 = vld [vmem:[%s5493_s26 + $0x140] ss:$12 sps:$4 sm:$0xff]  }
 0x8da   :  { %v1427_v11 = vadd.f32 1.0, %v1423_v0  ;;  %v1424_v5 = vsel %vm1416_vm6, %v1412_v62, %v1420_v1  ;;  %v1429_v15 = vmul.f32 %v1425_v63, %v1325_v43  ;;  %v4236_v60 = vld [vmem:[%s5493_s26 + $0x150] ss:$12 sps:$4 sm:$0xff]   ;;  %v4239_v61 = vld [vmem:[%s5493_s26 + $0x158] ss:$12 sps:$4 sm:$0xff]  }
 0x8db   :  { %v1428_v7 = vadd.f32 1.0, %v1424_v5  ;;  %v1430_v50 = vmul.f32 %v1426_v57, %v1326_v4  ;;  %v4242_v62 = vld [vmem:[%s5493_s26 + $0x16c] ss:$12 sps:$4 sm:$0xff]   ;;  %v4240_v63 = vld [vmem:[%s5493_s26 + $0x168] ss:$12 sps:$4 sm:$0xff]  }
 0x8dc   :  { %v1431_v6 = vmul.f32 %v1427_v11, %v1327_v2  ;;  %v4243_v43 = vld [vmem:[%s5493_s26 + $0x170] ss:$12 sps:$4 sm:$0xff]  }
 0x8dd   :  { %v1432_v8 = vmul.f32 %v1428_v7, %v1328_v14 }
 0x8de   :  { %v1465_v18 = vpack.c.bf16 %v1431_v6, %v1429_v15  ;;  %v3516_v15 = vld [vmem:[%s5477_s14] ss:$0 sm:$0xff] }
 0x8df   :  { %v1466_v51 = vpack.c.bf16 %v1432_v8, %v1430_v50 }
 0x8e1   :  { %1602 = vmatprep.mubr.bf16.mxu1 %v1466_v51 }
 0x8e2   :  { %1603 = vmatmul.mubr.bf16.vlgmr.msra.gmra.mrb[16].mxu1 %v1465_v18  ;;  %v3517_v18 = vld [vmem:[%s5478_s15] ss:$0 sm:$0xff] }
 0x8e3   :  { %3974 = vmatprep.mubr.msk.bf16.mxu1 %vm4436_vm0, %v4434_v3  ;;  %3959 = vmatpush3.bf16.msra.mxu1 %v4215_v26 }
 0x8e4   :  { %3960 = vmatprep.subr.bf16.mxu1 %v4434_v3 }
 0x9b5   :  { %v3775_v12 = vpop.f32.mrb[16].mxu1 }
 0x9b6   :  { %v3776_v20 = vpop.f32.mrb[17].mxu1 }
 0x9b7   :  { %v3777_v10 = vadd.f32 %v3776_v20, %v3775_v12  ;;  %v3778_v13 = vpop.f32.mrb[18].mxu1  ;;  %v3550_v20 = vld [vmem:[%s5496_s25 + $0x3] sm:$0x7] }
 0x9b8   :  { %v3779_v17 = vpop.f32.mrb[19].mxu1 }
 0x9b9   :  { %v1605_v16 = vadd.f32 %v3777_v10, %v3499_v9  ;;  %v3780_v19 = vadd.f32 %v3779_v17, %v3778_v13  ;;  %v1693_v10 = vrot.slane %v3550_v20, %v4665_v55  ;;  %v1701_v13 = vrot.slane %v3550_v20, %v162_v56 }
 0x9bb   :  { %v1608_v21 = vadd.f32 %v3780_v19, %v3499_v9  ;;  %v1611_v22 = vadd.f32 %v1605_v16, %v4875_v44  ;;  %v4218_v44 = vld [vmem:[%s5493_s26 + $0xdc] ss:$12 sps:$4 sm:$0xff]   ;;  %v1697_v19 = vrot.slane %v3550_v20, %v4672_v58 }
 0x9bc   :  { %1835 = vmatprep.subr.bf16.mxu0 %v4218_v44 }
 0x9bd   :  { %1615 = vadd.xlane.f32.xlu1 %v1611_v22  ;;  %v1612_v23 = vadd.f32 %v1608_v21, %v4877_v45  ;;  %v4219_v45 = vld [vmem:[%s5493_s26 + $0xe0] ss:$12 sps:$4 sm:$0xff]   ;;  %1836 = vmatpush1.bf16.msra.mxu0 %v4216_v27 }
 0x9be   :  { %3961 = vmatpush3.bf16.msra.mxu1 %v4219_v45  ;;  %1837 = vmatprep.subr.bf16.mxu0 %v4222_v39 }
 0x9bf   :  { %1617 = vadd.xlane.f32.xlu0 %v1612_v23  ;;  %3962 = vmatprep.subr.bf16.mxu1 %v4434_v3 }
 0x9c1   :  { %1838 = vmatpush1.bf16.msra.mxu0 %v4220_v40 }
 0x9c2   :  { %3963 = vmatpush3.bf16.msra.mxu1 %v4223_v41  ;;  %1839 = vmatprep.subr.bf16.mxu0 %v4226_v42 }
 0x9c3   :  { %3964 = vmatprep.subr.bf16.mxu1 %v4434_v3 }
 0x9c5   :  { %1840 = vmatpush1.bf16.msra.mxu0 %v4224_v46 }
 0x9c6   :  { %3965 = vmatpush3.bf16.msra.mxu1 %v4227_v47  ;;  %1841 = vmatprep.subr.bf16.mxu0 %v4230_v48 }
 0x9c7   :  { %3966 = vmatprep.subr.bf16.mxu1 %v4434_v3 }
 0x9c9   :  { %1842 = vmatpush1.bf16.msra.mxu0 %v4228_v49  ;;  %v4426_v49 = vld [vmem:[%s5468_s1] sm:$0xff] }
 0x9ca   :  { %3967 = vmatpush3.bf16.msra.mxu1 %v4231_v52  ;;  %1843 = vmatprep.subr.bf16.mxu0 %v4234_v34 }
 0x9cb   :  { %3968 = vmatprep.subr.bf16.mxu1 %v4434_v3 }
 0x9cd   :  { %1844 = vmatpush1.bf16.msra.mxu0 %v4232_v53 }
 0x9ce   :  { %3969 = vmatpush3.bf16.msra.mxu1 %v4235_v59  ;;  %1845 = vmatprep.subr.bf16.mxu0 %v4238_v37  ;;  %v4427_v59 = vld [vmem:[%s5468_s1 + $0x8] sm:$0xff] }
 0x9cf   :  { %3970 = vmatprep.subr.bf16.mxu1 %v4434_v3 }
 0x9d1   :  { %1846 = vmatpush1.bf16.msra.mxu0 %v4236_v60 }
 0x9d2   :  { %3971 = vmatpush3.bf16.msra.mxu1 %v4239_v61  ;;  %1847 = vmatprep.subr.bf16.mxu0 %v4242_v62 }
 0x9d3   :  { %3972 = vmatprep.subr.bf16.mxu1 %v4434_v3 }
 0x9d5   :  { %1848 = vmatpush1.bf16.msra.mxu0 %v4240_v63 }
 0x9d6   :  { %3973 = vmatpush3.bf16.msra.mxu1 %v4243_v43  ;;  %3978 = vmatprep.subr.bf16.mxu0 %v4434_v3  ;;  %v4428_v43 = vld [vmem:[%s5468_s1 + $0x10] sm:$0xff] }
 0x9d7   :  { %3984 = vmatprep.subr.bf16.mxu1 %v4434_v3 }
 0xa4a   :  { %v1616_v28 = vpop.xlane.xlu1 %1615 }
 0xa4b   :  { %v1619_v29 = vmul.f32 0.0078125, %v1616_v28 }
 0xa4c   :  { %v1618_v31 = vpop.xlane.xlu0 %1617 }
 0xa4d   :  { %v1621_v32 = vsub.f32 %v1611_v22, %v1619_v29  ;;  %v1620_v33 = vmul.f32 0.0078125, %v1618_v31 }
 0xa4f   :  { %v1622_v35 = vsub.f32 %v1612_v23, %v1620_v33  ;;  %v1623_v36 = vmul.f32 %v1621_v32, %v1621_v32 }
 0xa51   :  { %1625 = vadd.xlane.f32.xlu1 %v1623_v36  ;;  %v1624_v38 = vmul.f32 %v1622_v35, %v1622_v35 }
 0xa53   :  { %1627 = vadd.xlane.f32.xlu0 %v1624_v38 }
 0xade   :  { %v1626_v0 = vpop.xlane.xlu1 %1625 }
 0xadf   :  { %v1629_v1 = vmul.f32 0.0078125, %v1626_v0 }
 0xae0   :  { %v1628_v57 = vpop.xlane.xlu0 %1627 }
 0xae1   :  { %v1631_v2 = vadd.f32 1e-12, %v1629_v1  ;;  %v1630_v11 = vmul.f32 0.0078125, %v1628_v57 }
 0xae3   :  { %4364 = vrsqrt.f32 %v1631_v2  ;;  %v1632_v4 = vadd.f32 1e-12, %v1630_v11  ;;  %v4429_v2 = vld [vmem:[%s5468_s1 + $0x18] sm:$0xff] }
 0xae5   :  { %4366 = vrsqrt.f32 %v1632_v4 }
 0xaed   :  { %v4365_v5 = vpop.eup %4364 }
 0xaee   :  { %v1635_v6 = vmul.f32 %v4365_v5, %v1621_v32 }
 0xaef   :  { %v4367_v14 = vpop.eup %4366 }
 0xaf0   :  { %v1636_v7 = vmul.f32 %v4367_v14, %v1622_v35  ;;  %v1643_v50 = vmul.f32 %v3516_v15, %v1635_v6  ;;  %v4430_v6 = vld [vmem:[%s5468_s1 + $0x20] sm:$0xff] }
 0xaf2   :  { %v1644_v8 = vmul.f32 %v3516_v15, %v1636_v7  ;;  %v5062_v51 = vadd.f32 %v3517_v18, %v1643_v50 }
 0xaf4   :  { %v5064_v12 = vadd.f32 %v3517_v18, %v1644_v8  ;;  %v4431_v18 = vld [vmem:[%s5468_s1 + $0x28] sm:$0xff] }
 0xaf6   :  { %v1686_v9 = vpack.c.bf16 %v5064_v12, %v5062_v51 }
 0xaf8   :  { %1866 = vmatmul.mubr.bf16.vlgmr.msra.gmra.mrb[32].mxu0 %v1686_v9  ;;  %3975 = vmatmul.mubr.bf16.vlgmr.msra.gmra.mrb[20].mxu1 %v1686_v9 }
 0xaf9   :  { %3980 = vmatprep.mubr.msk.bf16.mxu0 %vm4436_vm0, %v4434_v3  ;;  %3986 = vmatprep.mubr.msk.bf16.mxu1 %vm4436_vm0, %v4434_v3 }
 0xbcb   :  { %v1867_v17 = vpop.f32.mrb[32].mxu0  ;;  %v1910_v16 = vpop.f32.mrb[20].mxu1 }
 0xbcc   :  { %v1869_v21 = vpop.f32.mrb[33].mxu0  ;;  %v3976_v22 = vpop.f32.mrb[21].mxu1  ;;  %v1868_v25 = vadd.f32 %v1867_v17, %v1693_v10  ;;  %v1911_v26 = vadd.f32 %v1910_v16, %v1701_v13  ;;  %v4432_v16 = vld [vmem:[%s5468_s1 + $0x30] sm:$0xff] }
 0xbcd   :  { %v1871_v23 = vpop.f32.mrb[34].mxu0  ;;  %v1913_v24 = vpop.f32.mrb[22].mxu1  ;;  %v1870_v29 = vadd.f32 %v1869_v21, %v1697_v19 }
 0xbce   :  { %v1872_v44 = vadd.f32 %v1871_v23, %v1693_v10  ;;  %v1914_v45 = vadd.f32 %v1913_v24, %v1701_v13  ;;  %v1873_v27 = vpop.f32.mrb[35].mxu0  ;;  %v3977_v28 = vpop.f32.mrb[23].mxu1  ;;  %v4433_v23 = vld [vmem:[%s5468_s1 + $0x38] sm:$0xff] }
 0xbcf   :  { %v1874_v31 = vadd.f32 %v1873_v27, %v1697_v19 }
 0xbd0   :  { %v1917_v32 = vpack.c.bf16 %v1872_v44, %v1868_v25  ;;  %v5079_v33 = vpack.c.bf16 %v1914_v45, %v1911_v26 }
 0xbd1   :  { %v1918_v54 = vpack.c.bf16 %v1874_v31, %v1870_v29 }
 0xbd2   :  { %1968 = vrot.lane.b32.xlu0 %v1917_v32, %s4437_s3 }
 0xbd3   :  { %1971 = vrot.lane.b32.xlu1 %v1918_v54, %s4437_s3  ;;  %v1924_v56 = vsel %vm382_vm1, %v1918_v54, 0 }
 0xbd4   :  { %3979 = vmatpush3.bf16.xpose.msra.mxu0 %v1924_v56 }
 0xbd5   :  { %3990 = vmatprep.subr.bf16.mxu0 %v4434_v3 }
 0xbd6   :  { %2071 = vrot.lane.b32.xlu0 %v1917_v32, %s4439_s28 }
 0xbd7   :  { %2022 = vrot.lane.b32.xlu1 %v1918_v54, %s4438_s27 }
 0xbdb   :  { %2020 = vrot.lane.b32.xlu1 %v1917_v32, %s4438_s27  ;;  %3981 = vmatmul.mubr.msk.bf16.vlgmr.msra.gmra.mrb[36].mxu0 %vm382_vm1, %v1917_v32 }
 0xbdc   :  { %3992 = vmatprep.mubr.msk.bf16.mxu0 %vm4436_vm0, %v4434_v3 }
 0xbdf   :  { %2073 = vrot.lane.b32.xlu1 %v1918_v54, %s4439_s28 }
 0xc44   :  { %v1969_v40 = vpop.permute.xlu0 %1968 }
 0xc45   :  { %v1972_v35 = vpop.permute.xlu1 %1971 }
 0xc46   :  { %v1977_v36 = vsel %vm382_vm1, %v1972_v35, 0 }
 0xc47   :  { %3985 = vmatpush3.bf16.xpose.msra.mxu1 %v1977_v36 }
 0xc48   :  { %3996 = vmatprep.subr.bf16.mxu1 %v4434_v3  ;;  %v2072_v47 = vpop.permute.xlu0 %2071 }
 0xc49   :  { %v2023_v38 = vpop.permute.xlu1 %2022 }
 0xc4a   :  { %v2028_v39 = vsel %vm382_vm1, %v2023_v38, 0 }
 0xc4b   :  { %3991 = vmatpush3.bf16.xpose.msra.mxu0 %v2028_v39 }
 0xc4c   :  { %4002 = vmatprep.subr.bf16.mxu0 %v4434_v3 }
 0xc4d   :  { %v2021_v41 = vpop.permute.xlu1 %2020 }
 0xc4e   :  { %3987 = vmatmul.mubr.msk.bf16.vlgmr.msra.gmra.mrb[24].mxu1 %vm382_vm1, %v1969_v40 }
 0xc4f   :  { %3998 = vmatprep.mubr.msk.bf16.mxu1 %vm4436_vm0, %v4434_v3 }
 0xc51   :  { %v2074_v42 = vpop.permute.xlu1 %2073 }
 0xc52   :  { %v2079_v46 = vsel %vm382_vm1, %v2074_v42, 0  ;;  %3993 = vmatmul.mubr.msk.bf16.vlgmr.msra.gmra.mrb[40].mxu0 %vm382_vm1, %v2021_v41 }
 0xc53   :  { %3997 = vmatpush3.bf16.xpose.msra.mxu1 %v2079_v46  ;;  %4003 = vmatpush3.bf16.msra.mxu0 %v5079_v33 }
 0xc54   :  { %4004 = vmatprep.mubr.msk.bf16.mxu0 %vm4436_vm0, %v4434_v3  ;;  %4016 = vmatprep.subr.bf16.mxu0 %v4434_v3 }
 0xc55   :  { %4008 = vmatprep.subr.bf16.mxu1 %v4434_v3 }
 0xc5a   :  { %3999 = vmatmul.mubr.msk.bf16.vlgmr.msra.gmra.mrb[28].mxu1 %vm382_vm1, %v2072_v47 }
 0xc5b   :  { %4012 = vmatprep.mubr.msk.bf16.mxu1 %vm4436_vm0, %v4434_v3 }
 0xcae   :  { %v1960_v48 = vpop.f32.mrb[36].mxu0 }
 0xcaf   :  { %v2122_v52 = vadd.f32 %v4426_v49, %v1960_v48  ;;  %v3982_v34 = vpop.f32.mrb[37].mxu0 }
 0xcb0   :  { %v1963_v53 = vpop.f32.mrb[38].mxu0 }
 0xcb1   :  { %v2123_v37 = vadd.f32 %v4427_v59, %v1963_v53  ;;  %v3983_v60 = vpop.f32.mrb[39].mxu0  ;;  %v2130_v61 = vsel %vm593_vm2, %v2122_v52, -inf }
 0xcb2   :  { %2131 = vmax.xlane.f32.xlu1 %v2130_v61 }
 0xcb3   :  { %v2133_v62 = vsel %vm593_vm2, %v2123_v37, -inf }
 0xcb4   :  { %2134 = vmax.xlane.f32.xlu0 %v2133_v62 }
 0xd21   :  { %v2013_v63 = vpop.f32.mrb[24].mxu1 }
 0xd22   :  { %v2124_v0 = vadd.f32 %v4428_v43, %v2013_v63  ;;  %v3988_v1 = vpop.f32.mrb[25].mxu1 }
 0xd23   :  { %v2016_v57 = vpop.f32.mrb[26].mxu1 }
 0xd24   :  { %v2125_v11 = vadd.f32 %v4429_v2, %v2016_v57  ;;  %v3989_v4 = vpop.f32.mrb[27].mxu1  ;;  %v2136_v5 = vsel %vm593_vm2, %v2124_v0, -inf }
 0xd25   :  { %2137 = vmax.xlane.f32.xlu0 %v2136_v5  ;;  %v2064_v15 = vpop.f32.mrb[40].mxu0 }
 0xd26   :  { %v5127_v14 = vadd.f32 %v4430_v6, %v2064_v15  ;;  %v3994_v7 = vpop.f32.mrb[41].mxu0  ;;  %v2139_v20 = vsel %vm593_vm2, %v2125_v11, -inf }
 0xd27   :  { %v2067_v50 = vpop.f32.mrb[42].mxu0 }
 0xd28   :  { %v2127_v8 = vadd.f32 %v4431_v18, %v2067_v50  ;;  %v3995_v9 = vpop.f32.mrb[43].mxu0  ;;  %v2142_v10 = vsel %vm593_vm2, %v5127_v14, -inf }
 0xd29   :  { %2140 = vmax.xlane.f32.xlu0 %v2139_v20  ;;  %2143 = vmax.xlane.f32.xlu1 %v2142_v10 }
 0xd2a   :  { %v2145_v13 = vsel %vm593_vm2, %v2127_v8, -inf }
 0xd2d   :  { %v2115_v17 = vpop.f32.mrb[28].mxu1  ;;  %2146 = vmax.xlane.f32.xlu0 %v2145_v13 }
 0xd2e   :  { %v5139_v19 = vadd.f32 %v4432_v16, %v2115_v17  ;;  %v4000_v21 = vpop.f32.mrb[29].mxu1  ;;  %v4244_v17 = vld [vmem:[%s5469_s6 + $0x40] sm:$0xff]   ;;  %v4245_v16 = vld [vmem:[%s5469_s6 + $0x48] sm:$0xff]  }
 0xd2f   :  { %v2118_v22 = vpop.f32.mrb[30].mxu1  ;;  %4009 = vmatpush3.bf16.msra.mxu1 %v4244_v17 }
 0xd30   :  { %v2129_v24 = vadd.f32 %v4433_v23, %v2118_v22  ;;  %v4001_v25 = vpop.f32.mrb[31].mxu1  ;;  %v2148_v26 = vsel %vm593_vm2, %v5139_v19, -inf  ;;  %4010 = vmatprep.subr.bf16.mxu1 %v4434_v3 }
 0xd31   :  { %2149 = vmax.xlane.f32.xlu1 %v2148_v26 }
 0xd32   :  { %v2151_v44 = vsel %vm593_vm2, %v2129_v24, -inf }
 0xd33   :  { %2152 = vmax.xlane.f32.xlu0 %v2151_v44  ;;  %4011 = vmatpush3.bf16.msra.mxu1 %v4245_v16 }
 0xd34   :  { %4022 = vmatprep.subr.bf16.mxu1 %v4434_v3 }
 0xd3f   :  { %v2132_v45 = vpop.xlane.xlu1 %2131 }
 0xd40   :  { %v2154_v27 = vsub.f32 %v2122_v52, %v2132_v45 }
 0xd41   :  { %v2135_v28 = vpop.xlane.xlu0 %2134 }
 0xd42   :  { %v2162_v29 = vmul.f32 1.442695, %v2154_v27  ;;  %v2155_v31 = vsub.f32 %v2123_v37, %v2135_v28 }
 0xd44   :  { %4368 = vpow2.f32 %v2162_v29  ;;  %v2164_v32 = vmul.f32 1.442695, %v2155_v31 }
 0xd46   :  { %4370 = vpow2.f32 %v2164_v32 }
 0xd4e   :  { %v4369_v54 = vpop.eup %4368 }
 0xd4f   :  { %v2178_v56 = vsel %vm593_vm2, %v4369_v54, 0.0 }
 0xd50   :  { %v4371_v35 = vpop.eup %4370  ;;  %2179 = vadd.xlane.f32.xlu1 %v2178_v56 }
 0xd51   :  { %v2181_v36 = vsel %vm593_vm2, %v4371_v35, 0.0 }
 0xd52   :  { %2182 = vadd.xlane.f32.xlu0 %v2181_v36 }
 0xdb2   :  { %v2138_v38 = vpop.xlane.xlu0 %2137 }
 0xdb3   :  { %v2156_v39 = vsub.f32 %v2124_v0, %v2138_v38 }
 0xdb5   :  { %v2166_v40 = vmul.f32 1.442695, %v2156_v39 }
 0xdb6   :  { %v2141_v41 = vpop.xlane.xlu0 %2140  ;;  %v2144_v1 = vpop.xlane.xlu1 %2143 }
 0xdb7   :  { %4372 = vpow2.f32 %v2166_v40  ;;  %v2157_v42 = vsub.f32 %v2125_v11, %v2141_v41  ;;  %v2158_v4 = vsub.f32 %v5127_v14, %v2144_v1 }
 0xdb9   :  { %v2168_v46 = vmul.f32 1.442695, %v2157_v42  ;;  %v2170_v5 = vmul.f32 1.442695, %v2158_v4  ;;  %v4251_v4 = vld [vmem:[%s5469_s6 + $0x78] sm:$0xff]  }
 0xdba   :  { %v2147_v47 = vpop.xlane.xlu0 %2146 }
 0xdbb   :  { %4374 = vpow2.f32 %v2168_v46  ;;  %v2159_v48 = vsub.f32 %v2127_v8, %v2147_v47 }
 0xdbd   :  { %v2172_v49 = vmul.f32 1.442695, %v2159_v48 }
 0xdbe   :  { %v2150_v57 = vpop.xlane.xlu1 %2149 }
 0xdbf   :  { %4376 = vpow2.f32 %v2172_v49  ;;  %v2160_v15 = vsub.f32 %v5139_v19, %v2150_v57  ;;  %v4246_v49 = vld [vmem:[%s5469_s6 + $0x50] sm:$0xff]  }
 0xdc0   :  { %v2153_v52 = vpop.xlane.xlu0 %2152  ;;  %v4250_v57 = vld [vmem:[%s5469_s6 + $0x70] sm:$0xff]  }
 0xdc1   :  { %v4373_v34 = vpop.eup %4372  ;;  %v2161_v53 = vsub.f32 %v2129_v24, %v2153_v52  ;;  %v2174_v50 = vmul.f32 1.442695, %v2160_v15 }
 0xdc2   :  { %v2184_v59 = vsel %vm593_vm2, %v4373_v34, 0.0 }
 0xdc3   :  { %v2176_v37 = vmul.f32 1.442695, %v2161_v53  ;;  %2185 = vadd.xlane.f32.xlu1 %v2184_v59  ;;  %v4247_v53 = vld [vmem:[%s5469_s6 + $0x58] sm:$0xff]  }
 0xdc5   :  { %v4375_v60 = vpop.eup %4374  ;;  %4378 = vpow2.f32 %v2176_v37 }
 0xdc6   :  { %v2187_v61 = vsel %vm593_vm2, %v4375_v60, 0.0 }
 0xdc7   :  { %2188 = vadd.xlane.f32.xlu0 %v2187_v61 }
 0xdc9   :  { %v5151_v62 = vpop.eup %4376 }
 0xdca   :  { %v2193_v63 = vsel %vm593_vm2, %v5151_v62, 0.0 }
 0xdcb   :  { %2194 = vadd.xlane.f32.xlu0 %v2193_v63  ;;  %v4249_v63 = vld [vmem:[%s5469_s6 + $0x68] sm:$0xff]  }
 0xdcf   :  { %v5155_v43 = vpop.eup %4378 }
 0xdd0   :  { %v2199_v0 = vsel %vm593_vm2, %v5155_v43, 0.0 }
 0xdd1   :  { %2200 = vadd.xlane.f32.xlu0 %v2199_v0 }
 0xdd4   :  { %2353 = vrot.lane.b32.xlu1 %v5079_v33, %s4437_s3 }
 0xddd   :  { %v2180_v2 = vpop.xlane.xlu1 %2179 }
 0xdde   :  { %4380 = vrcp.f32 %v2180_v2 }
 0xddf   :  { %v2183_v11 = vpop.xlane.xlu0 %2182 }
 0xde0   :  { %4382 = vrcp.f32 %v2183_v11 }
 0xde1   :  { %4384 = vpow2.f32 %v2170_v5 }
 0xde2   :  { %4386 = vpow2.f32 %v2174_v50 }
 0xde7   :  { %2459 = vrot.lane.b32.xlu0 %v5079_v33, %s4438_s27 }
 0xde8   :  { %v4381_v6 = vpop.eup %4380 }
 0xde9   :  { %v2210_v18 = vmul.f32 %v4381_v6, %v4369_v54 }
 0xdea   :  { %v4383_v7 = vpop.eup %4382 }
 0xdeb   :  { %v2211_v8 = vmul.f32 %v4383_v7, %v4371_v35  ;;  %v4385_v14 = vpop.eup %4384 }
 0xdec   :  { %v2190_v20 = vsel %vm593_vm2, %v4385_v14, 0.0  ;;  %v4387_v10 = vpop.eup %4386 }
 0xded   :  { %v2218_v9 = vpack.c.bf16 %v2211_v8, %v2210_v18  ;;  %v2196_v13 = vsel %vm593_vm2, %v4387_v10, 0.0  ;;  %v3596_v18 = vld [vmem:[%s5470_s7 + $0x1] ss:$0 sm:$0xff] }
 0xdee   :  { %v2247_v8 = vadd.f32 %v3596_v18, %v5062_v51  ;;  %v4257_v51 = vld [vmem:[%s5471_s10 + $0x94] ss:$8 sps:$4 sm:$0xff]  }
 0xdef   :  { %4005 = vmatmul.mubr.msk.bf16.vlgmr.msra.gmra.mrb[44].mxu0 %vm593_vm2, %v2218_v9 }
 0xdf0   :  { %4018 = vmatprep.mubr.msk.bf16.mxu0 %vm4436_vm0, %v4434_v3 }
 0xdf8   :  { %2191 = vadd.xlane.f32.xlu1 %v2190_v20 }
 0xdfc   :  { %2197 = vadd.xlane.f32.xlu1 %v2196_v13 }
 0xe0d   :  { %2565 = vrot.lane.b32.xlu1 %v5079_v33, %s4439_s28 }
 0xe50   :  { %v2186_v19 = vpop.xlane.xlu1 %2185 }
 0xe51   :  { %4388 = vrcp.f32 %v2186_v19  ;;  %v4252_v19 = vld [vmem:[%s5471_s10 + $0x80] ss:$8 sps:$4 sm:$0xff]  }
 0xe54   :  { %v2354_v21 = vpop.permute.xlu1 %2353  ;;  %v2189_v22 = vpop.xlane.xlu0 %2188 }
 0xe55   :  { %4390 = vrcp.f32 %v2189_v22  ;;  %4017 = vmatpush3.bf16.msra.mxu0 %v2354_v21  ;;  %v4254_v21 = vld [vmem:[%s5471_s10 + $0x84] ss:$8 sps:$4 sm:$0xff]  }
 0xe56   :  { %4030 = vmatprep.subr.bf16.mxu0 %v4434_v3 }
 0xe58   :  { %v2195_v33 = vpop.xlane.xlu0 %2194 }
 0xe59   :  { %4392 = vrcp.f32 %v2195_v33 }
 0xe5b   :  { %v4389_v23 = vpop.eup %4388 }
 0xe5c   :  { %v2212_v26 = vmul.f32 %v4389_v23, %v4373_v34 }
 0xe5e   :  { %v2201_v24 = vpop.xlane.xlu0 %2200 }
 0xe5f   :  { %v4391_v25 = vpop.eup %4390 }
 0xe60   :  { %v2213_v44 = vmul.f32 %v4391_v25, %v4375_v60  ;;  %v4248_v60 = vld [vmem:[%s5469_s6 + $0x60] sm:$0xff]  }
 0xe62   :  { %v2460_v45 = vpop.permute.xlu0 %2459  ;;  %v2219_v27 = vpack.c.bf16 %v2213_v44, %v2212_v26 }
 0xe63   :  { %v4393_v31 = vpop.eup %4392 }
 0xe64   :  { %4019 = vmatmul.mubr.msk.bf16.vlgmr.msra.gmra.mrb[48].mxu0 %vm593_vm2, %v2219_v27  ;;  %v2215_v54 = vmul.f32 %v4393_v31, %v5151_v62  ;;  %v4260_v27 = vld [vmem:[%s5471_s10 + $0xa4] ss:$8 sps:$4 sm:$0xff]   ;;  %v4261_v31 = vld [vmem:[%s5471_s10 + $0xb0] ss:$8 sps:$4 sm:$0xff]  }
 0xe65   :  { %4031 = vmatpush3.bf16.msra.mxu0 %v2460_v45  ;;  %4032 = vmatprep.mubr.msk.bf16.mxu0 %vm4436_vm0, %v4434_v3 }
 0xe66   :  { %4044 = vmatprep.subr.bf16.mxu0 %v4434_v3 }
 0xe85   :  { %v2192_v28 = vpop.xlane.xlu1 %2191 }
 0xe86   :  { %4394 = vrcp.f32 %v2192_v28  ;;  %v4258_v28 = vld [vmem:[%s5471_s10 + $0xa0] ss:$8 sps:$4 sm:$0xff]  }
 0xe89   :  { %v2198_v29 = vpop.xlane.xlu1 %2197 }
 0xe8a   :  { %4396 = vrcp.f32 %v2198_v29  ;;  %v4263_v29 = vld [vmem:[%s5471_s10 + $0xb4] ss:$8 sps:$4 sm:$0xff]  }
 0xe8b   :  { %4398 = vrcp.f32 %v2201_v24 }
 0xe8d   :  { %v2566_v38 = vpop.permute.xlu1 %2565 }
 0xe90   :  { %v4395_v32 = vpop.eup %4394 }
 0xe91   :  { %v2214_v56 = vmul.f32 %v4395_v32, %v4385_v14  ;;  %v4266_v32 = vld [vmem:[%s5471_s10 + $0xc4] ss:$8 sps:$4 sm:$0xff]  }
 0xe93   :  { %v2220_v35 = vpack.c.bf16 %v2215_v54, %v2214_v56  ;;  %v4264_v54 = vld [vmem:[%s5471_s10 + $0xc0] ss:$8 sps:$4 sm:$0xff]   ;;  %v4269_v56 = vld [vmem:[%s5471_s10 + $0xd4] ss:$8 sps:$4 sm:$0xff]  }
 0xe94   :  { %v4397_v36 = vpop.eup %4396 }
 0xe95   :  { %4033 = vmatmul.mubr.msk.bf16.vlgmr.msra.gmra.mrb[52].mxu0 %vm593_vm2, %v2220_v35  ;;  %v4399_v39 = vpop.eup %4398  ;;  %v2216_v40 = vmul.f32 %v4397_v36, %v4387_v10  ;;  %v2248_v10 = vadd.f32 %v3596_v18, %v5064_v12  ;;  %v4255_v12 = vld [vmem:[%s5471_s10 + $0x90] ss:$8 sps:$4 sm:$0xff]   ;;  %v4272_v36 = vld [vmem:[%s5471_s10 + $0xe4] ss:$8 sps:$4 sm:$0xff]  }
 0xe96   :  { %4045 = vmatpush3.bf16.msra.mxu0 %v2566_v38  ;;  %4046 = vmatprep.mubr.msk.bf16.mxu0 %vm4436_vm0, %v4434_v3  ;;  %v2217_v41 = vmul.f32 %v4399_v39, %v5155_v43  ;;  %v4267_v35 = vld [vmem:[%s5471_s10 + $0xd0] ss:$8 sps:$4 sm:$0xff]   ;;  %v4270_v38 = vld [vmem:[%s5471_s10 + $0xe0] ss:$8 sps:$4 sm:$0xff]   ;;  %v4275_v39 = vld [vmem:[%s5471_s10 + $0xf4] ss:$8 sps:$4 sm:$0xff]  }
 0xe97   :  { %2824 = vmatprep.subr.bf16.mxu0 %v4254_v21  ;;  %v4287_v18 = vld [vmem:[%s5474_s12 + $0xa8] sm:$0xff]  }
 0xe98   :  { %v2221_v42 = vpack.c.bf16 %v2217_v41, %v2216_v40  ;;  %v4273_v40 = vld [vmem:[%s5471_s10 + $0xf0] ss:$8 sps:$4 sm:$0xff]  }
 0xe9d   :  { %4047 = vmatmul.mubr.msk.bf16.vlgmr.msra.gmra.mrb[56].mxu0 %vm593_vm2, %v2221_v42 }
 0xe9e   :  { %2856 = vmatprep.mubr.bf16.mxu0 %v4435_v30  ;;  %2825 = vmatpush1.bf16.msra.mxu0 %v4252_v19 }
 0xe9f   :  { %2826 = vmatprep.subr.bf16.mxu0 %v4257_v51 }
 0xea2   :  { %2827 = vmatpush1.bf16.msra.mxu0 %v4255_v12 }
 0xea3   :  { %2828 = vmatprep.subr.bf16.mxu0 %v4260_v27 }
 0xea6   :  { %2829 = vmatpush1.bf16.msra.mxu0 %v4258_v28 }
 0xea7   :  { %2830 = vmatprep.subr.bf16.mxu0 %v4263_v29 }
 0xeaa   :  { %2831 = vmatpush1.bf16.msra.mxu0 %v4261_v31 }
 0xeab   :  { %2832 = vmatprep.subr.bf16.mxu0 %v4266_v32 }
 0xeae   :  { %2833 = vmatpush1.bf16.msra.mxu0 %v4264_v54 }
 0xeaf   :  { %2834 = vmatprep.subr.bf16.mxu0 %v4269_v56 }
 0xeb2   :  { %2835 = vmatpush1.bf16.msra.mxu0 %v4267_v35 }
 0xeb3   :  { %2836 = vmatprep.subr.bf16.mxu0 %v4272_v36 }
 0xeb6   :  { %2837 = vmatpush1.bf16.msra.mxu0 %v4270_v38 }
 0xeb7   :  { %2838 = vmatprep.subr.bf16.mxu0 %v4275_v39 }
 0xeba   :  { %2839 = vmatpush1.bf16.msra.mxu0 %v4273_v40 }
 0xebb   :  { %4058 = vmatprep.subr.bf16.mxu0 %v4434_v3 }
 0xec2   :  { %v2286_v46 = vpop.f32.mrb[44].mxu0 }
 0xec3   :  { %v4006_v47 = vpop.f32.mrb[45].mxu0 }
 0xec4   :  { %v2289_v48 = vpop.f32.mrb[46].mxu0 }
 0xec5   :  { %v2293_v52 = vpack.c.bf16 %v2289_v48, %v2286_v46  ;;  %v4007_v34 = vpop.f32.mrb[47].mxu0 }
 0xec6   :  { %v3615_v34 = vld [vmem:[%s5472_s8 + $0x1] ss:$0 sm:$0xff] }
 0xec7   :  { %4013 = vmatmul.mubr.msk.bf16.vlgmr.msra.gmra.mrb[32].mxu1 %vm382_vm1, %v2293_v52 }
 0xec8   :  { %4023 = vmatpush3.bf16.msra.mxu1 %v4246_v49  ;;  %4026 = vmatprep.mubr.msk.bf16.mxu1 %vm4436_vm0, %v4434_v3 }
 0xec9   :  { %4024 = vmatprep.subr.bf16.mxu1 %v4434_v3 }
 0xecc   :  { %4025 = vmatpush3.bf16.msra.mxu1 %v4247_v53 }
 0xecd   :  { %4036 = vmatprep.subr.bf16.mxu1 %v4434_v3 }
 0xf37   :  { %v2393_v30 = vpop.f32.mrb[48].mxu0 }
 0xf38   :  { %v4020_v59 = vpop.f32.mrb[49].mxu0 }
 0xf39   :  { %v2396_v37 = vpop.f32.mrb[50].mxu0 }
 0xf3a   :  { %v2400_v61 = vpack.c.bf16 %v2396_v37, %v2393_v30  ;;  %v4021_v62 = vpop.f32.mrb[51].mxu0 }
 0xf3c   :  { %4027 = vmatmul.mubr.msk.bf16.vlgmr.msra.gmra.mrb[32].mxu1 %vm382_vm1, %v2400_v61 }
 0xf3d   :  { %4037 = vmatpush3.bf16.msra.mxu1 %v4248_v60  ;;  %4040 = vmatprep.mubr.msk.bf16.mxu1 %vm4436_vm0, %v4434_v3  ;;  %v3616_v60 = vld [vmem:[%s5473_s9 + $0x1] ss:$0 sm:$0xff] }
 0xf3e   :  { %4038 = vmatprep.subr.bf16.mxu1 %v4434_v3 }
 0xf41   :  { %4039 = vmatpush3.bf16.msra.mxu1 %v4249_v63 }
 0xf42   :  { %4050 = vmatprep.subr.bf16.mxu1 %v4434_v3 }
 0xf68   :  { %v2499_v43 = vpop.f32.mrb[52].mxu0 }
 0xf69   :  { %v4034_v0 = vpop.f32.mrb[53].mxu0 }
 0xf6a   :  { %v2502_v1 = vpop.f32.mrb[54].mxu0  ;;  %v4276_v0 = vld [vmem:[%s5474_s12 + $0xc0] sm:$0xff]  }
 0xf6b   :  { %v2506_v2 = vpack.c.bf16 %v2502_v1, %v2499_v43  ;;  %v4035_v11 = vpop.f32.mrb[55].mxu0  ;;  %v4277_v1 = vld [vmem:[%s5474_s12 + $0x80] sm:$0xff]  }
 0xf6c   :  { %v4280_v11 = vld [vmem:[%s5474_s12 + $0xd0] sm:$0xff]  }
 0xf6d   :  { %4041 = vmatmul.mubr.msk.bf16.vlgmr.msra.gmra.mrb[32].mxu1 %vm382_vm1, %v2506_v2  ;;  %v4279_v2 = vld [vmem:[%s5474_s12 + $0x88] sm:$0xff]  }
 0xf6e   :  { %4051 = vmatpush3.bf16.msra.mxu1 %v4250_v57  ;;  %4054 = vmatprep.mubr.msk.bf16.mxu1 %vm4436_vm0, %v4434_v3  ;;  %v4278_v57 = vld [vmem:[%s5474_s12 + $0xc8] sm:$0xff]  }
 0xf6f   :  { %4052 = vmatprep.subr.bf16.mxu1 %v4434_v3 }
 0xf70   :  { %v2605_v5 = vpop.f32.mrb[56].mxu0 }
 0xf71   :  { %v4048_v15 = vpop.f32.mrb[57].mxu0 }
 0xf72   :  { %v2608_v6 = vpop.f32.mrb[58].mxu0  ;;  %4053 = vmatpush3.bf16.msra.mxu1 %v4251_v4  ;;  %v4281_v4 = vld [vmem:[%s5474_s12 + $0x90] sm:$0xff]   ;;  %v4283_v15 = vld [vmem:[%s5474_s12 + $0x98] sm:$0xff]  }
 0xf73   :  { %v2612_v7 = vpack.c.bf16 %v2608_v6, %v2605_v5  ;;  %v4049_v50 = vpop.f32.mrb[59].mxu0  ;;  %3818 = vmatprep.subr.bf16.mxu1 %v4276_v0  ;;  %v4282_v5 = vld [vmem:[%s5474_s12 + $0xd8] sm:$0xff]   ;;  %v4284_v6 = vld [vmem:[%s5474_s12 + $0xe0] sm:$0xff]  }
 0xf74   :  { %v4286_v50 = vld [vmem:[%s5474_s12 + $0xe8] sm:$0xff]  }
 0xf79   :  { %4055 = vmatmul.mubr.msk.bf16.vlgmr.msra.gmra.mrb[32].mxu1 %vm382_vm1, %v2612_v7  ;;  %v4285_v7 = vld [vmem:[%s5474_s12 + $0xa0] sm:$0xff]  }
 0xf7a   :  { %3819 = vmatpush3.bf16.msra.mxu1 %v4277_v1 }
 0xf7b   :  { %3820 = vmatprep.subr.bf16.mxu1 %v4278_v57 }
 0xf7e   :  { %3821 = vmatpush3.bf16.msra.mxu1 %v4279_v2 }
 0xf7f   :  { %3822 = vmatprep.subr.bf16.mxu1 %v4280_v11 }
 0xf82   :  { %3823 = vmatpush3.bf16.msra.mxu1 %v4281_v4 }
 0xf83   :  { %3824 = vmatprep.subr.bf16.mxu1 %v4282_v5 }
 0xf86   :  { %3825 = vmatpush3.bf16.msra.mxu1 %v4283_v15 }
 0xf87   :  { %3826 = vmatprep.subr.bf16.mxu1 %v4284_v6 }
 0xf8a   :  { %3827 = vmatpush3.bf16.msra.mxu1 %v4285_v7 }
 0xf8b   :  { %3828 = vmatprep.subr.bf16.mxu1 %v4286_v50 }
 0xf8e   :  { %3829 = vmatpush3.bf16.msra.mxu1 %v4287_v18 }
0x104c   :  { %v2662_v9 = vpop.f32.mrb[32].mxu1 }
0x104d   :  { %v4100_v14 = vadd.f32 %v2662_v9, %v2247_v8  ;;  %v4056_v20 = vpop.f32.mrb[33].mxu1  ;;  %v4288_v8 = vld [vmem:[%s5474_s12 + $0xf0] sm:$0xff]  }
0x104e   :  { %v2665_v13 = vpop.f32.mrb[34].mxu1  ;;  %v4289_v9 = vld [vmem:[%s5474_s12 + $0xb0] sm:$0xff]   ;;  %3830 = vmatprep.subr.bf16.mxu1 %v4288_v8  ;;  %v4291_v20 = vld [vmem:[%s5474_s12 + $0xb8] sm:$0xff]  }
0x104f   :  { %v4101_v17 = vadd.f32 %v2665_v13, %v2248_v10  ;;  %2675 = vadd.xlane.f32.xlu1 %v4100_v14  ;;  %v4057_v16 = vpop.f32.mrb[35].mxu1  ;;  %3831 = vmatpush3.bf16.msra.mxu1 %v4289_v9  ;;  %v3633_v10 = vld [vmem:[%s5475_s11 + $0x2] sm:$0x3] }
0x1050   :  { %v2737_v13 = vrot.slane %v3633_v10, %v4665_v55 }
0x1051   :  { %2677 = vadd.xlane.f32.xlu0 %v4101_v17 }
0x10dc   :  { %v2676_v22 = vpop.xlane.xlu1 %2675 }
0x10dd   :  { %v2679_v33 = vmul.f32 0.0078125, %v2676_v22 }
0x10de   :  { %v2678_v23 = vpop.xlane.xlu0 %2677 }
0x10df   :  { %v2681_v24 = vsub.f32 %v4100_v14, %v2679_v33  ;;  %v2680_v25 = vmul.f32 0.0078125, %v2678_v23  ;;  %v4290_v14 = vld [vmem:[%s5474_s12 + $0xf8] sm:$0xff]  }
0x10e0   :  { %3832 = vmatprep.subr.bf16.mxu1 %v4290_v14 }
0x10e1   :  { %v2682_v26 = vsub.f32 %v4101_v17, %v2680_v25  ;;  %v2683_v44 = vmul.f32 %v2681_v24, %v2681_v24  ;;  %3833 = vmatpush3.bf16.msra.mxu1 %v4291_v20  ;;  %v2741_v17 = vrot.slane %v3633_v10, %v4672_v58 }
0x10e2   :  { %4078 = vmatprep.subr.bf16.mxu1 %v4434_v3 }
0x10e3   :  { %2685 = vadd.xlane.f32.xlu0 %v2683_v44  ;;  %v2684_v45 = vmul.f32 %v2682_v26, %v2682_v26 }
0x10e5   :  { %2687 = vadd.xlane.f32.xlu1 %v2684_v45 }
0x1170   :  { %v2686_v41 = vpop.xlane.xlu0 %2685 }
0x1171   :  { %v2689_v42 = vmul.f32 0.0078125, %v2686_v41 }
0x1172   :  { %v2688_v46 = vpop.xlane.xlu1 %2687 }
0x1173   :  { %v2691_v47 = vadd.f32 1e-12, %v2689_v42  ;;  %v2690_v48 = vmul.f32 0.0078125, %v2688_v46 }
0x1175   :  { %4400 = vrsqrt.f32 %v2691_v47  ;;  %v2692_v49 = vadd.f32 1e-12, %v2690_v48 }
0x1177   :  { %4402 = vrsqrt.f32 %v2692_v49 }
0x117f   :  { %v4401_v52 = vpop.eup %4400 }
0x1180   :  { %v2695_v53 = vmul.f32 %v4401_v52, %v2681_v24 }
0x1181   :  { %v4403_v30 = vpop.eup %4402 }
0x1182   :  { %v2696_v59 = vmul.f32 %v4403_v30, %v2682_v26  ;;  %v2703_v37 = vmul.f32 %v3615_v34, %v2695_v53 }
0x1184   :  { %v2704_v61 = vmul.f32 %v3615_v34, %v2696_v59  ;;  %v5285_v62 = vadd.f32 %v3616_v60, %v2703_v37 }
0x1186   :  { %v5287_v63 = vadd.f32 %v3616_v60, %v2704_v61 }
0x1188   :  { %v2730_v43 = vpack.c.bf16 %v5287_v63, %v5285_v62 }
0x118a   :  { %2857 = vmatmul.mubr.bf16.vlgmr.msra.gmra.mrb[60].mxu0 %v2730_v43 }
0x118b   :  { %4074 = vmatprep.mubr.msk.bf16.mxu0 %vm4436_vm0, %v4434_v3 }
0x125d   :  { %v2858_v16 = vpop.f32.mrb[60].mxu0 }
0x125e   :  { %v5347_v19 = vadd.f32 %v2858_v16, %v2737_v13  ;;  %v2860_v21 = vpop.f32.mrb[61].mxu0 }
0x125f   :  { %v5349_v51 = vadd.f32 %v2860_v21, %v2741_v17  ;;  %v2862_v12 = vpop.f32.mrb[62].mxu0 }
0x1260   :  { %v5352_v22 = vmul.f32 0.70710677, %v5347_v19  ;;  %v5354_v33 = vadd.f32 %v2862_v12, %v2737_v13  ;;  %v2864_v23 = vpop.f32.mrb[63].mxu0 }
0x1261   :  { %v5357_v24 = vmul.f32 0.70710677, %v5349_v51  ;;  %v5359_v25 = vadd.f32 %v2864_v23, %v2741_v17 }
0x1262   :  { %v2875_v55 = vand.u32 2147483647, %v5352_v22  ;;  %v5363_v58 = vmul.f32 0.70710677, %v5354_v33  ;;  %vm2955_vm7 = vcmp.ge.f32.partialorder %v5352_v22, 0.0 }
0x1263   :  { %v2876_v26 = vand.u32 2147483647, %v5357_v24  ;;  %v5367_v44 = vmul.f32 0.70710677, %v5359_v25  ;;  %vm2956_vm8 = vcmp.ge.f32.partialorder %v5357_v24, 0.0 }
0x1264   :  { %v2879_v45 = vmul.f32 0.3275911, %v2875_v55  ;;  %v2877_v27 = vand.u32 2147483647, %v5363_v58  ;;  %v2931_v38 = vsub.f32 0.0, %v2875_v55  ;;  %vm2957_vm9 = vcmp.ge.f32.partialorder %v5363_v58, 0.0 }
0x1265   :  { %v2880_v28 = vmul.f32 0.3275911, %v2876_v26  ;;  %v2878_v29 = vand.u32 2147483647, %v5367_v44  ;;  %v2932_v39 = vsub.f32 0.0, %v2876_v26  ;;  %vm2958_vm10 = vcmp.ge.f32.partialorder %v5367_v44, 0.0 }
0x1266   :  { %v2883_v31 = vadd.f32 1.0, %v2879_v45  ;;  %v2881_v32 = vmul.f32 0.3275911, %v2877_v27  ;;  %v2935_v41 = vmul.f32 %v2931_v38, %v2875_v55  ;;  %v2933_v42 = vsub.f32 0.0, %v2877_v27 }
0x1267   :  { %v2884_v54 = vadd.f32 1.0, %v2880_v28  ;;  %v2882_v56 = vmul.f32 0.3275911, %v2878_v29  ;;  %v2936_v48 = vmul.f32 %v2932_v39, %v2876_v26  ;;  %v2934_v52 = vsub.f32 0.0, %v2878_v29 }
0x1268   :  { %4404 = vrcp.f32 %v2883_v31  ;;  %v2885_v35 = vadd.f32 1.0, %v2881_v32  ;;  %v2939_v30 = vmul.f32 1.442695, %v2935_v41  ;;  %v2937_v37 = vmul.f32 %v2933_v42, %v2877_v27 }
0x1269   :  { %4406 = vrcp.f32 %v2884_v54  ;;  %v2886_v36 = vadd.f32 1.0, %v2882_v56  ;;  %v2941_v61 = vmul.f32 1.442695, %v2936_v48  ;;  %v2938_v57 = vmul.f32 %v2934_v52, %v2878_v29 }
0x126a   :  { %4408 = vrcp.f32 %v2885_v35  ;;  %v2943_v15 = vmul.f32 1.442695, %v2937_v37 }
0x126b   :  { %4410 = vrcp.f32 %v2886_v36  ;;  %v2945_v8 = vmul.f32 1.442695, %v2938_v57 }
0x126c   :  { %4412 = vpow2.f32 %v2939_v30 }
0x126d   :  { %4414 = vpow2.f32 %v2941_v61 }
0x126e   :  { %4416 = vpow2.f32 %v2943_v15  ;;  %v2870_v15 = vmul.f32 0.5, %v5359_v25 }
0x126f   :  { %4418 = vpow2.f32 %v2945_v8 }
0x1272   :  { %v4405_v40 = vpop.eup %4404 }
0x1273   :  { %v4407_v46 = vpop.eup %4406  ;;  %v2895_v47 = vmul.f32 1.0614054, %v4405_v40 }
0x1274   :  { %v2896_v49 = vmul.f32 1.0614054, %v4407_v46  ;;  %v4409_v53 = vpop.eup %4408 }
0x1275   :  { %v2899_v34 = vadd.f32 -1.4531521, %v2895_v47  ;;  %v2897_v43 = vmul.f32 1.0614054, %v4409_v53  ;;  %v4411_v0 = vpop.eup %4410 }
0x1276   :  { %v2900_v59 = vadd.f32 -1.4531521, %v2896_v49  ;;  %v2898_v4 = vmul.f32 1.0614054, %v4411_v0  ;;  %v4413_v29 = vpop.eup %4412 }
0x1277   :  { %v2903_v60 = vmul.f32 %v4405_v40, %v2899_v34  ;;  %v2901_v11 = vadd.f32 -1.4531521, %v2897_v43  ;;  %v4415_v32 = vpop.eup %4414 }
0x1278   :  { %v2904_v1 = vmul.f32 %v4407_v46, %v2900_v59  ;;  %v2902_v50 = vadd.f32 -1.4531521, %v2898_v4  ;;  %v4417_v42 = vpop.eup %4416 }
0x1279   :  { %v2907_v2 = vadd.f32 1.4214138, %v2903_v60  ;;  %v2905_v7 = vmul.f32 %v4409_v53, %v2901_v11  ;;  %v4419_v34 = vpop.eup %4418  ;;  %v2868_v11 = vmul.f32 0.5, %v5349_v51  ;;  %v3683_v51 = vld [vmem:[%s5476_s13 + $0x1] ss:$0 sm:$0xff] }
0x127a   :  { %v2908_v5 = vadd.f32 1.4214138, %v2904_v1  ;;  %v2906_v20 = vmul.f32 %v4411_v0, %v2902_v50 }
0x127b   :  { %v2911_v6 = vmul.f32 %v4405_v40, %v2907_v2  ;;  %v2909_v14 = vadd.f32 1.4214138, %v2905_v7  ;;  %v2869_v2 = vmul.f32 0.5, %v5354_v33 }
0x127c   :  { %v2912_v18 = vmul.f32 %v4407_v46, %v2908_v5  ;;  %v2910_v16 = vadd.f32 1.4214138, %v2906_v20 }
0x127d   :  { %v2915_v9 = vadd.f32 -0.28449672, %v2911_v6  ;;  %v2913_v17 = vmul.f32 %v4409_v53, %v2909_v14 }
0x127e   :  { %v2916_v10 = vadd.f32 -0.28449672, %v2912_v18  ;;  %v2914_v55 = vmul.f32 %v4411_v0, %v2910_v16 }
0x127f   :  { %v2919_v13 = vmul.f32 %v4405_v40, %v2915_v9  ;;  %v2917_v23 = vadd.f32 -0.28449672, %v2913_v17  ;;  %v4292_v17 = vld [vmem:[%s5479_s16] sm:$0xff]  }
0x1280   :  { %v2920_v21 = vmul.f32 %v4407_v46, %v2916_v10  ;;  %v2918_v28 = vadd.f32 -0.28449672, %v2914_v55  ;;  %4059 = vmatpush3.bf16.msra.mxu0 %v4292_v17 }
0x1281   :  { %v2923_v12 = vadd.f32 0.2548296, %v2919_v13  ;;  %v2921_v27 = vmul.f32 %v4409_v53, %v2917_v23  ;;  %4060 = vmatprep.subr.bf16.mxu0 %v4434_v3 }
0x1282   :  { %v2924_v26 = vadd.f32 0.2548296, %v2920_v21  ;;  %v2922_v35 = vmul.f32 %v4411_v0, %v2918_v28  ;;  %v4295_v28 = vld [vmem:[%s5479_s16 + $0x18] sm:$0xff]  }
0x1283   :  { %v2927_v45 = vmul.f32 %v4405_v40, %v2923_v12  ;;  %v2925_v56 = vadd.f32 0.2548296, %v2921_v27  ;;  %v4294_v27 = vld [vmem:[%s5479_s16 + $0x10] sm:$0xff]  }
0x1284   :  { %v2928_v31 = vmul.f32 %v4407_v46, %v2924_v26  ;;  %v2926_v41 = vadd.f32 0.2548296, %v2922_v35  ;;  %v4301_v35 = vld [vmem:[%s5480_s18 + $0x8] sm:$0xff]  }
0x1285   :  { %v2947_v54 = vmul.f32 %v4413_v29, %v2927_v45  ;;  %v2929_v39 = vmul.f32 %v4409_v53, %v2925_v56  ;;  %v2867_v53 = vmul.f32 0.5, %v5347_v19  ;;  %v4296_v29 = vld [vmem:[%s5479_s16 + $0x20] sm:$0xff]  }
0x1286   :  { %v2948_v36 = vmul.f32 %v4415_v32, %v2928_v31  ;;  %v2930_v52 = vmul.f32 %v4411_v0, %v2926_v41  ;;  %v4297_v31 = vld [vmem:[%s5479_s16 + $0x28] sm:$0xff]   ;;  %v4298_v32 = vld [vmem:[%s5479_s16 + $0x30] sm:$0xff]   ;;  %v4300_v56 = vld [vmem:[%s5480_s18] sm:$0xff]  }
0x1287   :  { %v2951_v38 = vsub.f32 1.0, %v2947_v54  ;;  %v2949_v49 = vmul.f32 %v4417_v42, %v2929_v39  ;;  %v4299_v54 = vld [vmem:[%s5479_s16 + $0x38] sm:$0xff]  }
0x1288   :  { %v2952_v47 = vsub.f32 1.0, %v2948_v36  ;;  %v2950_v46 = vmul.f32 %v4419_v34, %v2930_v52  ;;  %v4302_v36 = vld [vmem:[%s5480_s18 + $0x10] sm:$0xff]   ;;  %v3702_v34 = vld [vmem:[%s5477_s14 + $0x1] ss:$0 sm:$0xff] }
0x1289   :  { %v2959_v48 = vsub.f32 0.0, %v2951_v38  ;;  %v2953_v59 = vsub.f32 1.0, %v2949_v49 }
0x128a   :  { %v2960_v40 = vsub.f32 0.0, %v2952_v47  ;;  %v2954_v61 = vsub.f32 1.0, %v2950_v46 }
0x128b   :  { %v2963_v30 = vsel %vm2955_vm7, %v2951_v38, %v2959_v48  ;;  %v2961_v60 = vsub.f32 0.0, %v2953_v59  ;;  %v4303_v38 = vld [vmem:[%s5480_s18 + $0x18] sm:$0xff]  }
0x128c   :  { %v2964_v37 = vsel %vm2956_vm8, %v2952_v47, %v2960_v40  ;;  %v2967_v43 = vadd.f32 1.0, %v2963_v30  ;;  %v2962_v57 = vsub.f32 0.0, %v2954_v61 }
0x128d   :  { %v2965_v1 = vsel %vm2957_vm9, %v2953_v59, %v2961_v60  ;;  %v2968_v0 = vadd.f32 1.0, %v2964_v37  ;;  %v3703_v59 = vld [vmem:[%s5478_s15 + $0x1] ss:$0 sm:$0xff] }
0x128e   :  { %v2969_v22 = vadd.f32 1.0, %v2965_v1  ;;  %v2966_v4 = vsel %vm2958_vm10, %v2954_v61, %v2962_v57  ;;  %v2971_v24 = vmul.f32 %v2967_v43, %v2867_v53 }
0x128f   :  { %v2970_v6 = vadd.f32 1.0, %v2966_v4  ;;  %v2972_v7 = vmul.f32 %v2968_v0, %v2868_v11  ;;  %v4304_v0 = vld [vmem:[%s5480_s18 + $0x20] sm:$0xff]   ;;  %v4307_v11 = vld [vmem:[%s5480_s18 + $0x38] sm:$0xff]  }
0x1290   :  { %v2973_v5 = vmul.f32 %v2969_v22, %v2869_v2  ;;  %v4305_v2 = vld [vmem:[%s5480_s18 + $0x28] sm:$0xff]   ;;  %v4306_v22 = vld [vmem:[%s5480_s18 + $0x30] sm:$0xff]   ;;  %v3704_v4 = vld [vmem:[%s5481_s17] ss:$0 sm:$0xff] }
0x1291   :  { %v2974_v50 = vmul.f32 %v2970_v6, %v2870_v15 }
0x1292   :  { %v3008_v58 = vpack.c.bf16 %v2973_v5, %v2971_v24 }
0x1293   :  { %v3009_v19 = vpack.c.bf16 %v2974_v50, %v2972_v7 }
0x1295   :  { %3146 = vmatprep.mubr.bf16.mxu1 %v3009_v19 }
0x1296   :  { %3147 = vmatmul.mubr.bf16.vlgmr.msra.gmra.mrb[36].mxu1 %v3008_v58 }
0x1297   :  { %4094 = vmatprep.mubr.msk.bf16.mxu1 %vm4436_vm0, %v4434_v3  ;;  %4079 = vmatpush3.bf16.msra.mxu1 %v4300_v56 }
0x1298   :  { %4080 = vmatprep.subr.bf16.mxu1 %v4434_v3 }
0x129b   :  { %4081 = vmatpush3.bf16.msra.mxu1 %v4301_v35 }
0x129c   :  { %4082 = vmatprep.subr.bf16.mxu1 %v4434_v3 }
0x129f   :  { %4083 = vmatpush3.bf16.msra.mxu1 %v4302_v36 }
0x12a0   :  { %4084 = vmatprep.subr.bf16.mxu1 %v4434_v3 }
0x12a3   :  { %4085 = vmatpush3.bf16.msra.mxu1 %v4303_v38 }
0x12a4   :  { %4086 = vmatprep.subr.bf16.mxu1 %v4434_v3 }
0x12a7   :  { %4087 = vmatpush3.bf16.msra.mxu1 %v4304_v0 }
0x12a8   :  { %4088 = vmatprep.subr.bf16.mxu1 %v4434_v3 }
0x12ab   :  { %4089 = vmatpush3.bf16.msra.mxu1 %v4305_v2 }
0x12ac   :  { %4090 = vmatprep.subr.bf16.mxu1 %v4434_v3 }
0x12af   :  { %4091 = vmatpush3.bf16.msra.mxu1 %v4306_v22 }
0x12b0   :  { %4092 = vmatprep.subr.bf16.mxu1 %v4434_v3 }
0x12b3   :  { %4093 = vmatpush3.bf16.msra.mxu1 %v4307_v11 }
0x1369   :  { %v3834_v33 = vpop.f32.mrb[36].mxu1 }
0x136a   :  { %v3835_v44 = vpop.f32.mrb[37].mxu1 }
0x136b   :  { %v3836_v18 = vadd.f32 %v3835_v44, %v3834_v33  ;;  %v3837_v8 = vpop.f32.mrb[38].mxu1 }
0x136c   :  { %v3838_v9 = vpop.f32.mrb[39].mxu1 }
0x136d   :  { %v3149_v25 = vadd.f32 %v3836_v18, %v3683_v51  ;;  %v3839_v14 = vadd.f32 %v3838_v9, %v3837_v8 }
0x136f   :  { %v3152_v20 = vadd.f32 %v3839_v14, %v3683_v51  ;;  %v3155_v10 = vadd.f32 %v3149_v25, %v5285_v62 }
0x1371   :  { %3161 = vadd.xlane.f32.xlu1 %v3155_v10  ;;  %v3156_v13 = vadd.f32 %v3152_v20, %v5287_v63  ;;  %v4293_v63 = vld [vmem:[%s5479_s16 + $0x8] sm:$0xff]  }
0x1372   :  { %4061 = vmatpush3.bf16.msra.mxu0 %v4293_v63 }
0x1373   :  { %3163 = vadd.xlane.f32.xlu0 %v3156_v13  ;;  %4062 = vmatprep.subr.bf16.mxu0 %v4434_v3 }
0x1376   :  { %4063 = vmatpush3.bf16.msra.mxu0 %v4294_v27 }
0x1377   :  { %4064 = vmatprep.subr.bf16.mxu0 %v4434_v3 }
0x137a   :  { %4065 = vmatpush3.bf16.msra.mxu0 %v4295_v28 }
0x137b   :  { %4066 = vmatprep.subr.bf16.mxu0 %v4434_v3 }
0x137e   :  { %4067 = vmatpush3.bf16.msra.mxu0 %v4296_v29 }
0x137f   :  { %4068 = vmatprep.subr.bf16.mxu0 %v4434_v3 }
0x1382   :  { %4069 = vmatpush3.bf16.msra.mxu0 %v4297_v31 }
0x1383   :  { %4070 = vmatprep.subr.bf16.mxu0 %v4434_v3 }
0x1386   :  { %4071 = vmatpush3.bf16.msra.mxu0 %v4298_v32 }
0x1387   :  { %4072 = vmatprep.subr.bf16.mxu0 %v4434_v3  ;;  %v3713_v3 = vld [vmem:[%s5482_s19] ss:$0 sm:$0xff] }
0x138a   :  { %4073 = vmatpush3.bf16.msra.mxu0 %v4299_v54 }
0x13fe   :  { %v3162_v16 = vpop.xlane.xlu1 %3161 }
0x13ff   :  { %v3165_v21 = vmul.f32 0.0078125, %v3162_v16 }
0x1400   :  { %v3164_v12 = vpop.xlane.xlu0 %3163 }
0x1401   :  { %v3167_v23 = vsub.f32 %v3155_v10, %v3165_v21  ;;  %v3166_v55 = vmul.f32 0.0078125, %v3164_v12 }
0x1403   :  { %v3168_v26 = vsub.f32 %v3156_v13, %v3166_v55  ;;  %v3169_v45 = vmul.f32 %v3167_v23, %v3167_v23 }
0x1405   :  { %3171 = vadd.xlane.f32.xlu1 %v3169_v45  ;;  %v3170_v62 = vmul.f32 %v3168_v26, %v3168_v26 }
0x1407   :  { %3173 = vadd.xlane.f32.xlu0 %v3170_v62 }
0x1492   :  { %v3172_v39 = vpop.xlane.xlu1 %3171 }
0x1493   :  { %v3175_v41 = vmul.f32 0.0078125, %v3172_v39 }
0x1494   :  { %v3174_v42 = vpop.xlane.xlu0 %3173 }
0x1495   :  { %v3177_v47 = vadd.f32 1e-12, %v3175_v41  ;;  %v3176_v48 = vmul.f32 0.0078125, %v3174_v42 }
0x1497   :  { %4420 = vrsqrt.f32 %v3177_v47  ;;  %v3178_v49 = vadd.f32 1e-12, %v3176_v48 }
0x1499   :  { %4422 = vrsqrt.f32 %v3178_v49 }
0x14a1   :  { %v4421_v52 = vpop.eup %4420 }
0x14a2   :  { %v3181_v40 = vmul.f32 %v4421_v52, %v3167_v23 }
0x14a3   :  { %v4423_v30 = vpop.eup %4422 }
0x14a4   :  { %v3189_v46 = vmul.f32 %v3702_v34, %v3181_v40  ;;  %v3182_v37 = vmul.f32 %v4423_v30, %v3168_v26 }
0x14a6   :  { %v3190_v60 = vmul.f32 %v3702_v34, %v3182_v37  ;;  %v3197_v61 = vadd.f32 %v3703_v59, %v3189_v46 }
0x14a8   :  { %v3198_v43 = vadd.f32 %v3703_v59, %v3190_v60 }
0x14aa   :  { %v3200_v53 = vrot.slane %v3198_v43, 7 }
0x14ac   :  { %v3203_v1 = vsel %vm3202_vm11, %v3197_v61, %v3200_v53 }
0x14ad   :  { %v3220_v57 = vpack.c.bf16 %v3203_v1, %v3203_v1 }
0x14af   :  { %4075 = vmatmul.mubr.bf16.vlgmr.msra.gmra.mrb[64].mxu0 %v3220_v57 }
0x1582   :  { %v3310_v24 = vpop.f32.mrb[64].mxu0 }
0x1583   :  { %v3311_v5 = vadd.f32 %v3704_v4, %v3310_v24  ;;  %v4076_v15 = vpop.f32.mrb[65].mxu0 }
0x1584   :  { %v3313_v6 = vpop.f32.mrb[66].mxu0 }
0x1585   :  { %4424 = vtanh.f32 %v3311_v5  ;;  %v4077_v7 = vpop.f32.mrb[67].mxu0 }
0x158f   :  { %v4425_v58 = vpop.eup %4424 }
0x1590   :  { %v3333_v50 = vpack.c.bf16 %v4425_v58, %v4425_v58 }
0x1592   :  { %4095 = vmatmul.mubr.bf16.vlgmr.msra.gmra.mrb[40].mxu1 %v3333_v50 }
0x1665   :  { %v3423_v19 = vpop.f32.mrb[40].mxu1 }
0x1666   :  { %v3424_v33 = vadd.f32 %v3713_v3, %v3423_v19  ;;  %v4096_v51 = vpop.f32.mrb[41].mxu1 }
0x1667   :  { %v3426_v44 = vpop.f32.mrb[42].mxu1 }
0x1668   :  { %3429 = vst [vmem:[%s5483_s20] sm:$0x3] %v3424_v33  ;;  %v4097_v18 = vpop.f32.mrb[43].mxu1 }

</bundles_post_ra>
